<compile_context>
chip_gen: v6e
topology: v6e:2x2x1
jax: 0.10.0
libtpu: 0.0.40
codegen_flags: <defaults>
</compile_context>

<pallas_src>
import math

import jax
import jax.numpy as jnp
from jax.experimental import pallas as pl
from jax.experimental.pallas import tpu as pltpu

# ----------------------- small, Whisper-shaped config -----------------------
B = 2              # batch
N_MELS = 8         # config.num_mel_bins
T_IN = 16          # mel frames fed to the conv stem
T = T_IN // 2      # sequence length after conv2 (stride 2) == max_source_positions
D = 32             # config.hidden_size (d_model)
H = 4              # encoder_attention_heads
DH = D // H
FFN = 64           # encoder_ffn_dim
L = 2              # num_hidden_layers (encoder layers)
H_CLS = 4          # num_classifier_attention_heads
DH_CLS = D // H_CLS
P = 16             # classifier_proj_size
NUM_CLASSES = 7    # num_labels (config['num_classes'])
FRAME_LEN = 64     # samples per frame in the synthetic front-end
N_SAMPLES = T_IN * FRAME_LEN
LN_EPS = 1e-5
LOGIT_PAD = 128    # lane-dense logits slab; real logits live in [:, :NUM_CLASSES]

VMEM = pltpu.MemorySpace.VMEM

# misc_d slab row layout: [conv1_b, conv2_b, lnf_w, lnf_b, cls_bo, pos(0..T-1)]
_CONV1_B, _CONV2_B, _LNF_W, _LNF_B, _CLS_BO, _POS0 = 0, 1, 2, 3, 4, 5
MISC_ROWS = _POS0 + T

_SQRT1_2 = 1.0 / math.sqrt(2.0)
_INV_LN10 = 1.0 / math.log(10.0)


# ----------------------- in-kernel math helpers -----------------------
def _erf_approx(x):
    # Abramowitz & Stegun 7.1.26, |err| < 1.5e-7.  Uses only exp/abs/where, all of which
    # have guaranteed Mosaic lowerings (lax.erf does not).
    a1, a2, a3, a4, a5 = 0.254829592, -0.284496736, 1.421413741, -1.453152027, 1.061405429
    p = 0.3275911
    ax = jnp.abs(x)
    t = 1.0 / (1.0 + p * ax)
    poly = ((((a5 * t + a4) * t + a3) * t + a2) * t + a1) * t
    y = 1.0 - poly * jnp.exp(-ax * ax)
    return jnp.where(x >= 0.0, y, -y)


def _gelu(x):
    # exact (erf) GELU, matching torch.nn.functional.gelu default
    return 0.5 * x * (1.0 + _erf_approx(x * _SQRT1_2))


def _layer_norm(x, w, b):
    # w, b: (1, D)
    m = jnp.mean(x, axis=-1, keepdims=True)
    v = jnp.mean(jnp.square(x - m), axis=-1, keepdims=True)
    return (x - m) * jax.lax.rsqrt(v + LN_EPS) * w + b


def _softmax(x):
    m = jnp.max(x, axis=-1, keepdims=True)
    e = jnp.exp(x - m)
    return e / jnp.sum(e, axis=-1, keepdims=True)


def _mm(x, w):
    """(..., K) @ (K, N) as a rank-2 MXU matmul (flatten leading dims, dot, reshape)."""
    lead = x.shape[:-1]
    y = jnp.dot(x.reshape(-1, x.shape[-1]), w, preferred_element_type=jnp.float32)
    return y.reshape(lead + (w.shape[-1],))


def _mha_all_heads(x, wq, bq, wk, bk, wv, bv, wo, bo):
    """Multi-head self-attention with per-head weights, all heads batched together.

    x : (B, T, D)
    wq/wk/wv : (H, D, DH)     bq/bk/bv : (H, 1, DH) or None
    wo : (H, DH, D)           bo : (1, D)
    Returns (B, T, D).
    """
    bsz, t, d = x.shape
    n_heads, _, dh = wq.shape
    bh = bsz * n_heads

    def rep(w):  # tile a per-head tensor across batch -> (B*H, ...)
        return jnp.broadcast_to(w[None], (bsz,) + w.shape).reshape((bh,) + w.shape[1:])

    xh = jnp.broadcast_to(x[:, None], (bsz, n_heads, t, d)).reshape(bh, t, d)

    q = jnp.einsum('htd,hde->hte', xh, rep(wq), preferred_element_type=jnp.float32)
    if bq is not None:
        q = q + rep(bq)
    q = q * (1.0 / math.sqrt(dh))          # Whisper scales q_proj output (incl. bias)
    k = jnp.einsum('htd,hde->hte', xh, rep(wk), preferred_element_type=jnp.float32)
    if bk is not None:
        k = k + rep(bk)
    v = jnp.einsum('htd,hde->hte', xh, rep(wv), preferred_element_type=jnp.float32)
    if bv is not None:
        v = v + rep(bv)

    s = jnp.einsum('hqe,hke->hqk', q, k, preferred_element_type=jnp.float32)
    p = _softmax(s)
    ctx = jnp.einsum('hqk,hke->hqe', p, v, preferred_element_type=jnp.float32)
    oh = jnp.einsum('hte,hed->htd', ctx, rep(wo), preferred_element_type=jnp.float32)
    oh = oh.reshape(bsz, n_heads, t, d)
    out = oh[:, 0]
    for hh in range(1, n_heads):           # static head-sum over the leading dim
        out = out + oh[:, hh]
    return out + bo


def _conv3(x, sel, w):
    """kernel-3 Conv1d (padding 1, stride baked into `sel`) as selection + projection.

    x   : (B, T_in, C_in)
    sel : (3, T_out, T_in)  constant 0/1 tap-selection matrices (zero rows == padding)
    w   : (3, C_in, C_out)  tap-major conv weights
    """
    bsz = x.shape[0]
    t_out, t_in = sel.shape[1], sel.shape[2]
    acc = None
    for k in range(3):  # K is static
        sk = jnp.broadcast_to(sel[k][None], (bsz, t_out, t_in))
        xk = jnp.einsum('btj,bjc->btc', sk, x, preferred_element_type=jnp.float32)
        yk = _mm(xk, w[k])
        acc = yk if acc is None else acc + yk
    return acc


# ----------------------- the single fused Pallas kernel -----------------------
def age_forward_kernel(frames_ref, mel_ref, sel1_ref, sel2_ref,
                       conv1_w_ref, conv2_w_ref, misc_ref,
                       enc_qkv_w_ref, enc_qv_b_ref, enc_wo_ref, enc_vec_ref,
                       enc_w1_ref, enc_b1_ref, enc_w2_ref,
                       cls_qkv_w_ref, cls_qkv_b_ref, cls_wo_ref,
                       cls_wp_ref, cls_wc_ref, o_ref):
    misc = misc_ref[...]                                   # (MISC_ROWS, D)

    # ---- (simplified) log-mel front-end ----
    # TODO(synk): exact Whisper STFT + mel filterbank feature extraction not reproduced;
    # deterministic framing + fixed projection + log-compression stand-in.
    power = jnp.square(_mm(frames_ref[...], mel_ref[...]))                  # (B, T_IN, N_MELS)
    log_spec = jnp.log(jnp.maximum(power, 1e-10)) * _INV_LN10
    gmax = jnp.max(jnp.max(log_spec, axis=1, keepdims=True), axis=2, keepdims=True)
    feat = (jnp.maximum(log_spec, gmax - 8.0) + 4.0) / 4.0                  # (B, T_IN, N_MELS)

    # ---- Whisper encoder conv stem ----
    sel1 = sel1_ref[...]
    sel2 = sel2_ref[...]
    h1 = _gelu(_conv3(feat, sel1, conv1_w_ref[...]) + misc[_CONV1_B:_CONV1_B + 1])  # (B, T_IN, D)
    h = _gelu(_conv3(h1, sel2, conv2_w_ref[...]) + misc[_CONV2_B:_CONV2_B + 1])     # (B, T, D)
    h = h + misc[_POS0:_POS0 + T]                         # + positional embeddings (T, D)

    # ---- pre-LN transformer encoder layers ----
    for l in range(L):                                    # L is static (weights stacked on dim 0)
        qkv = enc_qkv_w_ref[l]                            # (3H, D, DH)
        qvb = enc_qv_b_ref[l]                             # (2H, 1, DH)  [bq | bv]
        wo_h = enc_wo_ref[l]                              # (H, DH, D)
        vec = enc_vec_ref[l]                              # (6, D)  [ln1w, ln1b, ln2w, ln2b, bo, b2]

        x = _layer_norm(h, vec[0:1], vec[1:2])
        attn = _mha_all_heads(x,
                              qkv[0:H], qvb[0:H],
                              qkv[H:2 * H], None,          # Whisper k_proj has no bias
                              qkv[2 * H:3 * H], qvb[H:2 * H],
                              wo_h, vec[4:5])
        h = h + attn

        x = _layer_norm(h, vec[2:3], vec[3:4])
        x = _gelu(_mm(x, enc_w1_ref[l]) + enc_b1_ref[l])   # (B, T, FFN)
        x = _mm(x, enc_w2_ref[l]) + vec[5:6]               # (B, T, D)
        h = h + x

    # ---- final LN + classifier MHA + projection + mean pool + classifier ----
    h = _layer_norm(h, misc[_LNF_W:_LNF_W + 1], misc[_LNF_B:_LNF_B + 1])
    # TODO(synk): MHAClassifier / MultiHeadAttentionLayer source is not provided; modeled as
    # self-attention followed by the dense projection (no residual / extra norm assumed).
    cq = cls_qkv_w_ref[...]                               # (3*H_CLS, D, DH_CLS)
    cb = cls_qkv_b_ref[...]                               # (3*H_CLS, 1, DH_CLS)
    attn = _mha_all_heads(h,
                          cq[0:H_CLS], cb[0:H_CLS],
                          cq[H_CLS:2 * H_CLS], cb[H_CLS:2 * H_CLS],
                          cq[2 * H_CLS:3 * H_CLS], cb[2 * H_CLS:3 * H_CLS],
                          cls_wo_ref[...], misc[_CLS_BO:_CLS_BO + 1])

    wp = cls_wp_ref[...]                                  # (D+1, P): rows 0..D-1 = W, row D = b
    proj = _mm(attn, wp[0:D]) + wp[D:D + 1]               # (B, T, P)
    pooled = jnp.mean(proj, axis=1)                       # (B, P) == hidden_states.mean(dim=1)

    wc = cls_wc_ref[...]                                  # (P+1, 128): rows 0..P-1 = W, row P = b
    o_ref[...] = jnp.dot(pooled, wc[0:P],
                         preferred_element_type=jnp.float32) + wc[P:P + 1]  # (B, 128)


# ----------------------- wrapper around the single pallas_call -----------------------
def _conv_selectors():
    # Constant 0/1 tap-selection matrices; zero rows realize the conv zero-padding.
    j = jnp.arange(T_IN)[None, :]
    t1 = jnp.arange(T_IN)[:, None]
    t2 = jnp.arange(T)[:, None]
    sel1 = jnp.stack([(j == (t1 + k - 1)).astype(jnp.float32) for k in range(3)], axis=0)
    sel2 = jnp.stack([(j == (2 * t2 + k - 1)).astype(jnp.float32) for k in range(3)], axis=0)
    return sel1, sel2                                     # (3, T_IN, T_IN), (3, T, T_IN)


@jax.jit
def age_estimation_forward(waveform, params):
    frames = waveform.reshape(B, T_IN, FRAME_LEN)
    sel1, sel2 = _conv_selectors()
    args = (frames, params['mel_basis'], sel1, sel2,
            params['conv1_w'], params['conv2_w'], params['misc_d'],
            params['enc_qkv_w'], params['enc_qv_b'], params['enc_wo'], params['enc_vec'],
            params['enc_w1'], params['enc_b1'], params['enc_w2'],
            params['cls_qkv_w'], params['cls_qkv_b'], params['cls_wo'],
            params['cls_wp'], params['cls_wc'])
    logits_pad = pl.pallas_call(
        age_forward_kernel,
        out_shape=jax.ShapeDtypeStruct((B, LOGIT_PAD), jnp.float32),
        in_specs=[pl.BlockSpec(memory_space=VMEM) for _ in range(len(args))],
        out_specs=pl.BlockSpec(memory_space=VMEM),
    )(*args)
    return logits_pad[:, :NUM_CLASSES]


# ----------------------- deterministic synthetic parameters (packed) -----------------------
def init_params(key):
    keys = jax.random.split(key, 128)
    it = iter(keys)

    def nrm(shape, s=0.02):
        return (jax.random.normal(next(it), shape, jnp.float32) * s).astype(jnp.float32)

    def heads_w(w, n):     # (D_in, D_out) -> (n, D_in, D_out // n)
        d_in, d_out = w.shape
        return jnp.transpose(w.reshape(d_in, n, d_out // n), (1, 0, 2))

    def heads_b(b, n):     # (D_out,) -> (n, 1, D_out // n)
        return b.reshape(n, 1, b.shape[0] // n)

    # conv weights tap-major (K, C_in, C_out); PyTorch stores (C_out, C_in, K).
    conv1_w = nrm((3, N_MELS, D))
    conv2_w = nrm((3, D, D))
    conv1_b = nrm((D,))
    conv2_b = nrm((D,))
    pos = nrm((T, D))
    lnf_w = jnp.ones((D,), jnp.float32)
    lnf_b = jnp.zeros((D,), jnp.float32)

    enc_qkv_w, enc_qv_b, enc_wo, enc_vec, enc_w1, enc_b1, enc_w2 = [], [], [], [], [], [], []
    for _ in range(L):
        wq, wk, wv, wo = nrm((D, D)), nrm((D, D)), nrm((D, D)), nrm((D, D))
        bq, bv, bo = nrm((D,)), nrm((D,)), nrm((D,))        # Whisper k_proj has no bias
        w1, b1 = nrm((D, FFN)), nrm((FFN,))
        w2, b2 = nrm((FFN, D)), nrm((D,))
        ln1w = jnp.ones((D,), jnp.float32)
        ln1b = jnp.zeros((D,), jnp.float32)
        ln2w = jnp.ones((D,), jnp.float32)
        ln2b = jnp.zeros((D,), jnp.float32)
        enc_qkv_w.append(jnp.concatenate([heads_w(wq, H), heads_w(wk, H), heads_w(wv, H)], 0))
        enc_qv_b.append(jnp.concatenate([heads_b(bq, H), heads_b(bv, H)], 0))
        enc_wo.append(wo.reshape(H, DH, D))
        enc_vec.append(jnp.stack([ln1w, ln1b, ln2w, ln2b, bo, b2], 0))
        enc_w1.append(w1)
        enc_b1.append(b1.reshape(1, FFN))
        enc_w2.append(w2)

    # classifier head (MHA + Linear projection) + final classifier (lane-padded to 128)
    cwq, cwk, cwv, cwo = nrm((D, D)), nrm((D, D)), nrm((D, D)), nrm((D, D))
    cbq, cbk, cbv, cbo = nrm((D,)), nrm((D,)), nrm((D,)), nrm((D,))
    wp, bp = nrm((D, P)), nrm((P,))
    wc, bc = nrm((P, NUM_CLASSES)), nrm((NUM_CLASSES,))
    wc_pad = jnp.zeros((P, LOGIT_PAD), jnp.float32).at[:, :NUM_CLASSES].set(wc)
    bc_pad = jnp.zeros((1, LOGIT_PAD), jnp.float32).at[:, :NUM_CLASSES].set(bc)

    misc_d = jnp.concatenate([conv1_b[None], conv2_b[None], lnf_w[None], lnf_b[None],
                              cbo[None], pos], axis=0)      # (MISC_ROWS, D)

    return {
        'mel_basis': nrm((FRAME_LEN, N_MELS), 0.1),
        'conv1_w': conv1_w, 'conv2_w': conv2_w, 'misc_d': misc_d,
        'enc_qkv_w': jnp.stack(enc_qkv_w), 'enc_qv_b': jnp.stack(enc_qv_b),
        'enc_wo': jnp.stack(enc_wo), 'enc_vec': jnp.stack(enc_vec),
        'enc_w1': jnp.stack(enc_w1), 'enc_b1': jnp.stack(enc_b1), 'enc_w2': jnp.stack(enc_w2),
        'cls_qkv_w': jnp.concatenate([heads_w(cwq, H_CLS), heads_w(cwk, H_CLS),
                                      heads_w(cwv, H_CLS)], 0),
        'cls_qkv_b': jnp.concatenate([heads_b(cbq, H_CLS), heads_b(cbk, H_CLS),
                                      heads_b(cbv, H_CLS)], 0),
        'cls_wo': cwo.reshape(H_CLS, DH_CLS, D),
        'cls_wp': jnp.concatenate([wp, bp[None]], axis=0),          # (D+1, P)
        'cls_wc': jnp.concatenate([wc_pad, bc_pad], axis=0),        # (P+1, 128)
    }


if __name__ == "__main__":
    root = jax.random.PRNGKey(0)
    pkey, wkey = jax.random.split(root)
    params = init_params(pkey)
    waveform = jax.random.normal(wkey, (B, N_SAMPLES), jnp.float32)

    logits = age_estimation_forward(waveform, params)
    logits = jax.block_until_ready(logits)
    assert logits.shape == (B, NUM_CLASSES), logits.shape
    assert bool(jnp.all(jnp.isfinite(logits)))
    print("KERNEL_OK")
</pallas_src>

<mosaic_0001>
module attributes {stable_mosaic.version = 11 : i64} {
  func.func @age_forward_kernel(%arg0: memref<2x16x64xf32, #tpu.memory_space<vmem>>, %arg1: memref<64x8xf32, #tpu.memory_space<vmem>>, %arg2: memref<3x16x16xf32, #tpu.memory_space<vmem>>, %arg3: memref<3x8x16xf32, #tpu.memory_space<vmem>>, %arg4: memref<3x8x32xf32, #tpu.memory_space<vmem>>, %arg5: memref<3x32x32xf32, #tpu.memory_space<vmem>>, %arg6: memref<13x32xf32, #tpu.memory_space<vmem>>, %arg7: memref<2x12x32x8xf32, #tpu.memory_space<vmem>>, %arg8: memref<2x8x1x8xf32, #tpu.memory_space<vmem>>, %arg9: memref<2x4x8x32xf32, #tpu.memory_space<vmem>>, %arg10: memref<2x6x32xf32, #tpu.memory_space<vmem>>, %arg11: memref<2x32x64xf32, #tpu.memory_space<vmem>>, %arg12: memref<2x1x64xf32, #tpu.memory_space<vmem>>, %arg13: memref<2x64x32xf32, #tpu.memory_space<vmem>>, %arg14: memref<12x32x8xf32, #tpu.memory_space<vmem>>, %arg15: memref<12x1x8xf32, #tpu.memory_space<vmem>>, %arg16: memref<4x8x32xf32, #tpu.memory_space<vmem>>, %arg17: memref<33x16xf32, #tpu.memory_space<vmem>>, %arg18: memref<17x128xf32, #tpu.memory_space<vmem>>, %arg19: memref<2x128xf32, #tpu.memory_space<vmem>>) attributes {dimension_semantics = [], scalar_prefetch = 0 : i64, scratch_operands = 0 : i64, tpu.core_type = #tpu.core_type<tc>} {
    %c0 = arith.constant 0 : index
    %c0_0 = arith.constant 0 : index
    %0 = vector.load %arg6[%c0, %c0_0] : memref<13x32xf32, #tpu.memory_space<vmem>>, vector<13x32xf32>
    %c0_1 = arith.constant 0 : index
    %c0_2 = arith.constant 0 : index
    %c0_3 = arith.constant 0 : index
    %1 = vector.load %arg0[%c0_1, %c0_2, %c0_3] : memref<2x16x64xf32, #tpu.memory_space<vmem>>, vector<2x16x64xf32>
    %c0_4 = arith.constant 0 : index
    %c0_5 = arith.constant 0 : index
    %2 = vector.load %arg1[%c0_4, %c0_5] : memref<64x8xf32, #tpu.memory_space<vmem>>, vector<64x8xf32>
    %3 = vector.shape_cast %1 : vector<2x16x64xf32> to vector<32x64xf32>
    %cst = arith.constant dense<0.000000e+00> : vector<32x8xf32>
    %4 = tpu.matmul %3, %2, %cst {dimension_numbers = #tpu.dot_dimension_numbers<[1], [0], [0], [1], [0, 0, 1, 1], [], []>} : vector<32x64xf32>, vector<64x8xf32>, vector<32x8xf32> -> vector<32x8xf32>
    %5 = vector.shape_cast %4 : vector<32x8xf32> to vector<2x16x8xf32>
    %6 = arith.mulf %5, %5 : vector<2x16x8xf32>
    %cst_6 = arith.constant 1.000000e-10 : f32
    %7 = vector.broadcast %cst_6 : f32 to vector<2x16x8xf32>
    %8 = arith.maximumf %6, %7 : vector<2x16x8xf32>
    %9 = math.log %8 : vector<2x16x8xf32>
    %cst_7 = arith.constant 0.434294492 : f32
    %10 = vector.broadcast %cst_7 : f32 to vector<2x16x8xf32>
    %11 = arith.mulf %9, %10 : vector<2x16x8xf32>
    %cst_8 = arith.constant dense<0xFF800000> : vector<2x8xf32>
    %12 = vector.multi_reduction <maximumf>, %11, %cst_8 [1] : vector<2x16x8xf32> to vector<2x8xf32>
    %13 = vector.shape_cast %12 : vector<2x8xf32> to vector<2x1x8xf32>
    %cst_9 = arith.constant dense<0xFF800000> : vector<2x1xf32>
    %14 = vector.multi_reduction <maximumf>, %13, %cst_9 [2] : vector<2x1x8xf32> to vector<2x1xf32>
    %15 = vector.shape_cast %14 : vector<2x1xf32> to vector<2x1x1xf32>
    %cst_10 = arith.constant 8.000000e+00 : f32
    %16 = vector.broadcast %cst_10 : f32 to vector<2x1x1xf32>
    %17 = arith.subf %15, %16 : vector<2x1x1xf32>
    %18 = vector.broadcast %17 : vector<2x1x1xf32> to vector<2x16x8xf32>
    %19 = arith.maximumf %11, %18 : vector<2x16x8xf32>
    %cst_11 = arith.constant 4.000000e+00 : f32
    %20 = vector.broadcast %cst_11 : f32 to vector<2x16x8xf32>
    %21 = arith.addf %19, %20 : vector<2x16x8xf32>
    %cst_12 = arith.constant 4.000000e+00 : f32
    %22 = vector.broadcast %cst_12 : f32 to vector<2x16x8xf32>
    %23 = arith.divf %21, %22 : vector<2x16x8xf32>
    %c0_13 = arith.constant 0 : index
    %c0_14 = arith.constant 0 : index
    %c0_15 = arith.constant 0 : index
    %24 = vector.load %arg2[%c0_13, %c0_14, %c0_15] : memref<3x16x16xf32, #tpu.memory_space<vmem>>, vector<3x16x16xf32>
    %c0_16 = arith.constant 0 : index
    %c0_17 = arith.constant 0 : index
    %c0_18 = arith.constant 0 : index
    %25 = vector.load %arg3[%c0_16, %c0_17, %c0_18] : memref<3x8x16xf32, #tpu.memory_space<vmem>>, vector<3x8x16xf32>
    %c0_19 = arith.constant 0 : index
    %c0_20 = arith.constant 0 : index
    %c0_21 = arith.constant 0 : index
    %26 = vector.load %arg4[%c0_19, %c0_20, %c0_21] : memref<3x8x32xf32, #tpu.memory_space<vmem>>, vector<3x8x32xf32>
    %27 = vector.extract_strided_slice %24 {offsets = [0, 0, 0], sizes = [1, 16, 16], strides = [1, 1, 1]} : vector<3x16x16xf32> to vector<1x16x16xf32>
    %28 = vector.shape_cast %27 : vector<1x16x16xf32> to vector<16x16xf32>
    %29 = vector.shape_cast %28 : vector<16x16xf32> to vector<1x16x16xf32>
    %30 = vector.shape_cast %29 : vector<1x16x16xf32> to vector<1x16x16xf32>
    %31 = vector.broadcast %30 : vector<1x16x16xf32> to vector<2x16x16xf32>
    "tpu.trace_start"() <{level = 10 : i32, message = "btj,bjc->btc"}> : () -> ()
    %cst_22 = arith.constant dense<0.000000e+00> : vector<2x16x8xf32>
    %32 = tpu.matmul %31, %23, %cst_22 {dimension_numbers = #tpu.dot_dimension_numbers<[2], [1], [1], [2], [0, 0, 0, 1, 1, 2], [0], [0]>} : vector<2x16x16xf32>, vector<2x16x8xf32>, vector<2x16x8xf32> -> vector<2x16x8xf32>
    "tpu.trace_stop"() : () -> ()
    %33 = vector.extract_strided_slice %26 {offsets = [0, 0, 0], sizes = [1, 8, 32], strides = [1, 1, 1]} : vector<3x8x32xf32> to vector<1x8x32xf32>
    %34 = vector.shape_cast %33 : vector<1x8x32xf32> to vector<8x32xf32>
    %35 = vector.shape_cast %32 : vector<2x16x8xf32> to vector<32x8xf32>
    %cst_23 = arith.constant dense<0.000000e+00> : vector<32x32xf32>
    %36 = tpu.matmul %35, %34, %cst_23 {dimension_numbers = #tpu.dot_dimension_numbers<[1], [0], [0], [1], [0, 0, 1, 1], [], []>} : vector<32x8xf32>, vector<8x32xf32>, vector<32x32xf32> -> vector<32x32xf32>
    %37 = vector.shape_cast %36 : vector<32x32xf32> to vector<2x16x32xf32>
    %38 = vector.extract_strided_slice %24 {offsets = [1, 0, 0], sizes = [1, 16, 16], strides = [1, 1, 1]} : vector<3x16x16xf32> to vector<1x16x16xf32>
    %39 = vector.shape_cast %38 : vector<1x16x16xf32> to vector<16x16xf32>
    %40 = vector.shape_cast %39 : vector<16x16xf32> to vector<1x16x16xf32>
    %41 = vector.shape_cast %40 : vector<1x16x16xf32> to vector<1x16x16xf32>
    %42 = vector.broadcast %41 : vector<1x16x16xf32> to vector<2x16x16xf32>
    "tpu.trace_start"() <{level = 10 : i32, message = "btj,bjc->btc"}> : () -> ()
    %cst_24 = arith.constant dense<0.000000e+00> : vector<2x16x8xf32>
    %43 = tpu.matmul %42, %23, %cst_24 {dimension_numbers = #tpu.dot_dimension_numbers<[2], [1], [1], [2], [0, 0, 0, 1, 1, 2], [0], [0]>} : vector<2x16x16xf32>, vector<2x16x8xf32>, vector<2x16x8xf32> -> vector<2x16x8xf32>
    "tpu.trace_stop"() : () -> ()
    %44 = vector.extract_strided_slice %26 {offsets = [1, 0, 0], sizes = [1, 8, 32], strides = [1, 1, 1]} : vector<3x8x32xf32> to vector<1x8x32xf32>
    %45 = vector.shape_cast %44 : vector<1x8x32xf32> to vector<8x32xf32>
    %46 = vector.shape_cast %43 : vector<2x16x8xf32> to vector<32x8xf32>
    %cst_25 = arith.constant dense<0.000000e+00> : vector<32x32xf32>
    %47 = tpu.matmul %46, %45, %cst_25 {dimension_numbers = #tpu.dot_dimension_numbers<[1], [0], [0], [1], [0, 0, 1, 1], [], []>} : vector<32x8xf32>, vector<8x32xf32>, vector<32x32xf32> -> vector<32x32xf32>
    %48 = vector.shape_cast %47 : vector<32x32xf32> to vector<2x16x32xf32>
    %49 = arith.addf %37, %48 : vector<2x16x32xf32>
    %50 = vector.extract_strided_slice %24 {offsets = [2, 0, 0], sizes = [1, 16, 16], strides = [1, 1, 1]} : vector<3x16x16xf32> to vector<1x16x16xf32>
    %51 = vector.shape_cast %50 : vector<1x16x16xf32> to vector<16x16xf32>
    %52 = vector.shape_cast %51 : vector<16x16xf32> to vector<1x16x16xf32>
    %53 = vector.shape_cast %52 : vector<1x16x16xf32> to vector<1x16x16xf32>
    %54 = vector.broadcast %53 : vector<1x16x16xf32> to vector<2x16x16xf32>
    "tpu.trace_start"() <{level = 10 : i32, message = "btj,bjc->btc"}> : () -> ()
    %cst_26 = arith.constant dense<0.000000e+00> : vector<2x16x8xf32>
    %55 = tpu.matmul %54, %23, %cst_26 {dimension_numbers = #tpu.dot_dimension_numbers<[2], [1], [1], [2], [0, 0, 0, 1, 1, 2], [0], [0]>} : vector<2x16x16xf32>, vector<2x16x8xf32>, vector<2x16x8xf32> -> vector<2x16x8xf32>
    "tpu.trace_stop"() : () -> ()
    %56 = vector.extract_strided_slice %26 {offsets = [2, 0, 0], sizes = [1, 8, 32], strides = [1, 1, 1]} : vector<3x8x32xf32> to vector<1x8x32xf32>
    %57 = vector.shape_cast %56 : vector<1x8x32xf32> to vector<8x32xf32>
    %58 = vector.shape_cast %55 : vector<2x16x8xf32> to vector<32x8xf32>
    %cst_27 = arith.constant dense<0.000000e+00> : vector<32x32xf32>
    %59 = tpu.matmul %58, %57, %cst_27 {dimension_numbers = #tpu.dot_dimension_numbers<[1], [0], [0], [1], [0, 0, 1, 1], [], []>} : vector<32x8xf32>, vector<8x32xf32>, vector<32x32xf32> -> vector<32x32xf32>
    %60 = vector.shape_cast %59 : vector<32x32xf32> to vector<2x16x32xf32>
    %61 = arith.addf %49, %60 : vector<2x16x32xf32>
    %62 = vector.extract_strided_slice %0 {offsets = [0, 0], sizes = [1, 32], strides = [1, 1]} : vector<13x32xf32> to vector<1x32xf32>
    %63 = vector.shape_cast %62 : vector<1x32xf32> to vector<1x1x32xf32>
    %64 = vector.broadcast %63 : vector<1x1x32xf32> to vector<2x16x32xf32>
    %65 = arith.addf %61, %64 : vector<2x16x32xf32>
    %cst_28 = arith.constant 5.000000e-01 : f32
    %66 = vector.broadcast %cst_28 : f32 to vector<2x16x32xf32>
    %67 = arith.mulf %66, %65 : vector<2x16x32xf32>
    %cst_29 = arith.constant 0.707106769 : f32
    %68 = vector.broadcast %cst_29 : f32 to vector<2x16x32xf32>
    %69 = arith.mulf %65, %68 : vector<2x16x32xf32>
    %70 = math.absf %69 : vector<2x16x32xf32>
    %cst_30 = arith.constant 0.327591091 : f32
    %71 = vector.broadcast %cst_30 : f32 to vector<2x16x32xf32>
    %72 = arith.mulf %71, %70 : vector<2x16x32xf32>
    %cst_31 = arith.constant 1.000000e+00 : f32
    %73 = vector.broadcast %cst_31 : f32 to vector<2x16x32xf32>
    %74 = arith.addf %73, %72 : vector<2x16x32xf32>
    %cst_32 = arith.constant 1.000000e+00 : f32
    %75 = vector.broadcast %cst_32 : f32 to vector<2x16x32xf32>
    %76 = arith.divf %75, %74 : vector<2x16x32xf32>
    %cst_33 = arith.constant 1.06140542 : f32
    %77 = vector.broadcast %cst_33 : f32 to vector<2x16x32xf32>
    %78 = arith.mulf %77, %76 : vector<2x16x32xf32>
    %cst_34 = arith.constant -1.45315206 : f32
    %79 = vector.broadcast %cst_34 : f32 to vector<2x16x32xf32>
    %80 = arith.addf %78, %79 : vector<2x16x32xf32>
    %81 = arith.mulf %80, %76 : vector<2x16x32xf32>
    %cst_35 = arith.constant 1.42141378 : f32
    %82 = vector.broadcast %cst_35 : f32 to vector<2x16x32xf32>
    %83 = arith.addf %81, %82 : vector<2x16x32xf32>
    %84 = arith.mulf %83, %76 : vector<2x16x32xf32>
    %cst_36 = arith.constant -0.284496725 : f32
    %85 = vector.broadcast %cst_36 : f32 to vector<2x16x32xf32>
    %86 = arith.addf %84, %85 : vector<2x16x32xf32>
    %87 = arith.mulf %86, %76 : vector<2x16x32xf32>
    %cst_37 = arith.constant 0.254829586 : f32
    %88 = vector.broadcast %cst_37 : f32 to vector<2x16x32xf32>
    %89 = arith.addf %87, %88 : vector<2x16x32xf32>
    %90 = arith.mulf %89, %76 : vector<2x16x32xf32>
    %cst_38 = arith.constant 0.000000e+00 : f32
    %91 = vector.broadcast %cst_38 : f32 to vector<2x16x32xf32>
    %92 = arith.subf %91, %70 : vector<2x16x32xf32>
    %93 = arith.mulf %92, %70 : vector<2x16x32xf32>
    %94 = math.exp %93 : vector<2x16x32xf32>
    %95 = arith.mulf %90, %94 : vector<2x16x32xf32>
    %cst_39 = arith.constant 1.000000e+00 : f32
    %96 = vector.broadcast %cst_39 : f32 to vector<2x16x32xf32>
    %97 = arith.subf %96, %95 : vector<2x16x32xf32>
    %cst_40 = arith.constant 0.000000e+00 : f32
    %98 = vector.broadcast %cst_40 : f32 to vector<2x16x32xf32>
    %99 = arith.cmpf oge, %69, %98 : vector<2x16x32xf32>
    %cst_41 = arith.constant 0.000000e+00 : f32
    %100 = vector.broadcast %cst_41 : f32 to vector<2x16x32xf32>
    %101 = arith.subf %100, %97 : vector<2x16x32xf32>
    %102 = arith.select %99, %97, %101 : vector<2x16x32xi1>, vector<2x16x32xf32>
    %cst_42 = arith.constant 1.000000e+00 : f32
    %103 = vector.broadcast %cst_42 : f32 to vector<2x16x32xf32>
    %104 = arith.addf %103, %102 : vector<2x16x32xf32>
    %105 = arith.mulf %67, %104 : vector<2x16x32xf32>
    %c0_43 = arith.constant 0 : index
    %c0_44 = arith.constant 0 : index
    %c0_45 = arith.constant 0 : index
    %106 = vector.load %arg5[%c0_43, %c0_44, %c0_45] : memref<3x32x32xf32, #tpu.memory_space<vmem>>, vector<3x32x32xf32>
    %107 = vector.extract_strided_slice %25 {offsets = [0, 0, 0], sizes = [1, 8, 16], strides = [1, 1, 1]} : vector<3x8x16xf32> to vector<1x8x16xf32>
    %108 = vector.shape_cast %107 : vector<1x8x16xf32> to vector<8x16xf32>
    %109 = vector.shape_cast %108 : vector<8x16xf32> to vector<1x8x16xf32>
    %110 = vector.shape_cast %109 : vector<1x8x16xf32> to vector<1x8x16xf32>
    %111 = vector.broadcast %110 : vector<1x8x16xf32> to vector<2x8x16xf32>
    "tpu.trace_start"() <{level = 10 : i32, message = "btj,bjc->btc"}> : () -> ()
    %cst_46 = arith.constant dense<0.000000e+00> : vector<2x8x32xf32>
    %112 = tpu.matmul %111, %105, %cst_46 {dimension_numbers = #tpu.dot_dimension_numbers<[2], [1], [1], [2], [0, 0, 0, 1, 1, 2], [0], [0]>} : vector<2x8x16xf32>, vector<2x16x32xf32>, vector<2x8x32xf32> -> vector<2x8x32xf32>
    "tpu.trace_stop"() : () -> ()
    %113 = vector.extract_strided_slice %106 {offsets = [0, 0, 0], sizes = [1, 32, 32], strides = [1, 1, 1]} : vector<3x32x32xf32> to vector<1x32x32xf32>
    %114 = vector.shape_cast %113 : vector<1x32x32xf32> to vector<32x32xf32>
    %115 = vector.shape_cast %112 : vector<2x8x32xf32> to vector<16x32xf32>
    %cst_47 = arith.constant dense<0.000000e+00> : vector<16x32xf32>
    %116 = tpu.matmul %115, %114, %cst_47 {dimension_numbers = #tpu.dot_dimension_numbers<[1], [0], [0], [1], [0, 0, 1, 1], [], []>} : vector<16x32xf32>, vector<32x32xf32>, vector<16x32xf32> -> vector<16x32xf32>
    %117 = vector.shape_cast %116 : vector<16x32xf32> to vector<2x8x32xf32>
    %118 = vector.extract_strided_slice %25 {offsets = [1, 0, 0], sizes = [1, 8, 16], strides = [1, 1, 1]} : vector<3x8x16xf32> to vector<1x8x16xf32>
    %119 = vector.shape_cast %118 : vector<1x8x16xf32> to vector<8x16xf32>
    %120 = vector.shape_cast %119 : vector<8x16xf32> to vector<1x8x16xf32>
    %121 = vector.shape_cast %120 : vector<1x8x16xf32> to vector<1x8x16xf32>
    %122 = vector.broadcast %121 : vector<1x8x16xf32> to vector<2x8x16xf32>
    "tpu.trace_start"() <{level = 10 : i32, message = "btj,bjc->btc"}> : () -> ()
    %cst_48 = arith.constant dense<0.000000e+00> : vector<2x8x32xf32>
    %123 = tpu.matmul %122, %105, %cst_48 {dimension_numbers = #tpu.dot_dimension_numbers<[2], [1], [1], [2], [0, 0, 0, 1, 1, 2], [0], [0]>} : vector<2x8x16xf32>, vector<2x16x32xf32>, vector<2x8x32xf32> -> vector<2x8x32xf32>
    "tpu.trace_stop"() : () -> ()
    %124 = vector.extract_strided_slice %106 {offsets = [1, 0, 0], sizes = [1, 32, 32], strides = [1, 1, 1]} : vector<3x32x32xf32> to vector<1x32x32xf32>
    %125 = vector.shape_cast %124 : vector<1x32x32xf32> to vector<32x32xf32>
    %126 = vector.shape_cast %123 : vector<2x8x32xf32> to vector<16x32xf32>
    %cst_49 = arith.constant dense<0.000000e+00> : vector<16x32xf32>
    %127 = tpu.matmul %126, %125, %cst_49 {dimension_numbers = #tpu.dot_dimension_numbers<[1], [0], [0], [1], [0, 0, 1, 1], [], []>} : vector<16x32xf32>, vector<32x32xf32>, vector<16x32xf32> -> vector<16x32xf32>
    %128 = vector.shape_cast %127 : vector<16x32xf32> to vector<2x8x32xf32>
    %129 = arith.addf %117, %128 : vector<2x8x32xf32>
    %130 = vector.extract_strided_slice %25 {offsets = [2, 0, 0], sizes = [1, 8, 16], strides = [1, 1, 1]} : vector<3x8x16xf32> to vector<1x8x16xf32>
    %131 = vector.shape_cast %130 : vector<1x8x16xf32> to vector<8x16xf32>
    %132 = vector.shape_cast %131 : vector<8x16xf32> to vector<1x8x16xf32>
    %133 = vector.shape_cast %132 : vector<1x8x16xf32> to vector<1x8x16xf32>
    %134 = vector.broadcast %133 : vector<1x8x16xf32> to vector<2x8x16xf32>
    "tpu.trace_start"() <{level = 10 : i32, message = "btj,bjc->btc"}> : () -> ()
    %cst_50 = arith.constant dense<0.000000e+00> : vector<2x8x32xf32>
    %135 = tpu.matmul %134, %105, %cst_50 {dimension_numbers = #tpu.dot_dimension_numbers<[2], [1], [1], [2], [0, 0, 0, 1, 1, 2], [0], [0]>} : vector<2x8x16xf32>, vector<2x16x32xf32>, vector<2x8x32xf32> -> vector<2x8x32xf32>
    "tpu.trace_stop"() : () -> ()
    %136 = vector.extract_strided_slice %106 {offsets = [2, 0, 0], sizes = [1, 32, 32], strides = [1, 1, 1]} : vector<3x32x32xf32> to vector<1x32x32xf32>
    %137 = vector.shape_cast %136 : vector<1x32x32xf32> to vector<32x32xf32>
    %138 = vector.shape_cast %135 : vector<2x8x32xf32> to vector<16x32xf32>
    %cst_51 = arith.constant dense<0.000000e+00> : vector<16x32xf32>
    %139 = tpu.matmul %138, %137, %cst_51 {dimension_numbers = #tpu.dot_dimension_numbers<[1], [0], [0], [1], [0, 0, 1, 1], [], []>} : vector<16x32xf32>, vector<32x32xf32>, vector<16x32xf32> -> vector<16x32xf32>
    %140 = vector.shape_cast %139 : vector<16x32xf32> to vector<2x8x32xf32>
    %141 = arith.addf %129, %140 : vector<2x8x32xf32>
    %142 = vector.extract_strided_slice %0 {offsets = [1, 0], sizes = [1, 32], strides = [1, 1]} : vector<13x32xf32> to vector<1x32xf32>
    %143 = vector.shape_cast %142 : vector<1x32xf32> to vector<1x1x32xf32>
    %144 = vector.broadcast %143 : vector<1x1x32xf32> to vector<2x8x32xf32>
    %145 = arith.addf %141, %144 : vector<2x8x32xf32>
    %cst_52 = arith.constant 5.000000e-01 : f32
    %146 = vector.broadcast %cst_52 : f32 to vector<2x8x32xf32>
    %147 = arith.mulf %146, %145 : vector<2x8x32xf32>
    %cst_53 = arith.constant 0.707106769 : f32
    %148 = vector.broadcast %cst_53 : f32 to vector<2x8x32xf32>
    %149 = arith.mulf %145, %148 : vector<2x8x32xf32>
    %150 = math.absf %149 : vector<2x8x32xf32>
    %cst_54 = arith.constant 0.327591091 : f32
    %151 = vector.broadcast %cst_54 : f32 to vector<2x8x32xf32>
    %152 = arith.mulf %151, %150 : vector<2x8x32xf32>
    %cst_55 = arith.constant 1.000000e+00 : f32
    %153 = vector.broadcast %cst_55 : f32 to vector<2x8x32xf32>
    %154 = arith.addf %153, %152 : vector<2x8x32xf32>
    %cst_56 = arith.constant 1.000000e+00 : f32
    %155 = vector.broadcast %cst_56 : f32 to vector<2x8x32xf32>
    %156 = arith.divf %155, %154 : vector<2x8x32xf32>
    %cst_57 = arith.constant 1.06140542 : f32
    %157 = vector.broadcast %cst_57 : f32 to vector<2x8x32xf32>
    %158 = arith.mulf %157, %156 : vector<2x8x32xf32>
    %cst_58 = arith.constant -1.45315206 : f32
    %159 = vector.broadcast %cst_58 : f32 to vector<2x8x32xf32>
    %160 = arith.addf %158, %159 : vector<2x8x32xf32>
    %161 = arith.mulf %160, %156 : vector<2x8x32xf32>
    %cst_59 = arith.constant 1.42141378 : f32
    %162 = vector.broadcast %cst_59 : f32 to vector<2x8x32xf32>
    %163 = arith.addf %161, %162 : vector<2x8x32xf32>
    %164 = arith.mulf %163, %156 : vector<2x8x32xf32>
    %cst_60 = arith.constant -0.284496725 : f32
    %165 = vector.broadcast %cst_60 : f32 to vector<2x8x32xf32>
    %166 = arith.addf %164, %165 : vector<2x8x32xf32>
    %167 = arith.mulf %166, %156 : vector<2x8x32xf32>
    %cst_61 = arith.constant 0.254829586 : f32
    %168 = vector.broadcast %cst_61 : f32 to vector<2x8x32xf32>
    %169 = arith.addf %167, %168 : vector<2x8x32xf32>
    %170 = arith.mulf %169, %156 : vector<2x8x32xf32>
    %cst_62 = arith.constant 0.000000e+00 : f32
    %171 = vector.broadcast %cst_62 : f32 to vector<2x8x32xf32>
    %172 = arith.subf %171, %150 : vector<2x8x32xf32>
    %173 = arith.mulf %172, %150 : vector<2x8x32xf32>
    %174 = math.exp %173 : vector<2x8x32xf32>
    %175 = arith.mulf %170, %174 : vector<2x8x32xf32>
    %cst_63 = arith.constant 1.000000e+00 : f32
    %176 = vector.broadcast %cst_63 : f32 to vector<2x8x32xf32>
    %177 = arith.subf %176, %175 : vector<2x8x32xf32>
    %cst_64 = arith.constant 0.000000e+00 : f32
    %178 = vector.broadcast %cst_64 : f32 to vector<2x8x32xf32>
    %179 = arith.cmpf oge, %149, %178 : vector<2x8x32xf32>
    %cst_65 = arith.constant 0.000000e+00 : f32
    %180 = vector.broadcast %cst_65 : f32 to vector<2x8x32xf32>
    %181 = arith.subf %180, %177 : vector<2x8x32xf32>
    %182 = arith.select %179, %177, %181 : vector<2x8x32xi1>, vector<2x8x32xf32>
    %cst_66 = arith.constant 1.000000e+00 : f32
    %183 = vector.broadcast %cst_66 : f32 to vector<2x8x32xf32>
    %184 = arith.addf %183, %182 : vector<2x8x32xf32>
    %185 = arith.mulf %147, %184 : vector<2x8x32xf32>
    %186 = vector.extract_strided_slice %0 {offsets = [5, 0], sizes = [8, 32], strides = [1, 1]} : vector<13x32xf32> to vector<8x32xf32>
    %187 = vector.shape_cast %186 : vector<8x32xf32> to vector<1x8x32xf32>
    %188 = vector.broadcast %187 : vector<1x8x32xf32> to vector<2x8x32xf32>
    %189 = arith.addf %185, %188 : vector<2x8x32xf32>
    %c0_67 = arith.constant 0 : index
    %c0_68 = arith.constant 0 : index
    %c0_69 = arith.constant 0 : index
    %c0_70 = arith.constant 0 : index
    %190 = vector.load %arg7[%c0_67, %c0_68, %c0_69, %c0_70] : memref<2x12x32x8xf32, #tpu.memory_space<vmem>>, vector<1x12x32x8xf32>
    %191 = vector.shape_cast %190 : vector<1x12x32x8xf32> to vector<12x32x8xf32>
    %c0_71 = arith.constant 0 : index
    %c0_72 = arith.constant 0 : index
    %c0_73 = arith.constant 0 : index
    %c0_74 = arith.constant 0 : index
    %192 = vector.load %arg8[%c0_71, %c0_72, %c0_73, %c0_74] : memref<2x8x1x8xf32, #tpu.memory_space<vmem>>, vector<1x8x1x8xf32>
    %193 = vector.shape_cast %192 : vector<1x8x1x8xf32> to vector<8x1x8xf32>
    %c0_75 = arith.constant 0 : index
    %c0_76 = arith.constant 0 : index
    %c0_77 = arith.constant 0 : index
    %c0_78 = arith.constant 0 : index
    %194 = vector.load %arg9[%c0_75, %c0_76, %c0_77, %c0_78] : memref<2x4x8x32xf32, #tpu.memory_space<vmem>>, vector<1x4x8x32xf32>
    %195 = vector.shape_cast %194 : vector<1x4x8x32xf32> to vector<4x8x32xf32>
    %c0_79 = arith.constant 0 : index
    %c0_80 = arith.constant 0 : index
    %c0_81 = arith.constant 0 : index
    %196 = vector.load %arg10[%c0_79, %c0_80, %c0_81] : memref<2x6x32xf32, #tpu.memory_space<vmem>>, vector<1x6x32xf32>
    %197 = vector.shape_cast %196 : vector<1x6x32xf32> to vector<6x32xf32>
    %198 = vector.extract_strided_slice %197 {offsets = [0, 0], sizes = [1, 32], strides = [1, 1]} : vector<6x32xf32> to vector<1x32xf32>
    %199 = vector.extract_strided_slice %197 {offsets = [1, 0], sizes = [1, 32], strides = [1, 1]} : vector<6x32xf32> to vector<1x32xf32>
    %cst_82 = arith.constant dense<0.000000e+00> : vector<2x8xf32>
    %200 = vector.multi_reduction <add>, %189, %cst_82 [2] : vector<2x8x32xf32> to vector<2x8xf32>
    %201 = vector.shape_cast %200 : vector<2x8xf32> to vector<2x8x1xf32>
    %cst_83 = arith.constant 3.200000e+01 : f32
    %202 = vector.broadcast %cst_83 : f32 to vector<2x8x1xf32>
    %203 = arith.divf %201, %202 : vector<2x8x1xf32>
    %204 = vector.broadcast %203 : vector<2x8x1xf32> to vector<2x8x32xf32>
    %205 = arith.subf %189, %204 : vector<2x8x32xf32>
    %206 = arith.mulf %205, %205 : vector<2x8x32xf32>
    %cst_84 = arith.constant dense<0.000000e+00> : vector<2x8xf32>
    %207 = vector.multi_reduction <add>, %206, %cst_84 [2] : vector<2x8x32xf32> to vector<2x8xf32>
    %208 = vector.shape_cast %207 : vector<2x8xf32> to vector<2x8x1xf32>
    %cst_85 = arith.constant 3.200000e+01 : f32
    %209 = vector.broadcast %cst_85 : f32 to vector<2x8x1xf32>
    %210 = arith.divf %208, %209 : vector<2x8x1xf32>
    %211 = vector.broadcast %203 : vector<2x8x1xf32> to vector<2x8x32xf32>
    %212 = arith.subf %189, %211 : vector<2x8x32xf32>
    %cst_86 = arith.constant 9.99999974E-6 : f32
    %213 = vector.broadcast %cst_86 : f32 to vector<2x8x1xf32>
    %214 = arith.addf %210, %213 : vector<2x8x1xf32>
    %215 = math.rsqrt %214 : vector<2x8x1xf32>
    %216 = vector.broadcast %215 : vector<2x8x1xf32> to vector<2x8x32xf32>
    %217 = arith.mulf %212, %216 : vector<2x8x32xf32>
    %218 = vector.shape_cast %198 : vector<1x32xf32> to vector<1x1x32xf32>
    %219 = vector.broadcast %218 : vector<1x1x32xf32> to vector<2x8x32xf32>
    %220 = arith.mulf %217, %219 : vector<2x8x32xf32>
    %221 = vector.shape_cast %199 : vector<1x32xf32> to vector<1x1x32xf32>
    %222 = vector.broadcast %221 : vector<1x1x32xf32> to vector<2x8x32xf32>
    %223 = arith.addf %220, %222 : vector<2x8x32xf32>
    %224 = vector.extract_strided_slice %191 {offsets = [0, 0, 0], sizes = [4, 32, 8], strides = [1, 1, 1]} : vector<12x32x8xf32> to vector<4x32x8xf32>
    %225 = vector.extract_strided_slice %193 {offsets = [0, 0, 0], sizes = [4, 1, 8], strides = [1, 1, 1]} : vector<8x1x8xf32> to vector<4x1x8xf32>
    %226 = vector.extract_strided_slice %191 {offsets = [4, 0, 0], sizes = [4, 32, 8], strides = [1, 1, 1]} : vector<12x32x8xf32> to vector<4x32x8xf32>
    %227 = vector.extract_strided_slice %191 {offsets = [8, 0, 0], sizes = [4, 32, 8], strides = [1, 1, 1]} : vector<12x32x8xf32> to vector<4x32x8xf32>
    %228 = vector.extract_strided_slice %193 {offsets = [4, 0, 0], sizes = [4, 1, 8], strides = [1, 1, 1]} : vector<8x1x8xf32> to vector<4x1x8xf32>
    %229 = vector.extract_strided_slice %197 {offsets = [4, 0], sizes = [1, 32], strides = [1, 1]} : vector<6x32xf32> to vector<1x32xf32>
    %230 = vector.shape_cast %223 : vector<2x8x32xf32> to vector<2x1x8x32xf32>
    %231 = vector.shape_cast %230 : vector<2x1x8x32xf32> to vector<2x1x8x32xf32>
    %232 = vector.broadcast %231 : vector<2x1x8x32xf32> to vector<2x4x8x32xf32>
    %233 = vector.shape_cast %232 : vector<2x4x8x32xf32> to vector<8x8x32xf32>
    %234 = vector.shape_cast %224 : vector<4x32x8xf32> to vector<1x4x32x8xf32>
    %235 = vector.shape_cast %234 : vector<1x4x32x8xf32> to vector<1x4x32x8xf32>
    %236 = vector.broadcast %235 : vector<1x4x32x8xf32> to vector<2x4x32x8xf32>
    %237 = vector.shape_cast %236 : vector<2x4x32x8xf32> to vector<8x32x8xf32>
    "tpu.trace_start"() <{level = 10 : i32, message = "htd,hde->hte"}> : () -> ()
    %cst_87 = arith.constant dense<0.000000e+00> : vector<8x8x8xf32>
    %238 = tpu.matmul %233, %237, %cst_87 {dimension_numbers = #tpu.dot_dimension_numbers<[2], [1], [1], [2], [0, 0, 0, 1, 1, 2], [0], [0]>} : vector<8x8x32xf32>, vector<8x32x8xf32>, vector<8x8x8xf32> -> vector<8x8x8xf32>
    "tpu.trace_stop"() : () -> ()
    %239 = vector.shape_cast %225 : vector<4x1x8xf32> to vector<1x4x1x8xf32>
    %240 = vector.shape_cast %239 : vector<1x4x1x8xf32> to vector<1x4x1x8xf32>
    %241 = vector.broadcast %240 : vector<1x4x1x8xf32> to vector<2x4x1x8xf32>
    %242 = vector.shape_cast %241 : vector<2x4x1x8xf32> to vector<8x1x8xf32>
    %243 = vector.broadcast %242 : vector<8x1x8xf32> to vector<8x8x8xf32>
    %244 = arith.addf %238, %243 : vector<8x8x8xf32>
    %cst_88 = arith.constant 0.353553385 : f32
    %245 = vector.broadcast %cst_88 : f32 to vector<8x8x8xf32>
    %246 = arith.mulf %244, %245 : vector<8x8x8xf32>
    %247 = vector.shape_cast %226 : vector<4x32x8xf32> to vector<1x4x32x8xf32>
    %248 = vector.shape_cast %247 : vector<1x4x32x8xf32> to vector<1x4x32x8xf32>
    %249 = vector.broadcast %248 : vector<1x4x32x8xf32> to vector<2x4x32x8xf32>
    %250 = vector.shape_cast %249 : vector<2x4x32x8xf32> to vector<8x32x8xf32>
    "tpu.trace_start"() <{level = 10 : i32, message = "htd,hde->hte"}> : () -> ()
    %cst_89 = arith.constant dense<0.000000e+00> : vector<8x8x8xf32>
    %251 = tpu.matmul %233, %250, %cst_89 {dimension_numbers = #tpu.dot_dimension_numbers<[2], [1], [1], [2], [0, 0, 0, 1, 1, 2], [0], [0]>} : vector<8x8x32xf32>, vector<8x32x8xf32>, vector<8x8x8xf32> -> vector<8x8x8xf32>
    "tpu.trace_stop"() : () -> ()
    %252 = vector.shape_cast %227 : vector<4x32x8xf32> to vector<1x4x32x8xf32>
    %253 = vector.shape_cast %252 : vector<1x4x32x8xf32> to vector<1x4x32x8xf32>
    %254 = vector.broadcast %253 : vector<1x4x32x8xf32> to vector<2x4x32x8xf32>
    %255 = vector.shape_cast %254 : vector<2x4x32x8xf32> to vector<8x32x8xf32>
    "tpu.trace_start"() <{level = 10 : i32, message = "htd,hde->hte"}> : () -> ()
    %cst_90 = arith.constant dense<0.000000e+00> : vector<8x8x8xf32>
    %256 = tpu.matmul %233, %255, %cst_90 {dimension_numbers = #tpu.dot_dimension_numbers<[2], [1], [1], [2], [0, 0, 0, 1, 1, 2], [0], [0]>} : vector<8x8x32xf32>, vector<8x32x8xf32>, vector<8x8x8xf32> -> vector<8x8x8xf32>
    "tpu.trace_stop"() : () -> ()
    %257 = vector.shape_cast %228 : vector<4x1x8xf32> to vector<1x4x1x8xf32>
    %258 = vector.shape_cast %257 : vector<1x4x1x8xf32> to vector<1x4x1x8xf32>
    %259 = vector.broadcast %258 : vector<1x4x1x8xf32> to vector<2x4x1x8xf32>
    %260 = vector.shape_cast %259 : vector<2x4x1x8xf32> to vector<8x1x8xf32>
    %261 = vector.broadcast %260 : vector<8x1x8xf32> to vector<8x8x8xf32>
    %262 = arith.addf %256, %261 : vector<8x8x8xf32>
    "tpu.trace_start"() <{level = 10 : i32, message = "hqe,hke->hqk"}> : () -> ()
    %cst_91 = arith.constant dense<0.000000e+00> : vector<8x8x8xf32>
    %263 = tpu.matmul %246, %251, %cst_91 {dimension_numbers = #tpu.dot_dimension_numbers<[2], [2], [1], [1], [0, 0, 0, 1, 1, 1], [0], [0]>} : vector<8x8x8xf32>, vector<8x8x8xf32>, vector<8x8x8xf32> -> vector<8x8x8xf32>
    "tpu.trace_stop"() : () -> ()
    %cst_92 = arith.constant dense<0xFF800000> : vector<8x8xf32>
    %264 = vector.multi_reduction <maximumf>, %263, %cst_92 [2] : vector<8x8x8xf32> to vector<8x8xf32>
    %265 = vector.shape_cast %264 : vector<8x8xf32> to vector<8x8x1xf32>
    %266 = vector.broadcast %265 : vector<8x8x1xf32> to vector<8x8x8xf32>
    %267 = arith.subf %263, %266 : vector<8x8x8xf32>
    %268 = math.exp %267 : vector<8x8x8xf32>
    %cst_93 = arith.constant dense<0.000000e+00> : vector<8x8xf32>
    %269 = vector.multi_reduction <add>, %268, %cst_93 [2] : vector<8x8x8xf32> to vector<8x8xf32>
    %270 = vector.shape_cast %269 : vector<8x8xf32> to vector<8x8x1xf32>
    %271 = vector.broadcast %270 : vector<8x8x1xf32> to vector<8x8x8xf32>
    %272 = arith.divf %268, %271 : vector<8x8x8xf32>
    "tpu.trace_start"() <{level = 10 : i32, message = "hqk,hke->hqe"}> : () -> ()
    %cst_94 = arith.constant dense<0.000000e+00> : vector<8x8x8xf32>
    %273 = tpu.matmul %272, %262, %cst_94 {dimension_numbers = #tpu.dot_dimension_numbers<[2], [1], [1], [2], [0, 0, 0, 1, 1, 2], [0], [0]>} : vector<8x8x8xf32>, vector<8x8x8xf32>, vector<8x8x8xf32> -> vector<8x8x8xf32>
    "tpu.trace_stop"() : () -> ()
    %274 = vector.shape_cast %195 : vector<4x8x32xf32> to vector<1x4x8x32xf32>
    %275 = vector.shape_cast %274 : vector<1x4x8x32xf32> to vector<1x4x8x32xf32>
    %276 = vector.broadcast %275 : vector<1x4x8x32xf32> to vector<2x4x8x32xf32>
    %277 = vector.shape_cast %276 : vector<2x4x8x32xf32> to vector<8x8x32xf32>
    "tpu.trace_start"() <{level = 10 : i32, message = "hte,hed->htd"}> : () -> ()
    %cst_95 = arith.constant dense<0.000000e+00> : vector<8x8x32xf32>
    %278 = tpu.matmul %273, %277, %cst_95 {dimension_numbers = #tpu.dot_dimension_numbers<[2], [1], [1], [2], [0, 0, 0, 1, 1, 2], [0], [0]>} : vector<8x8x8xf32>, vector<8x8x32xf32>, vector<8x8x32xf32> -> vector<8x8x32xf32>
    "tpu.trace_stop"() : () -> ()
    %279 = vector.shape_cast %278 : vector<8x8x32xf32> to vector<2x4x8x32xf32>
    %280 = vector.extract_strided_slice %279 {offsets = [0, 0, 0, 0], sizes = [2, 1, 8, 32], strides = [1, 1, 1, 1]} : vector<2x4x8x32xf32> to vector<2x1x8x32xf32>
    %281 = vector.shape_cast %280 : vector<2x1x8x32xf32> to vector<2x8x32xf32>
    %282 = vector.extract_strided_slice %279 {offsets = [0, 1, 0, 0], sizes = [2, 1, 8, 32], strides = [1, 1, 1, 1]} : vector<2x4x8x32xf32> to vector<2x1x8x32xf32>
    %283 = vector.shape_cast %282 : vector<2x1x8x32xf32> to vector<2x8x32xf32>
    %284 = arith.addf %281, %283 : vector<2x8x32xf32>
    %285 = vector.extract_strided_slice %279 {offsets = [0, 2, 0, 0], sizes = [2, 1, 8, 32], strides = [1, 1, 1, 1]} : vector<2x4x8x32xf32> to vector<2x1x8x32xf32>
    %286 = vector.shape_cast %285 : vector<2x1x8x32xf32> to vector<2x8x32xf32>
    %287 = arith.addf %284, %286 : vector<2x8x32xf32>
    %288 = vector.extract_strided_slice %279 {offsets = [0, 3, 0, 0], sizes = [2, 1, 8, 32], strides = [1, 1, 1, 1]} : vector<2x4x8x32xf32> to vector<2x1x8x32xf32>
    %289 = vector.shape_cast %288 : vector<2x1x8x32xf32> to vector<2x8x32xf32>
    %290 = arith.addf %287, %289 : vector<2x8x32xf32>
    %291 = vector.shape_cast %229 : vector<1x32xf32> to vector<1x1x32xf32>
    %292 = vector.broadcast %291 : vector<1x1x32xf32> to vector<2x8x32xf32>
    %293 = arith.addf %290, %292 : vector<2x8x32xf32>
    %294 = arith.addf %189, %293 : vector<2x8x32xf32>
    %295 = vector.extract_strided_slice %197 {offsets = [2, 0], sizes = [1, 32], strides = [1, 1]} : vector<6x32xf32> to vector<1x32xf32>
    %296 = vector.extract_strided_slice %197 {offsets = [3, 0], sizes = [1, 32], strides = [1, 1]} : vector<6x32xf32> to vector<1x32xf32>
    %cst_96 = arith.constant dense<0.000000e+00> : vector<2x8xf32>
    %297 = vector.multi_reduction <add>, %294, %cst_96 [2] : vector<2x8x32xf32> to vector<2x8xf32>
    %298 = vector.shape_cast %297 : vector<2x8xf32> to vector<2x8x1xf32>
    %cst_97 = arith.constant 3.200000e+01 : f32
    %299 = vector.broadcast %cst_97 : f32 to vector<2x8x1xf32>
    %300 = arith.divf %298, %299 : vector<2x8x1xf32>
    %301 = vector.broadcast %300 : vector<2x8x1xf32> to vector<2x8x32xf32>
    %302 = arith.subf %294, %301 : vector<2x8x32xf32>
    %303 = arith.mulf %302, %302 : vector<2x8x32xf32>
    %cst_98 = arith.constant dense<0.000000e+00> : vector<2x8xf32>
    %304 = vector.multi_reduction <add>, %303, %cst_98 [2] : vector<2x8x32xf32> to vector<2x8xf32>
    %305 = vector.shape_cast %304 : vector<2x8xf32> to vector<2x8x1xf32>
    %cst_99 = arith.constant 3.200000e+01 : f32
    %306 = vector.broadcast %cst_99 : f32 to vector<2x8x1xf32>
    %307 = arith.divf %305, %306 : vector<2x8x1xf32>
    %308 = vector.broadcast %300 : vector<2x8x1xf32> to vector<2x8x32xf32>
    %309 = arith.subf %294, %308 : vector<2x8x32xf32>
    %cst_100 = arith.constant 9.99999974E-6 : f32
    %310 = vector.broadcast %cst_100 : f32 to vector<2x8x1xf32>
    %311 = arith.addf %307, %310 : vector<2x8x1xf32>
    %312 = math.rsqrt %311 : vector<2x8x1xf32>
    %313 = vector.broadcast %312 : vector<2x8x1xf32> to vector<2x8x32xf32>
    %314 = arith.mulf %309, %313 : vector<2x8x32xf32>
    %315 = vector.shape_cast %295 : vector<1x32xf32> to vector<1x1x32xf32>
    %316 = vector.broadcast %315 : vector<1x1x32xf32> to vector<2x8x32xf32>
    %317 = arith.mulf %314, %316 : vector<2x8x32xf32>
    %318 = vector.shape_cast %296 : vector<1x32xf32> to vector<1x1x32xf32>
    %319 = vector.broadcast %318 : vector<1x1x32xf32> to vector<2x8x32xf32>
    %320 = arith.addf %317, %319 : vector<2x8x32xf32>
    %c0_101 = arith.constant 0 : index
    %c0_102 = arith.constant 0 : index
    %c0_103 = arith.constant 0 : index
    %321 = vector.load %arg11[%c0_101, %c0_102, %c0_103] : memref<2x32x64xf32, #tpu.memory_space<vmem>>, vector<1x32x64xf32>
    %322 = vector.shape_cast %321 : vector<1x32x64xf32> to vector<32x64xf32>
    %323 = vector.shape_cast %320 : vector<2x8x32xf32> to vector<16x32xf32>
    %cst_104 = arith.constant dense<0.000000e+00> : vector<16x64xf32>
    %324 = tpu.matmul %323, %322, %cst_104 {dimension_numbers = #tpu.dot_dimension_numbers<[1], [0], [0], [1], [0, 0, 1, 1], [], []>} : vector<16x32xf32>, vector<32x64xf32>, vector<16x64xf32> -> vector<16x64xf32>
    %325 = vector.shape_cast %324 : vector<16x64xf32> to vector<2x8x64xf32>
    %c0_105 = arith.constant 0 : index
    %c0_106 = arith.constant 0 : index
    %c0_107 = arith.constant 0 : index
    %326 = vector.load %arg12[%c0_105, %c0_106, %c0_107] : memref<2x1x64xf32, #tpu.memory_space<vmem>>, vector<1x1x64xf32>
    %327 = vector.shape_cast %326 : vector<1x1x64xf32> to vector<1x64xf32>
    %328 = vector.shape_cast %327 : vector<1x64xf32> to vector<1x1x64xf32>
    %329 = vector.broadcast %328 : vector<1x1x64xf32> to vector<2x8x64xf32>
    %330 = arith.addf %325, %329 : vector<2x8x64xf32>
    %cst_108 = arith.constant 5.000000e-01 : f32
    %331 = vector.broadcast %cst_108 : f32 to vector<2x8x64xf32>
    %332 = arith.mulf %331, %330 : vector<2x8x64xf32>
    %cst_109 = arith.constant 0.707106769 : f32
    %333 = vector.broadcast %cst_109 : f32 to vector<2x8x64xf32>
    %334 = arith.mulf %330, %333 : vector<2x8x64xf32>
    %335 = math.absf %334 : vector<2x8x64xf32>
    %cst_110 = arith.constant 0.327591091 : f32
    %336 = vector.broadcast %cst_110 : f32 to vector<2x8x64xf32>
    %337 = arith.mulf %336, %335 : vector<2x8x64xf32>
    %cst_111 = arith.constant 1.000000e+00 : f32
    %338 = vector.broadcast %cst_111 : f32 to vector<2x8x64xf32>
    %339 = arith.addf %338, %337 : vector<2x8x64xf32>
    %cst_112 = arith.constant 1.000000e+00 : f32
    %340 = vector.broadcast %cst_112 : f32 to vector<2x8x64xf32>
    %341 = arith.divf %340, %339 : vector<2x8x64xf32>
    %cst_113 = arith.constant 1.06140542 : f32
    %342 = vector.broadcast %cst_113 : f32 to vector<2x8x64xf32>
    %343 = arith.mulf %342, %341 : vector<2x8x64xf32>
    %cst_114 = arith.constant -1.45315206 : f32
    %344 = vector.broadcast %cst_114 : f32 to vector<2x8x64xf32>
    %345 = arith.addf %343, %344 : vector<2x8x64xf32>
    %346 = arith.mulf %345, %341 : vector<2x8x64xf32>
    %cst_115 = arith.constant 1.42141378 : f32
    %347 = vector.broadcast %cst_115 : f32 to vector<2x8x64xf32>
    %348 = arith.addf %346, %347 : vector<2x8x64xf32>
    %349 = arith.mulf %348, %341 : vector<2x8x64xf32>
    %cst_116 = arith.constant -0.284496725 : f32
    %350 = vector.broadcast %cst_116 : f32 to vector<2x8x64xf32>
    %351 = arith.addf %349, %350 : vector<2x8x64xf32>
    %352 = arith.mulf %351, %341 : vector<2x8x64xf32>
    %cst_117 = arith.constant 0.254829586 : f32
    %353 = vector.broadcast %cst_117 : f32 to vector<2x8x64xf32>
    %354 = arith.addf %352, %353 : vector<2x8x64xf32>
    %355 = arith.mulf %354, %341 : vector<2x8x64xf32>
    %cst_118 = arith.constant 0.000000e+00 : f32
    %356 = vector.broadcast %cst_118 : f32 to vector<2x8x64xf32>
    %357 = arith.subf %356, %335 : vector<2x8x64xf32>
    %358 = arith.mulf %357, %335 : vector<2x8x64xf32>
    %359 = math.exp %358 : vector<2x8x64xf32>
    %360 = arith.mulf %355, %359 : vector<2x8x64xf32>
    %cst_119 = arith.constant 1.000000e+00 : f32
    %361 = vector.broadcast %cst_119 : f32 to vector<2x8x64xf32>
    %362 = arith.subf %361, %360 : vector<2x8x64xf32>
    %cst_120 = arith.constant 0.000000e+00 : f32
    %363 = vector.broadcast %cst_120 : f32 to vector<2x8x64xf32>
    %364 = arith.cmpf oge, %334, %363 : vector<2x8x64xf32>
    %cst_121 = arith.constant 0.000000e+00 : f32
    %365 = vector.broadcast %cst_121 : f32 to vector<2x8x64xf32>
    %366 = arith.subf %365, %362 : vector<2x8x64xf32>
    %367 = arith.select %364, %362, %366 : vector<2x8x64xi1>, vector<2x8x64xf32>
    %cst_122 = arith.constant 1.000000e+00 : f32
    %368 = vector.broadcast %cst_122 : f32 to vector<2x8x64xf32>
    %369 = arith.addf %368, %367 : vector<2x8x64xf32>
    %370 = arith.mulf %332, %369 : vector<2x8x64xf32>
    %c0_123 = arith.constant 0 : index
    %c0_124 = arith.constant 0 : index
    %c0_125 = arith.constant 0 : index
    %371 = vector.load %arg13[%c0_123, %c0_124, %c0_125] : memref<2x64x32xf32, #tpu.memory_space<vmem>>, vector<1x64x32xf32>
    %372 = vector.shape_cast %371 : vector<1x64x32xf32> to vector<64x32xf32>
    %373 = vector.shape_cast %370 : vector<2x8x64xf32> to vector<16x64xf32>
    %cst_126 = arith.constant dense<0.000000e+00> : vector<16x32xf32>
    %374 = tpu.matmul %373, %372, %cst_126 {dimension_numbers = #tpu.dot_dimension_numbers<[1], [0], [0], [1], [0, 0, 1, 1], [], []>} : vector<16x64xf32>, vector<64x32xf32>, vector<16x32xf32> -> vector<16x32xf32>
    %375 = vector.shape_cast %374 : vector<16x32xf32> to vector<2x8x32xf32>
    %376 = vector.extract_strided_slice %197 {offsets = [5, 0], sizes = [1, 32], strides = [1, 1]} : vector<6x32xf32> to vector<1x32xf32>
    %377 = vector.shape_cast %376 : vector<1x32xf32> to vector<1x1x32xf32>
    %378 = vector.broadcast %377 : vector<1x1x32xf32> to vector<2x8x32xf32>
    %379 = arith.addf %375, %378 : vector<2x8x32xf32>
    %380 = arith.addf %294, %379 : vector<2x8x32xf32>
    %c1 = arith.constant 1 : index
    %c0_127 = arith.constant 0 : index
    %c0_128 = arith.constant 0 : index
    %c0_129 = arith.constant 0 : index
    %381 = vector.load %arg7[%c1, %c0_127, %c0_128, %c0_129] : memref<2x12x32x8xf32, #tpu.memory_space<vmem>>, vector<1x12x32x8xf32>
    %382 = vector.shape_cast %381 : vector<1x12x32x8xf32> to vector<12x32x8xf32>
    %c1_130 = arith.constant 1 : index
    %c0_131 = arith.constant 0 : index
    %c0_132 = arith.constant 0 : index
    %c0_133 = arith.constant 0 : index
    %383 = vector.load %arg8[%c1_130, %c0_131, %c0_132, %c0_133] : memref<2x8x1x8xf32, #tpu.memory_space<vmem>>, vector<1x8x1x8xf32>
    %384 = vector.shape_cast %383 : vector<1x8x1x8xf32> to vector<8x1x8xf32>
    %c1_134 = arith.constant 1 : index
    %c0_135 = arith.constant 0 : index
    %c0_136 = arith.constant 0 : index
    %c0_137 = arith.constant 0 : index
    %385 = vector.load %arg9[%c1_134, %c0_135, %c0_136, %c0_137] : memref<2x4x8x32xf32, #tpu.memory_space<vmem>>, vector<1x4x8x32xf32>
    %386 = vector.shape_cast %385 : vector<1x4x8x32xf32> to vector<4x8x32xf32>
    %c1_138 = arith.constant 1 : index
    %c0_139 = arith.constant 0 : index
    %c0_140 = arith.constant 0 : index
    %387 = vector.load %arg10[%c1_138, %c0_139, %c0_140] : memref<2x6x32xf32, #tpu.memory_space<vmem>>, vector<1x6x32xf32>
    %388 = vector.shape_cast %387 : vector<1x6x32xf32> to vector<6x32xf32>
    %389 = vector.extract_strided_slice %388 {offsets = [0, 0], sizes = [1, 32], strides = [1, 1]} : vector<6x32xf32> to vector<1x32xf32>
    %390 = vector.extract_strided_slice %388 {offsets = [1, 0], sizes = [1, 32], strides = [1, 1]} : vector<6x32xf32> to vector<1x32xf32>
    %cst_141 = arith.constant dense<0.000000e+00> : vector<2x8xf32>
    %391 = vector.multi_reduction <add>, %380, %cst_141 [2] : vector<2x8x32xf32> to vector<2x8xf32>
    %392 = vector.shape_cast %391 : vector<2x8xf32> to vector<2x8x1xf32>
    %cst_142 = arith.constant 3.200000e+01 : f32
    %393 = vector.broadcast %cst_142 : f32 to vector<2x8x1xf32>
    %394 = arith.divf %392, %393 : vector<2x8x1xf32>
    %395 = vector.broadcast %394 : vector<2x8x1xf32> to vector<2x8x32xf32>
    %396 = arith.subf %380, %395 : vector<2x8x32xf32>
    %397 = arith.mulf %396, %396 : vector<2x8x32xf32>
    %cst_143 = arith.constant dense<0.000000e+00> : vector<2x8xf32>
    %398 = vector.multi_reduction <add>, %397, %cst_143 [2] : vector<2x8x32xf32> to vector<2x8xf32>
    %399 = vector.shape_cast %398 : vector<2x8xf32> to vector<2x8x1xf32>
    %cst_144 = arith.constant 3.200000e+01 : f32
    %400 = vector.broadcast %cst_144 : f32 to vector<2x8x1xf32>
    %401 = arith.divf %399, %400 : vector<2x8x1xf32>
    %402 = vector.broadcast %394 : vector<2x8x1xf32> to vector<2x8x32xf32>
    %403 = arith.subf %380, %402 : vector<2x8x32xf32>
    %cst_145 = arith.constant 9.99999974E-6 : f32
    %404 = vector.broadcast %cst_145 : f32 to vector<2x8x1xf32>
    %405 = arith.addf %401, %404 : vector<2x8x1xf32>
    %406 = math.rsqrt %405 : vector<2x8x1xf32>
    %407 = vector.broadcast %406 : vector<2x8x1xf32> to vector<2x8x32xf32>
    %408 = arith.mulf %403, %407 : vector<2x8x32xf32>
    %409 = vector.shape_cast %389 : vector<1x32xf32> to vector<1x1x32xf32>
    %410 = vector.broadcast %409 : vector<1x1x32xf32> to vector<2x8x32xf32>
    %411 = arith.mulf %408, %410 : vector<2x8x32xf32>
    %412 = vector.shape_cast %390 : vector<1x32xf32> to vector<1x1x32xf32>
    %413 = vector.broadcast %412 : vector<1x1x32xf32> to vector<2x8x32xf32>
    %414 = arith.addf %411, %413 : vector<2x8x32xf32>
    %415 = vector.extract_strided_slice %382 {offsets = [0, 0, 0], sizes = [4, 32, 8], strides = [1, 1, 1]} : vector<12x32x8xf32> to vector<4x32x8xf32>
    %416 = vector.extract_strided_slice %384 {offsets = [0, 0, 0], sizes = [4, 1, 8], strides = [1, 1, 1]} : vector<8x1x8xf32> to vector<4x1x8xf32>
    %417 = vector.extract_strided_slice %382 {offsets = [4, 0, 0], sizes = [4, 32, 8], strides = [1, 1, 1]} : vector<12x32x8xf32> to vector<4x32x8xf32>
    %418 = vector.extract_strided_slice %382 {offsets = [8, 0, 0], sizes = [4, 32, 8], strides = [1, 1, 1]} : vector<12x32x8xf32> to vector<4x32x8xf32>
    %419 = vector.extract_strided_slice %384 {offsets = [4, 0, 0], sizes = [4, 1, 8], strides = [1, 1, 1]} : vector<8x1x8xf32> to vector<4x1x8xf32>
    %420 = vector.extract_strided_slice %388 {offsets = [4, 0], sizes = [1, 32], strides = [1, 1]} : vector<6x32xf32> to vector<1x32xf32>
    %421 = vector.shape_cast %414 : vector<2x8x32xf32> to vector<2x1x8x32xf32>
    %422 = vector.shape_cast %421 : vector<2x1x8x32xf32> to vector<2x1x8x32xf32>
    %423 = vector.broadcast %422 : vector<2x1x8x32xf32> to vector<2x4x8x32xf32>
    %424 = vector.shape_cast %423 : vector<2x4x8x32xf32> to vector<8x8x32xf32>
    %425 = vector.shape_cast %415 : vector<4x32x8xf32> to vector<1x4x32x8xf32>
    %426 = vector.shape_cast %425 : vector<1x4x32x8xf32> to vector<1x4x32x8xf32>
    %427 = vector.broadcast %426 : vector<1x4x32x8xf32> to vector<2x4x32x8xf32>
    %428 = vector.shape_cast %427 : vector<2x4x32x8xf32> to vector<8x32x8xf32>
    "tpu.trace_start"() <{level = 10 : i32, message = "htd,hde->hte"}> : () -> ()
    %cst_146 = arith.constant dense<0.000000e+00> : vector<8x8x8xf32>
    %429 = tpu.matmul %424, %428, %cst_146 {dimension_numbers = #tpu.dot_dimension_numbers<[2], [1], [1], [2], [0, 0, 0, 1, 1, 2], [0], [0]>} : vector<8x8x32xf32>, vector<8x32x8xf32>, vector<8x8x8xf32> -> vector<8x8x8xf32>
    "tpu.trace_stop"() : () -> ()
    %430 = vector.shape_cast %416 : vector<4x1x8xf32> to vector<1x4x1x8xf32>
    %431 = vector.shape_cast %430 : vector<1x4x1x8xf32> to vector<1x4x1x8xf32>
    %432 = vector.broadcast %431 : vector<1x4x1x8xf32> to vector<2x4x1x8xf32>
    %433 = vector.shape_cast %432 : vector<2x4x1x8xf32> to vector<8x1x8xf32>
    %434 = vector.broadcast %433 : vector<8x1x8xf32> to vector<8x8x8xf32>
    %435 = arith.addf %429, %434 : vector<8x8x8xf32>
    %cst_147 = arith.constant 0.353553385 : f32
    %436 = vector.broadcast %cst_147 : f32 to vector<8x8x8xf32>
    %437 = arith.mulf %435, %436 : vector<8x8x8xf32>
    %438 = vector.shape_cast %417 : vector<4x32x8xf32> to vector<1x4x32x8xf32>
    %439 = vector.shape_cast %438 : vector<1x4x32x8xf32> to vector<1x4x32x8xf32>
    %440 = vector.broadcast %439 : vector<1x4x32x8xf32> to vector<2x4x32x8xf32>
    %441 = vector.shape_cast %440 : vector<2x4x32x8xf32> to vector<8x32x8xf32>
    "tpu.trace_start"() <{level = 10 : i32, message = "htd,hde->hte"}> : () -> ()
    %cst_148 = arith.constant dense<0.000000e+00> : vector<8x8x8xf32>
    %442 = tpu.matmul %424, %441, %cst_148 {dimension_numbers = #tpu.dot_dimension_numbers<[2], [1], [1], [2], [0, 0, 0, 1, 1, 2], [0], [0]>} : vector<8x8x32xf32>, vector<8x32x8xf32>, vector<8x8x8xf32> -> vector<8x8x8xf32>
    "tpu.trace_stop"() : () -> ()
    %443 = vector.shape_cast %418 : vector<4x32x8xf32> to vector<1x4x32x8xf32>
    %444 = vector.shape_cast %443 : vector<1x4x32x8xf32> to vector<1x4x32x8xf32>
    %445 = vector.broadcast %444 : vector<1x4x32x8xf32> to vector<2x4x32x8xf32>
    %446 = vector.shape_cast %445 : vector<2x4x32x8xf32> to vector<8x32x8xf32>
    "tpu.trace_start"() <{level = 10 : i32, message = "htd,hde->hte"}> : () -> ()
    %cst_149 = arith.constant dense<0.000000e+00> : vector<8x8x8xf32>
    %447 = tpu.matmul %424, %446, %cst_149 {dimension_numbers = #tpu.dot_dimension_numbers<[2], [1], [1], [2], [0, 0, 0, 1, 1, 2], [0], [0]>} : vector<8x8x32xf32>, vector<8x32x8xf32>, vector<8x8x8xf32> -> vector<8x8x8xf32>
    "tpu.trace_stop"() : () -> ()
    %448 = vector.shape_cast %419 : vector<4x1x8xf32> to vector<1x4x1x8xf32>
    %449 = vector.shape_cast %448 : vector<1x4x1x8xf32> to vector<1x4x1x8xf32>
    %450 = vector.broadcast %449 : vector<1x4x1x8xf32> to vector<2x4x1x8xf32>
    %451 = vector.shape_cast %450 : vector<2x4x1x8xf32> to vector<8x1x8xf32>
    %452 = vector.broadcast %451 : vector<8x1x8xf32> to vector<8x8x8xf32>
    %453 = arith.addf %447, %452 : vector<8x8x8xf32>
    "tpu.trace_start"() <{level = 10 : i32, message = "hqe,hke->hqk"}> : () -> ()
    %cst_150 = arith.constant dense<0.000000e+00> : vector<8x8x8xf32>
    %454 = tpu.matmul %437, %442, %cst_150 {dimension_numbers = #tpu.dot_dimension_numbers<[2], [2], [1], [1], [0, 0, 0, 1, 1, 1], [0], [0]>} : vector<8x8x8xf32>, vector<8x8x8xf32>, vector<8x8x8xf32> -> vector<8x8x8xf32>
    "tpu.trace_stop"() : () -> ()
    %cst_151 = arith.constant dense<0xFF800000> : vector<8x8xf32>
    %455 = vector.multi_reduction <maximumf>, %454, %cst_151 [2] : vector<8x8x8xf32> to vector<8x8xf32>
    %456 = vector.shape_cast %455 : vector<8x8xf32> to vector<8x8x1xf32>
    %457 = vector.broadcast %456 : vector<8x8x1xf32> to vector<8x8x8xf32>
    %458 = arith.subf %454, %457 : vector<8x8x8xf32>
    %459 = math.exp %458 : vector<8x8x8xf32>
    %cst_152 = arith.constant dense<0.000000e+00> : vector<8x8xf32>
    %460 = vector.multi_reduction <add>, %459, %cst_152 [2] : vector<8x8x8xf32> to vector<8x8xf32>
    %461 = vector.shape_cast %460 : vector<8x8xf32> to vector<8x8x1xf32>
    %462 = vector.broadcast %461 : vector<8x8x1xf32> to vector<8x8x8xf32>
    %463 = arith.divf %459, %462 : vector<8x8x8xf32>
    "tpu.trace_start"() <{level = 10 : i32, message = "hqk,hke->hqe"}> : () -> ()
    %cst_153 = arith.constant dense<0.000000e+00> : vector<8x8x8xf32>
    %464 = tpu.matmul %463, %453, %cst_153 {dimension_numbers = #tpu.dot_dimension_numbers<[2], [1], [1], [2], [0, 0, 0, 1, 1, 2], [0], [0]>} : vector<8x8x8xf32>, vector<8x8x8xf32>, vector<8x8x8xf32> -> vector<8x8x8xf32>
    "tpu.trace_stop"() : () -> ()
    %465 = vector.shape_cast %386 : vector<4x8x32xf32> to vector<1x4x8x32xf32>
    %466 = vector.shape_cast %465 : vector<1x4x8x32xf32> to vector<1x4x8x32xf32>
    %467 = vector.broadcast %466 : vector<1x4x8x32xf32> to vector<2x4x8x32xf32>
    %468 = vector.shape_cast %467 : vector<2x4x8x32xf32> to vector<8x8x32xf32>
    "tpu.trace_start"() <{level = 10 : i32, message = "hte,hed->htd"}> : () -> ()
    %cst_154 = arith.constant dense<0.000000e+00> : vector<8x8x32xf32>
    %469 = tpu.matmul %464, %468, %cst_154 {dimension_numbers = #tpu.dot_dimension_numbers<[2], [1], [1], [2], [0, 0, 0, 1, 1, 2], [0], [0]>} : vector<8x8x8xf32>, vector<8x8x32xf32>, vector<8x8x32xf32> -> vector<8x8x32xf32>
    "tpu.trace_stop"() : () -> ()
    %470 = vector.shape_cast %469 : vector<8x8x32xf32> to vector<2x4x8x32xf32>
    %471 = vector.extract_strided_slice %470 {offsets = [0, 0, 0, 0], sizes = [2, 1, 8, 32], strides = [1, 1, 1, 1]} : vector<2x4x8x32xf32> to vector<2x1x8x32xf32>
    %472 = vector.shape_cast %471 : vector<2x1x8x32xf32> to vector<2x8x32xf32>
    %473 = vector.extract_strided_slice %470 {offsets = [0, 1, 0, 0], sizes = [2, 1, 8, 32], strides = [1, 1, 1, 1]} : vector<2x4x8x32xf32> to vector<2x1x8x32xf32>
    %474 = vector.shape_cast %473 : vector<2x1x8x32xf32> to vector<2x8x32xf32>
    %475 = arith.addf %472, %474 : vector<2x8x32xf32>
    %476 = vector.extract_strided_slice %470 {offsets = [0, 2, 0, 0], sizes = [2, 1, 8, 32], strides = [1, 1, 1, 1]} : vector<2x4x8x32xf32> to vector<2x1x8x32xf32>
    %477 = vector.shape_cast %476 : vector<2x1x8x32xf32> to vector<2x8x32xf32>
    %478 = arith.addf %475, %477 : vector<2x8x32xf32>
    %479 = vector.extract_strided_slice %470 {offsets = [0, 3, 0, 0], sizes = [2, 1, 8, 32], strides = [1, 1, 1, 1]} : vector<2x4x8x32xf32> to vector<2x1x8x32xf32>
    %480 = vector.shape_cast %479 : vector<2x1x8x32xf32> to vector<2x8x32xf32>
    %481 = arith.addf %478, %480 : vector<2x8x32xf32>
    %482 = vector.shape_cast %420 : vector<1x32xf32> to vector<1x1x32xf32>
    %483 = vector.broadcast %482 : vector<1x1x32xf32> to vector<2x8x32xf32>
    %484 = arith.addf %481, %483 : vector<2x8x32xf32>
    %485 = arith.addf %380, %484 : vector<2x8x32xf32>
    %486 = vector.extract_strided_slice %388 {offsets = [2, 0], sizes = [1, 32], strides = [1, 1]} : vector<6x32xf32> to vector<1x32xf32>
    %487 = vector.extract_strided_slice %388 {offsets = [3, 0], sizes = [1, 32], strides = [1, 1]} : vector<6x32xf32> to vector<1x32xf32>
    %cst_155 = arith.constant dense<0.000000e+00> : vector<2x8xf32>
    %488 = vector.multi_reduction <add>, %485, %cst_155 [2] : vector<2x8x32xf32> to vector<2x8xf32>
    %489 = vector.shape_cast %488 : vector<2x8xf32> to vector<2x8x1xf32>
    %cst_156 = arith.constant 3.200000e+01 : f32
    %490 = vector.broadcast %cst_156 : f32 to vector<2x8x1xf32>
    %491 = arith.divf %489, %490 : vector<2x8x1xf32>
    %492 = vector.broadcast %491 : vector<2x8x1xf32> to vector<2x8x32xf32>
    %493 = arith.subf %485, %492 : vector<2x8x32xf32>
    %494 = arith.mulf %493, %493 : vector<2x8x32xf32>
    %cst_157 = arith.constant dense<0.000000e+00> : vector<2x8xf32>
    %495 = vector.multi_reduction <add>, %494, %cst_157 [2] : vector<2x8x32xf32> to vector<2x8xf32>
    %496 = vector.shape_cast %495 : vector<2x8xf32> to vector<2x8x1xf32>
    %cst_158 = arith.constant 3.200000e+01 : f32
    %497 = vector.broadcast %cst_158 : f32 to vector<2x8x1xf32>
    %498 = arith.divf %496, %497 : vector<2x8x1xf32>
    %499 = vector.broadcast %491 : vector<2x8x1xf32> to vector<2x8x32xf32>
    %500 = arith.subf %485, %499 : vector<2x8x32xf32>
    %cst_159 = arith.constant 9.99999974E-6 : f32
    %501 = vector.broadcast %cst_159 : f32 to vector<2x8x1xf32>
    %502 = arith.addf %498, %501 : vector<2x8x1xf32>
    %503 = math.rsqrt %502 : vector<2x8x1xf32>
    %504 = vector.broadcast %503 : vector<2x8x1xf32> to vector<2x8x32xf32>
    %505 = arith.mulf %500, %504 : vector<2x8x32xf32>
    %506 = vector.shape_cast %486 : vector<1x32xf32> to vector<1x1x32xf32>
    %507 = vector.broadcast %506 : vector<1x1x32xf32> to vector<2x8x32xf32>
    %508 = arith.mulf %505, %507 : vector<2x8x32xf32>
    %509 = vector.shape_cast %487 : vector<1x32xf32> to vector<1x1x32xf32>
    %510 = vector.broadcast %509 : vector<1x1x32xf32> to vector<2x8x32xf32>
    %511 = arith.addf %508, %510 : vector<2x8x32xf32>
    %c1_160 = arith.constant 1 : index
    %c0_161 = arith.constant 0 : index
    %c0_162 = arith.constant 0 : index
    %512 = vector.load %arg11[%c1_160, %c0_161, %c0_162] : memref<2x32x64xf32, #tpu.memory_space<vmem>>, vector<1x32x64xf32>
    %513 = vector.shape_cast %512 : vector<1x32x64xf32> to vector<32x64xf32>
    %514 = vector.shape_cast %511 : vector<2x8x32xf32> to vector<16x32xf32>
    %cst_163 = arith.constant dense<0.000000e+00> : vector<16x64xf32>
    %515 = tpu.matmul %514, %513, %cst_163 {dimension_numbers = #tpu.dot_dimension_numbers<[1], [0], [0], [1], [0, 0, 1, 1], [], []>} : vector<16x32xf32>, vector<32x64xf32>, vector<16x64xf32> -> vector<16x64xf32>
    %516 = vector.shape_cast %515 : vector<16x64xf32> to vector<2x8x64xf32>
    %c1_164 = arith.constant 1 : index
    %c0_165 = arith.constant 0 : index
    %c0_166 = arith.constant 0 : index
    %517 = vector.load %arg12[%c1_164, %c0_165, %c0_166] : memref<2x1x64xf32, #tpu.memory_space<vmem>>, vector<1x1x64xf32>
    %518 = vector.shape_cast %517 : vector<1x1x64xf32> to vector<1x64xf32>
    %519 = vector.shape_cast %518 : vector<1x64xf32> to vector<1x1x64xf32>
    %520 = vector.broadcast %519 : vector<1x1x64xf32> to vector<2x8x64xf32>
    %521 = arith.addf %516, %520 : vector<2x8x64xf32>
    %cst_167 = arith.constant 5.000000e-01 : f32
    %522 = vector.broadcast %cst_167 : f32 to vector<2x8x64xf32>
    %523 = arith.mulf %522, %521 : vector<2x8x64xf32>
    %cst_168 = arith.constant 0.707106769 : f32
    %524 = vector.broadcast %cst_168 : f32 to vector<2x8x64xf32>
    %525 = arith.mulf %521, %524 : vector<2x8x64xf32>
    %526 = math.absf %525 : vector<2x8x64xf32>
    %cst_169 = arith.constant 0.327591091 : f32
    %527 = vector.broadcast %cst_169 : f32 to vector<2x8x64xf32>
    %528 = arith.mulf %527, %526 : vector<2x8x64xf32>
    %cst_170 = arith.constant 1.000000e+00 : f32
    %529 = vector.broadcast %cst_170 : f32 to vector<2x8x64xf32>
    %530 = arith.addf %529, %528 : vector<2x8x64xf32>
    %cst_171 = arith.constant 1.000000e+00 : f32
    %531 = vector.broadcast %cst_171 : f32 to vector<2x8x64xf32>
    %532 = arith.divf %531, %530 : vector<2x8x64xf32>
    %cst_172 = arith.constant 1.06140542 : f32
    %533 = vector.broadcast %cst_172 : f32 to vector<2x8x64xf32>
    %534 = arith.mulf %533, %532 : vector<2x8x64xf32>
    %cst_173 = arith.constant -1.45315206 : f32
    %535 = vector.broadcast %cst_173 : f32 to vector<2x8x64xf32>
    %536 = arith.addf %534, %535 : vector<2x8x64xf32>
    %537 = arith.mulf %536, %532 : vector<2x8x64xf32>
    %cst_174 = arith.constant 1.42141378 : f32
    %538 = vector.broadcast %cst_174 : f32 to vector<2x8x64xf32>
    %539 = arith.addf %537, %538 : vector<2x8x64xf32>
    %540 = arith.mulf %539, %532 : vector<2x8x64xf32>
    %cst_175 = arith.constant -0.284496725 : f32
    %541 = vector.broadcast %cst_175 : f32 to vector<2x8x64xf32>
    %542 = arith.addf %540, %541 : vector<2x8x64xf32>
    %543 = arith.mulf %542, %532 : vector<2x8x64xf32>
    %cst_176 = arith.constant 0.254829586 : f32
    %544 = vector.broadcast %cst_176 : f32 to vector<2x8x64xf32>
    %545 = arith.addf %543, %544 : vector<2x8x64xf32>
    %546 = arith.mulf %545, %532 : vector<2x8x64xf32>
    %cst_177 = arith.constant 0.000000e+00 : f32
    %547 = vector.broadcast %cst_177 : f32 to vector<2x8x64xf32>
    %548 = arith.subf %547, %526 : vector<2x8x64xf32>
    %549 = arith.mulf %548, %526 : vector<2x8x64xf32>
    %550 = math.exp %549 : vector<2x8x64xf32>
    %551 = arith.mulf %546, %550 : vector<2x8x64xf32>
    %cst_178 = arith.constant 1.000000e+00 : f32
    %552 = vector.broadcast %cst_178 : f32 to vector<2x8x64xf32>
    %553 = arith.subf %552, %551 : vector<2x8x64xf32>
    %cst_179 = arith.constant 0.000000e+00 : f32
    %554 = vector.broadcast %cst_179 : f32 to vector<2x8x64xf32>
    %555 = arith.cmpf oge, %525, %554 : vector<2x8x64xf32>
    %cst_180 = arith.constant 0.000000e+00 : f32
    %556 = vector.broadcast %cst_180 : f32 to vector<2x8x64xf32>
    %557 = arith.subf %556, %553 : vector<2x8x64xf32>
    %558 = arith.select %555, %553, %557 : vector<2x8x64xi1>, vector<2x8x64xf32>
    %cst_181 = arith.constant 1.000000e+00 : f32
    %559 = vector.broadcast %cst_181 : f32 to vector<2x8x64xf32>
    %560 = arith.addf %559, %558 : vector<2x8x64xf32>
    %561 = arith.mulf %523, %560 : vector<2x8x64xf32>
    %c1_182 = arith.constant 1 : index
    %c0_183 = arith.constant 0 : index
    %c0_184 = arith.constant 0 : index
    %562 = vector.load %arg13[%c1_182, %c0_183, %c0_184] : memref<2x64x32xf32, #tpu.memory_space<vmem>>, vector<1x64x32xf32>
    %563 = vector.shape_cast %562 : vector<1x64x32xf32> to vector<64x32xf32>
    %564 = vector.shape_cast %561 : vector<2x8x64xf32> to vector<16x64xf32>
    %cst_185 = arith.constant dense<0.000000e+00> : vector<16x32xf32>
    %565 = tpu.matmul %564, %563, %cst_185 {dimension_numbers = #tpu.dot_dimension_numbers<[1], [0], [0], [1], [0, 0, 1, 1], [], []>} : vector<16x64xf32>, vector<64x32xf32>, vector<16x32xf32> -> vector<16x32xf32>
    %566 = vector.shape_cast %565 : vector<16x32xf32> to vector<2x8x32xf32>
    %567 = vector.extract_strided_slice %388 {offsets = [5, 0], sizes = [1, 32], strides = [1, 1]} : vector<6x32xf32> to vector<1x32xf32>
    %568 = vector.shape_cast %567 : vector<1x32xf32> to vector<1x1x32xf32>
    %569 = vector.broadcast %568 : vector<1x1x32xf32> to vector<2x8x32xf32>
    %570 = arith.addf %566, %569 : vector<2x8x32xf32>
    %571 = arith.addf %485, %570 : vector<2x8x32xf32>
    %572 = vector.extract_strided_slice %0 {offsets = [2, 0], sizes = [1, 32], strides = [1, 1]} : vector<13x32xf32> to vector<1x32xf32>
    %573 = vector.extract_strided_slice %0 {offsets = [3, 0], sizes = [1, 32], strides = [1, 1]} : vector<13x32xf32> to vector<1x32xf32>
    %cst_186 = arith.constant dense<0.000000e+00> : vector<2x8xf32>
    %574 = vector.multi_reduction <add>, %571, %cst_186 [2] : vector<2x8x32xf32> to vector<2x8xf32>
    %575 = vector.shape_cast %574 : vector<2x8xf32> to vector<2x8x1xf32>
    %cst_187 = arith.constant 3.200000e+01 : f32
    %576 = vector.broadcast %cst_187 : f32 to vector<2x8x1xf32>
    %577 = arith.divf %575, %576 : vector<2x8x1xf32>
    %578 = vector.broadcast %577 : vector<2x8x1xf32> to vector<2x8x32xf32>
    %579 = arith.subf %571, %578 : vector<2x8x32xf32>
    %580 = arith.mulf %579, %579 : vector<2x8x32xf32>
    %cst_188 = arith.constant dense<0.000000e+00> : vector<2x8xf32>
    %581 = vector.multi_reduction <add>, %580, %cst_188 [2] : vector<2x8x32xf32> to vector<2x8xf32>
    %582 = vector.shape_cast %581 : vector<2x8xf32> to vector<2x8x1xf32>
    %cst_189 = arith.constant 3.200000e+01 : f32
    %583 = vector.broadcast %cst_189 : f32 to vector<2x8x1xf32>
    %584 = arith.divf %582, %583 : vector<2x8x1xf32>
    %585 = vector.broadcast %577 : vector<2x8x1xf32> to vector<2x8x32xf32>
    %586 = arith.subf %571, %585 : vector<2x8x32xf32>
    %cst_190 = arith.constant 9.99999974E-6 : f32
    %587 = vector.broadcast %cst_190 : f32 to vector<2x8x1xf32>
    %588 = arith.addf %584, %587 : vector<2x8x1xf32>
    %589 = math.rsqrt %588 : vector<2x8x1xf32>
    %590 = vector.broadcast %589 : vector<2x8x1xf32> to vector<2x8x32xf32>
    %591 = arith.mulf %586, %590 : vector<2x8x32xf32>
    %592 = vector.shape_cast %572 : vector<1x32xf32> to vector<1x1x32xf32>
    %593 = vector.broadcast %592 : vector<1x1x32xf32> to vector<2x8x32xf32>
    %594 = arith.mulf %591, %593 : vector<2x8x32xf32>
    %595 = vector.shape_cast %573 : vector<1x32xf32> to vector<1x1x32xf32>
    %596 = vector.broadcast %595 : vector<1x1x32xf32> to vector<2x8x32xf32>
    %597 = arith.addf %594, %596 : vector<2x8x32xf32>
    %c0_191 = arith.constant 0 : index
    %c0_192 = arith.constant 0 : index
    %c0_193 = arith.constant 0 : index
    %598 = vector.load %arg14[%c0_191, %c0_192, %c0_193] : memref<12x32x8xf32, #tpu.memory_space<vmem>>, vector<12x32x8xf32>
    %c0_194 = arith.constant 0 : index
    %c0_195 = arith.constant 0 : index
    %c0_196 = arith.constant 0 : index
    %599 = vector.load %arg15[%c0_194, %c0_195, %c0_196] : memref<12x1x8xf32, #tpu.memory_space<vmem>>, vector<12x1x8xf32>
    %600 = vector.extract_strided_slice %598 {offsets = [0, 0, 0], sizes = [4, 32, 8], strides = [1, 1, 1]} : vector<12x32x8xf32> to vector<4x32x8xf32>
    %601 = vector.extract_strided_slice %599 {offsets = [0, 0, 0], sizes = [4, 1, 8], strides = [1, 1, 1]} : vector<12x1x8xf32> to vector<4x1x8xf32>
    %602 = vector.extract_strided_slice %598 {offsets = [4, 0, 0], sizes = [4, 32, 8], strides = [1, 1, 1]} : vector<12x32x8xf32> to vector<4x32x8xf32>
    %603 = vector.extract_strided_slice %599 {offsets = [4, 0, 0], sizes = [4, 1, 8], strides = [1, 1, 1]} : vector<12x1x8xf32> to vector<4x1x8xf32>
    %604 = vector.extract_strided_slice %598 {offsets = [8, 0, 0], sizes = [4, 32, 8], strides = [1, 1, 1]} : vector<12x32x8xf32> to vector<4x32x8xf32>
    %605 = vector.extract_strided_slice %599 {offsets = [8, 0, 0], sizes = [4, 1, 8], strides = [1, 1, 1]} : vector<12x1x8xf32> to vector<4x1x8xf32>
    %c0_197 = arith.constant 0 : index
    %c0_198 = arith.constant 0 : index
    %c0_199 = arith.constant 0 : index
    %606 = vector.load %arg16[%c0_197, %c0_198, %c0_199] : memref<4x8x32xf32, #tpu.memory_space<vmem>>, vector<4x8x32xf32>
    %607 = vector.extract_strided_slice %0 {offsets = [4, 0], sizes = [1, 32], strides = [1, 1]} : vector<13x32xf32> to vector<1x32xf32>
    %608 = vector.shape_cast %597 : vector<2x8x32xf32> to vector<2x1x8x32xf32>
    %609 = vector.shape_cast %608 : vector<2x1x8x32xf32> to vector<2x1x8x32xf32>
    %610 = vector.broadcast %609 : vector<2x1x8x32xf32> to vector<2x4x8x32xf32>
    %611 = vector.shape_cast %610 : vector<2x4x8x32xf32> to vector<8x8x32xf32>
    %612 = vector.shape_cast %600 : vector<4x32x8xf32> to vector<1x4x32x8xf32>
    %613 = vector.shape_cast %612 : vector<1x4x32x8xf32> to vector<1x4x32x8xf32>
    %614 = vector.broadcast %613 : vector<1x4x32x8xf32> to vector<2x4x32x8xf32>
    %615 = vector.shape_cast %614 : vector<2x4x32x8xf32> to vector<8x32x8xf32>
    "tpu.trace_start"() <{level = 10 : i32, message = "htd,hde->hte"}> : () -> ()
    %cst_200 = arith.constant dense<0.000000e+00> : vector<8x8x8xf32>
    %616 = tpu.matmul %611, %615, %cst_200 {dimension_numbers = #tpu.dot_dimension_numbers<[2], [1], [1], [2], [0, 0, 0, 1, 1, 2], [0], [0]>} : vector<8x8x32xf32>, vector<8x32x8xf32>, vector<8x8x8xf32> -> vector<8x8x8xf32>
    "tpu.trace_stop"() : () -> ()
    %617 = vector.shape_cast %601 : vector<4x1x8xf32> to vector<1x4x1x8xf32>
    %618 = vector.shape_cast %617 : vector<1x4x1x8xf32> to vector<1x4x1x8xf32>
    %619 = vector.broadcast %618 : vector<1x4x1x8xf32> to vector<2x4x1x8xf32>
    %620 = vector.shape_cast %619 : vector<2x4x1x8xf32> to vector<8x1x8xf32>
    %621 = vector.broadcast %620 : vector<8x1x8xf32> to vector<8x8x8xf32>
    %622 = arith.addf %616, %621 : vector<8x8x8xf32>
    %cst_201 = arith.constant 0.353553385 : f32
    %623 = vector.broadcast %cst_201 : f32 to vector<8x8x8xf32>
    %624 = arith.mulf %622, %623 : vector<8x8x8xf32>
    %625 = vector.shape_cast %602 : vector<4x32x8xf32> to vector<1x4x32x8xf32>
    %626 = vector.shape_cast %625 : vector<1x4x32x8xf32> to vector<1x4x32x8xf32>
    %627 = vector.broadcast %626 : vector<1x4x32x8xf32> to vector<2x4x32x8xf32>
    %628 = vector.shape_cast %627 : vector<2x4x32x8xf32> to vector<8x32x8xf32>
    "tpu.trace_start"() <{level = 10 : i32, message = "htd,hde->hte"}> : () -> ()
    %cst_202 = arith.constant dense<0.000000e+00> : vector<8x8x8xf32>
    %629 = tpu.matmul %611, %628, %cst_202 {dimension_numbers = #tpu.dot_dimension_numbers<[2], [1], [1], [2], [0, 0, 0, 1, 1, 2], [0], [0]>} : vector<8x8x32xf32>, vector<8x32x8xf32>, vector<8x8x8xf32> -> vector<8x8x8xf32>
    "tpu.trace_stop"() : () -> ()
    %630 = vector.shape_cast %603 : vector<4x1x8xf32> to vector<1x4x1x8xf32>
    %631 = vector.shape_cast %630 : vector<1x4x1x8xf32> to vector<1x4x1x8xf32>
    %632 = vector.broadcast %631 : vector<1x4x1x8xf32> to vector<2x4x1x8xf32>
    %633 = vector.shape_cast %632 : vector<2x4x1x8xf32> to vector<8x1x8xf32>
    %634 = vector.broadcast %633 : vector<8x1x8xf32> to vector<8x8x8xf32>
    %635 = arith.addf %629, %634 : vector<8x8x8xf32>
    %636 = vector.shape_cast %604 : vector<4x32x8xf32> to vector<1x4x32x8xf32>
    %637 = vector.shape_cast %636 : vector<1x4x32x8xf32> to vector<1x4x32x8xf32>
    %638 = vector.broadcast %637 : vector<1x4x32x8xf32> to vector<2x4x32x8xf32>
    %639 = vector.shape_cast %638 : vector<2x4x32x8xf32> to vector<8x32x8xf32>
    "tpu.trace_start"() <{level = 10 : i32, message = "htd,hde->hte"}> : () -> ()
    %cst_203 = arith.constant dense<0.000000e+00> : vector<8x8x8xf32>
    %640 = tpu.matmul %611, %639, %cst_203 {dimension_numbers = #tpu.dot_dimension_numbers<[2], [1], [1], [2], [0, 0, 0, 1, 1, 2], [0], [0]>} : vector<8x8x32xf32>, vector<8x32x8xf32>, vector<8x8x8xf32> -> vector<8x8x8xf32>
    "tpu.trace_stop"() : () -> ()
    %641 = vector.shape_cast %605 : vector<4x1x8xf32> to vector<1x4x1x8xf32>
    %642 = vector.shape_cast %641 : vector<1x4x1x8xf32> to vector<1x4x1x8xf32>
    %643 = vector.broadcast %642 : vector<1x4x1x8xf32> to vector<2x4x1x8xf32>
    %644 = vector.shape_cast %643 : vector<2x4x1x8xf32> to vector<8x1x8xf32>
    %645 = vector.broadcast %644 : vector<8x1x8xf32> to vector<8x8x8xf32>
    %646 = arith.addf %640, %645 : vector<8x8x8xf32>
    "tpu.trace_start"() <{level = 10 : i32, message = "hqe,hke->hqk"}> : () -> ()
    %cst_204 = arith.constant dense<0.000000e+00> : vector<8x8x8xf32>
    %647 = tpu.matmul %624, %635, %cst_204 {dimension_numbers = #tpu.dot_dimension_numbers<[2], [2], [1], [1], [0, 0, 0, 1, 1, 1], [0], [0]>} : vector<8x8x8xf32>, vector<8x8x8xf32>, vector<8x8x8xf32> -> vector<8x8x8xf32>
    "tpu.trace_stop"() : () -> ()
    %cst_205 = arith.constant dense<0xFF800000> : vector<8x8xf32>
    %648 = vector.multi_reduction <maximumf>, %647, %cst_205 [2] : vector<8x8x8xf32> to vector<8x8xf32>
    %649 = vector.shape_cast %648 : vector<8x8xf32> to vector<8x8x1xf32>
    %650 = vector.broadcast %649 : vector<8x8x1xf32> to vector<8x8x8xf32>
    %651 = arith.subf %647, %650 : vector<8x8x8xf32>
    %652 = math.exp %651 : vector<8x8x8xf32>
    %cst_206 = arith.constant dense<0.000000e+00> : vector<8x8xf32>
    %653 = vector.multi_reduction <add>, %652, %cst_206 [2] : vector<8x8x8xf32> to vector<8x8xf32>
    %654 = vector.shape_cast %653 : vector<8x8xf32> to vector<8x8x1xf32>
    %655 = vector.broadcast %654 : vector<8x8x1xf32> to vector<8x8x8xf32>
    %656 = arith.divf %652, %655 : vector<8x8x8xf32>
    "tpu.trace_start"() <{level = 10 : i32, message = "hqk,hke->hqe"}> : () -> ()
    %cst_207 = arith.constant dense<0.000000e+00> : vector<8x8x8xf32>
    %657 = tpu.matmul %656, %646, %cst_207 {dimension_numbers = #tpu.dot_dimension_numbers<[2], [1], [1], [2], [0, 0, 0, 1, 1, 2], [0], [0]>} : vector<8x8x8xf32>, vector<8x8x8xf32>, vector<8x8x8xf32> -> vector<8x8x8xf32>
    "tpu.trace_stop"() : () -> ()
    %658 = vector.shape_cast %606 : vector<4x8x32xf32> to vector<1x4x8x32xf32>
    %659 = vector.shape_cast %658 : vector<1x4x8x32xf32> to vector<1x4x8x32xf32>
    %660 = vector.broadcast %659 : vector<1x4x8x32xf32> to vector<2x4x8x32xf32>
    %661 = vector.shape_cast %660 : vector<2x4x8x32xf32> to vector<8x8x32xf32>
    "tpu.trace_start"() <{level = 10 : i32, message = "hte,hed->htd"}> : () -> ()
    %cst_208 = arith.constant dense<0.000000e+00> : vector<8x8x32xf32>
    %662 = tpu.matmul %657, %661, %cst_208 {dimension_numbers = #tpu.dot_dimension_numbers<[2], [1], [1], [2], [0, 0, 0, 1, 1, 2], [0], [0]>} : vector<8x8x8xf32>, vector<8x8x32xf32>, vector<8x8x32xf32> -> vector<8x8x32xf32>
    "tpu.trace_stop"() : () -> ()
    %663 = vector.shape_cast %662 : vector<8x8x32xf32> to vector<2x4x8x32xf32>
    %664 = vector.extract_strided_slice %663 {offsets = [0, 0, 0, 0], sizes = [2, 1, 8, 32], strides = [1, 1, 1, 1]} : vector<2x4x8x32xf32> to vector<2x1x8x32xf32>
    %665 = vector.shape_cast %664 : vector<2x1x8x32xf32> to vector<2x8x32xf32>
    %666 = vector.extract_strided_slice %663 {offsets = [0, 1, 0, 0], sizes = [2, 1, 8, 32], strides = [1, 1, 1, 1]} : vector<2x4x8x32xf32> to vector<2x1x8x32xf32>
    %667 = vector.shape_cast %666 : vector<2x1x8x32xf32> to vector<2x8x32xf32>
    %668 = arith.addf %665, %667 : vector<2x8x32xf32>
    %669 = vector.extract_strided_slice %663 {offsets = [0, 2, 0, 0], sizes = [2, 1, 8, 32], strides = [1, 1, 1, 1]} : vector<2x4x8x32xf32> to vector<2x1x8x32xf32>
    %670 = vector.shape_cast %669 : vector<2x1x8x32xf32> to vector<2x8x32xf32>
    %671 = arith.addf %668, %670 : vector<2x8x32xf32>
    %672 = vector.extract_strided_slice %663 {offsets = [0, 3, 0, 0], sizes = [2, 1, 8, 32], strides = [1, 1, 1, 1]} : vector<2x4x8x32xf32> to vector<2x1x8x32xf32>
    %673 = vector.shape_cast %672 : vector<2x1x8x32xf32> to vector<2x8x32xf32>
    %674 = arith.addf %671, %673 : vector<2x8x32xf32>
    %675 = vector.shape_cast %607 : vector<1x32xf32> to vector<1x1x32xf32>
    %676 = vector.broadcast %675 : vector<1x1x32xf32> to vector<2x8x32xf32>
    %677 = arith.addf %674, %676 : vector<2x8x32xf32>
    %c0_209 = arith.constant 0 : index
    %c0_210 = arith.constant 0 : index
    %678 = vector.load %arg17[%c0_209, %c0_210] : memref<33x16xf32, #tpu.memory_space<vmem>>, vector<33x16xf32>
    %679 = vector.extract_strided_slice %678 {offsets = [0, 0], sizes = [32, 16], strides = [1, 1]} : vector<33x16xf32> to vector<32x16xf32>
    %680 = vector.shape_cast %677 : vector<2x8x32xf32> to vector<16x32xf32>
    %cst_211 = arith.constant dense<0.000000e+00> : vector<16x16xf32>
    %681 = tpu.matmul %680, %679, %cst_211 {dimension_numbers = #tpu.dot_dimension_numbers<[1], [0], [0], [1], [0, 0, 1, 1], [], []>} : vector<16x32xf32>, vector<32x16xf32>, vector<16x16xf32> -> vector<16x16xf32>
    %682 = vector.shape_cast %681 : vector<16x16xf32> to vector<2x8x16xf32>
    %683 = vector.extract_strided_slice %678 {offsets = [32, 0], sizes = [1, 16], strides = [1, 1]} : vector<33x16xf32> to vector<1x16xf32>
    %684 = vector.shape_cast %683 : vector<1x16xf32> to vector<1x1x16xf32>
    %685 = vector.broadcast %684 : vector<1x1x16xf32> to vector<2x8x16xf32>
    %686 = arith.addf %682, %685 : vector<2x8x16xf32>
    %cst_212 = arith.constant dense<0.000000e+00> : vector<2x16xf32>
    %687 = vector.multi_reduction <add>, %686, %cst_212 [1] : vector<2x8x16xf32> to vector<2x16xf32>
    %cst_213 = arith.constant 8.000000e+00 : f32
    %688 = vector.broadcast %cst_213 : f32 to vector<2x16xf32>
    %689 = arith.divf %687, %688 : vector<2x16xf32>
    %c0_214 = arith.constant 0 : index
    %c0_215 = arith.constant 0 : index
    %690 = vector.load %arg18[%c0_214, %c0_215] : memref<17x128xf32, #tpu.memory_space<vmem>>, vector<17x128xf32>
    %691 = vector.extract_strided_slice %690 {offsets = [0, 0], sizes = [16, 128], strides = [1, 1]} : vector<17x128xf32> to vector<16x128xf32>
    %cst_216 = arith.constant dense<0.000000e+00> : vector<2x128xf32>
    %692 = tpu.matmul %689, %691, %cst_216 {dimension_numbers = #tpu.dot_dimension_numbers<[1], [0], [0], [1], [0, 0, 1, 1], [], []>} : vector<2x16xf32>, vector<16x128xf32>, vector<2x128xf32> -> vector<2x128xf32>
    %693 = vector.extract_strided_slice %690 {offsets = [16, 0], sizes = [1, 128], strides = [1, 1]} : vector<17x128xf32> to vector<1x128xf32>
    %694 = vector.broadcast %693 : vector<1x128xf32> to vector<2x128xf32>
    %695 = arith.addf %692, %694 : vector<2x128xf32>
    %c0_217 = arith.constant 0 : index
    %c0_218 = arith.constant 0 : index
    %696 = vector.load %arg19[%c0_217, %c0_218] : memref<2x128xf32, #tpu.memory_space<vmem>>, vector<2x128xf32>
    tpu.vector_store %arg19[%c0_217, %c0_218], %695 {strides = array<i32>} : memref<2x128xf32, #tpu.memory_space<vmem>>, vector<2x128xf32>,
    return
  }
}

</mosaic_0001>

<bundles_post_ra>
// kernel: age_estimation_forward.1
= control target key start
LH: loop header
LB: loop body
LE: loop exit
PB: predicated region body
PF: predicated region fallthrough
CT: control target
= control target key end

     0   :  { %s18619_s0 = inlined_call_operand.vmem [shape: f32[2,16,64], index: 0, kind: input, shape index: {}]   ;;  %s18620_s1 = inlined_call_operand.vmem [shape: f32[64,8], index: 1, kind: input, shape index: {}]   ;;  %s18621_s2 = inlined_call_operand.vmem [shape: f32[3,16,16], index: 2, kind: input, shape index: {}]   ;;  %s18622_s3 = inlined_call_operand.vmem [shape: f32[3,8,16], index: 3, kind: input, shape index: {}]   ;;  %s18623_s4 = inlined_call_operand.vmem [shape: f32[3,8,32], index: 4, kind: input, shape index: {}]   ;;  %s18624_s5 = inlined_call_operand.vmem [shape: f32[3,32,32], index: 5, kind: input, shape index: {}]   ;;  %s18625_s6 = inlined_call_operand.vmem [shape: f32[13,32], index: 6, kind: input, shape index: {}]   ;;  %s18626_s7 = inlined_call_operand.vmem [shape: f32[2,12,32,8], index: 7, kind: input, shape index: {}]   ;;  %s18627_s8 = inlined_call_operand.vmem [shape: f32[2,8,1,8], index: 8, kind: input, shape index: {}]   ;;  %s18628_s9 = inlined_call_operand.vmem [shape: f32[2,4,8,32], index: 9, kind: input, shape index: {}]   ;;  %s18629_s10 = inlined_call_operand.vmem [shape: f32[2,6,32], index: 10, kind: input, shape index: {}]   ;;  %s18630_s11 = inlined_call_operand.vmem [shape: f32[2,32,64], index: 11, kind: input, shape index: {}]   ;;  %s18631_s12 = inlined_call_operand.vmem [shape: f32[2,1,64], index: 12, kind: input, shape index: {}]   ;;  %s18632_s13 = inlined_call_operand.vmem [shape: f32[2,64,32], index: 13, kind: input, shape index: {}]   ;;  %s18633_s14 = inlined_call_operand.vmem [shape: f32[12,32,8], index: 14, kind: input, shape index: {}]   ;;  %s18634_s15 = inlined_call_operand.vmem [shape: f32[12,1,8], index: 15, kind: input, shape index: {}]   ;;  %s18635_s16 = inlined_call_operand.vmem [shape: f32[4,8,32], index: 16, kind: input, shape index: {}]   ;;  %s18636_s17 = inlined_call_operand.vmem [shape: f32[33,16], index: 17, kind: input, shape index: {}]   ;;  %s18637_s18 = inlined_call_operand.vmem [shape: f32[17,128], index: 18, kind: input, shape index: {}]   ;;  %s18638_s19 = inlined_call_operand.hbm [shape: f32[2,128], index: 19, kind: output, shape index: {}]  }
   0x1   :  { %18643 = sst [smem:[#allocation5_spill]] %s18619_s0 }
   0x2   :  { %18644 = sst [smem:[#allocation6_spill]] %s18620_s1 }
   0x3   :  { %18645 = sst [smem:[#allocation7_spill]] %s18621_s2 }
   0x4   :  { %18646 = sst [smem:[#allocation8_spill]] %s18622_s3 }
   0x5   :  { %s18647_s20 = sld [smem:[#allocation6_spill]]  ;;  %vm77_vm0 = vcmask 523264  }
   0x6   :  { %s18648_s25 = sld [smem:[#allocation5_spill]] }
   0xb   :  { %v76_v0 = vld [vmem:[%s18647_s20 + $0x38] sm:$0xff]  ;;  %v75_v1 = vld [vmem:[%s18647_s20 + $0x30] sm:$0xff]  ;;  %v74_v2 = vld [vmem:[%s18647_s20 + $0x28] sm:$0xff] }
   0xc   :  { %14811 = vmatprep.subr.mxu0 %v76_v0  ;;  %v65_v3 = vld [vmem:[%s18648_s25] sm:$0xff] }
   0xd   :  { %14812 = vmatpush3.msra.mxu0 %v76_v0  ;;  %14827 = vmatprep.mubr.msk.f32.mxu0 %vm77_vm0, %v65_v3  ;;  %v73_v4 = vld [vmem:[%s18647_s20 + $0x20] sm:$0xff] }
   0xe   :  { %14813 = vmatprep.subr.mxu0 %v75_v1 }
   0xf   :  { %14814 = vmatpush3.msra.mxu0 %v75_v1 }
  0x10   :  { %24 = vsyncpa [#allocation3], 0  ;;  %14815 = vmatprep.subr.mxu0 %v74_v2  ;;  %v72_v5 = vld [vmem:[%s18647_s20 + $0x18] sm:$0xff]  ;;  %v71_v6 = vld [vmem:[%s18647_s20 + $0x10] sm:$0xff]  ;;  %vm195_vm1 = vcmask 64512   ;;  %s18649_s28 = sld [smem:[#allocation7_spill]] }
  0x11   :  { %14816 = vmatpush3.msra.mxu0 %v74_v2  ;;  %v70_v7 = vld [vmem:[%s18647_s20 + $0x8] sm:$0xff]  ;;  %v69_v8 = vld [vmem:[%s18647_s20] sm:$0xff]  ;;  %v67_v10 = vld [vmem:[%s18648_s25 + $0x10] sm:$0xff]  ;;  %vm247_vm2 = vcmask 130048   ;;  %vm16398_vm3 = vmmov 0   ;;  %s18650_s24 = sld [smem:[#allocation8_spill]] }
  0x12   :  { %14817 = vmatprep.subr.mxu0 %v73_v4  ;;  %v66_v9 = vld [vmem:[%s18648_s25 + $0x8] sm:$0xff]  ;;  %v68_v11 = vld [vmem:[%s18648_s25 + $0x18] sm:$0xff]  ;;  %vm1286_vm8 = vcmask 261120   ;;  %vm1882_vm11 = vcmask 1042432   ;;  %s16399_s0 = smov [#allocation2]  }
  0x13   :  { %14818 = vmatpush3.msra.mxu0 %v73_v4  ;;  %s13844_s30 = sshll.u32 %s16399_s0, 4  ;;  %s13845_s30 = int_to_ptr.vmem [resolvable:$true] %s13844_s30 }
  0x14   :  { %14819 = vmatprep.subr.mxu0 %v72_v5  ;;  %p16380_p1 = scmp.lt.s32.totalorder %s13845_s30, %s13845_s30 }
  0x15   :  { %14820 = vmatpush3.msra.mxu0 %v72_v5 }
  0x16   :  { %14821 = vmatprep.subr.mxu0 %v71_v6  ;;  %v235_v56 = vld [vmem:[%s18649_s28] sm:$0xff]  ;;  %v16553_v57 = vld [vmem:[%s18649_s28 + $0x10] sm:$0xff] }
  0x17   :  { %14822 = vmatpush3.msra.mxu0 %v71_v6  ;;  %14837 = vmatprep.mubr.msk.f32.mxu1 %vm247_vm2, %v235_v56 }
  0x18   :  { %14823 = vmatprep.subr.mxu0 %v70_v7 }
  0x19   :  { %14824 = vmatpush3.msra.mxu0 %v70_v7 }
  0x1a   :  { %14825 = vmatprep.subr.mxu0 %v69_v8 }
  0x1b   :  { %14826 = vmatpush3.msra.mxu0 %v69_v8  ;;  %v236_v8 = vld [vmem:[%s18649_s28 + $0x8] sm:$0xff] }
  0x1c   :  { %14828 = vmatmul.mubr.msk.f32.vlgmr.msra.gmra.mxu0 %vm77_vm0, %v66_v9 }
  0x1d   :  { %14830 = vmatprep.mubr.msk.f32.mxu0 %vm77_vm0, %v67_v10 }
  0x20   :  { %14831 = vmatmul.mubr.msk.f32.gmra.mxu0 %vm77_vm0, %v68_v11  ;;  %v244_v11 = vld [vmem:[%s18623_s4] sm:$0xff] }
  0x21   :  { %14866 = vmatprep.mubr.msk.f32.mxu0 %vm247_vm2, %v16553_v57 }
  0xdc   :  { %v14829_v12 = vpop.f32.mrf.mxu0 }
  0xdd   :  { %v176_v13 = vmul.f32 %v14829_v12, %v14829_v12  ;;  %v238_v12 = vld [vmem:[%s18649_s28 + $0x18] sm:$0xff] }
  0xde   :  { %v156_v14 = vpop.f32.mrf.mxu0 }
  0xdf   :  { %v180_v15 = vmax.f32 %v176_v13, 1e-10  ;;  %v175_v16 = vmul.f32 %v156_v14, %v156_v14  ;;  %v239_v13 = vld [vmem:[%s18649_s28 + $0x20] sm:$0xff]  ;;  %v240_v14 = vld [vmem:[%s18649_s28 + $0x28] sm:$0xff] }
  0xe0   :  { %v14832_v17 = vpop.f32.mrf.mxu0 }
  0xe1   :  { %16207 = vlog2.f32 %v180_v15  ;;  %v179_v18 = vmax.f32 %v175_v16, 1e-10  ;;  %v178_v19 = vmul.f32 %v14832_v17, %v14832_v17 }
  0xe2   :  { %v166_v20 = vpop.f32.mrf.mxu0 }
  0xe3   :  { %16209 = vlog2.f32 %v179_v18  ;;  %v182_v21 = vmax.f32 %v178_v19, 1e-10  ;;  %v177_v22 = vmul.f32 %v166_v20, %v166_v20  ;;  %v245_v19 = vld [vmem:[%s18623_s4 + $0x8] sm:$0xff]  ;;  %v246_v20 = vld [vmem:[%s18623_s4 + $0x10] sm:$0xff] }
  0xe5   :  { %16211 = vlog2.f32 %v182_v21  ;;  %v181_v23 = vmax.f32 %v177_v22, 1e-10 }
  0xe7   :  { %16213 = vlog2.f32 %v181_v23 }
  0xee   :  { %v16208_v24 = vpop.eup %16207 }
  0xef   :  { %v186_v25 = vmul.f32 0.6931472, %v16208_v24 }
  0xf0   :  { %v16210_v26 = vpop.eup %16209 }
  0xf1   :  { %v192_v27 = vmul.f32 0.4342945, %v186_v25  ;;  %v184_v28 = vmul.f32 0.6931472, %v16210_v26 }
  0xf2   :  { %v16212_v29 = vpop.eup %16211 }
  0xf3   :  { %v191_v30 = vmul.f32 0.4342945, %v184_v28  ;;  %v190_v31 = vmul.f32 0.6931472, %v16212_v29  ;;  %v197_v33 = vsel %vm195_vm1, %v192_v27, -inf }
  0xf4   :  { %v16214_v32 = vpop.eup %16213 }
  0xf5   :  { %v194_v34 = vmul.f32 0.4342945, %v190_v31  ;;  %v188_v35 = vmul.f32 0.6931472, %v16214_v32  ;;  %v196_v36 = vsel %vm195_vm1, %v191_v30, -inf }
  0xf6   :  { %v198_v37 = vmax.f32 %v196_v36, %v197_v33  ;;  %v16397_v33 = vmov 0.0   ;;  %v1015_v36 = vlaneseq }
  0xf7   :  { %v193_v38 = vmul.f32 0.4342945, %v188_v35  ;;  %v206_v40 = vsel %vm195_vm1, %v194_v34, -inf  ;;  %v1133_v35 = vld [vmem:[%s18624_s5 + $0x10] sm:$0xff] }
  0xf8   :  { %v199_v39 = vrot.slane %v198_v37, 4 }
  0xf9   :  { %v205_v41 = vsel %vm195_vm1, %v193_v38, -inf }
  0xfa   :  { %v200_v42 = vmax.f32 %v198_v37, %v199_v39  ;;  %v207_v43 = vmax.f32 %v205_v41, %v206_v40  ;;  %v16610_v37 = vshrl.u32 %v1015_v36, 7 }
  0xfc   :  { %v201_v44 = vrot.slane %v200_v42, 2  ;;  %v208_v45 = vrot.slane %v207_v43, 4  ;;  %v16613_v40 = vsub.s32 0, %v16610_v37 }
  0xfe   :  { %v202_v46 = vmax.f32 %v200_v42, %v201_v44  ;;  %v209_v47 = vmax.f32 %v207_v43, %v208_v45  ;;  %v16618_v42 = vld [vmem:[%s18625_s6] sm:$0xff] }
  0xff   :  { %v1018_v45 = vrot.slane %v16618_v42, %v16613_v40 }
 0x100   :  { %v203_v48 = vrot.slane %v202_v46, 1  ;;  %v210_v49 = vrot.slane %v209_v47, 2 }
 0x102   :  { %v204_v50 = vmax.f32 %v202_v46, %v203_v48  ;;  %v211_v51 = vmax.f32 %v209_v47, %v210_v49 }
 0x104   :  { %v214_v52 = vsel %vm195_vm1, %v204_v50, -inf  ;;  %v212_v53 = vrot.slane %v211_v51, 1 }
 0x105   :  { %215 = vmax.xlane.f32.xlu0 %v214_v52 }
 0x106   :  { %v213_v54 = vmax.f32 %v211_v51, %v212_v53 }
 0x108   :  { %v217_v55 = vsel %vm195_vm1, %v213_v54, -inf }
 0x109   :  { %218 = vmax.xlane.f32.xlu0 %v217_v55 }
 0x18e   :  { %v216_v58 = vpop.xlane.xlu0 %215 }
 0x18f   :  { %v13856_v59 = vadd.f32 -8.0, %v216_v58 }
 0x191   :  { %v222_v60 = vmax.f32 %v191_v30, %v13856_v59  ;;  %v223_v61 = vmax.f32 %v192_v27, %v13856_v59 }
 0x192   :  { %v219_v62 = vpop.xlane.xlu0 %218 }
 0x193   :  { %v226_v63 = vadd.f32 4.0, %v222_v60  ;;  %v227_v0 = vadd.f32 4.0, %v223_v61  ;;  %v13857_v1 = vadd.f32 -8.0, %v219_v62 }
 0x195   :  { %v232_v2 = vmul.f32 0.25, %v227_v0  ;;  %v224_v3 = vmax.f32 %v193_v38, %v13857_v1  ;;  %v225_v4 = vmax.f32 %v194_v34, %v13857_v1  ;;  %v231_v5 = vmul.f32 0.25, %v226_v63  ;;  %v1134_v34 = vld [vmem:[%s18624_s5 + $0x18] sm:$0xff] }
 0x197   :  { %v228_v6 = vadd.f32 4.0, %v224_v3  ;;  %v229_v7 = vadd.f32 4.0, %v225_v4  ;;  %14833 = vmatprep.subr.mxu1 %v232_v2 }
 0x198   :  { %14834 = vmatpush3.msra.mxu1 %v232_v2 }
 0x199   :  { %v234_v9 = vmul.f32 0.25, %v229_v7  ;;  %14835 = vmatprep.subr.mxu1 %v231_v5  ;;  %v233_v10 = vmul.f32 0.25, %v228_v6 }
 0x19a   :  { %14836 = vmatpush3.msra.mxu1 %v231_v5 }
 0x19b   :  { %14838 = vmatmul.mubr.msk.f32.vlgmr.msra.gmra.mxu1 %vm247_vm2, %v236_v8  ;;  %14840 = vmatprep.subr.mxu1 %v234_v9 }
 0x19c   :  { %14862 = vmatprep.subr.mxu0 %v234_v9  ;;  %14841 = vmatpush3.msra.mxu1 %v234_v9 }
 0x19d   :  { %14863 = vmatpush3.msra.mxu0 %v234_v9  ;;  %14842 = vmatprep.subr.mxu1 %v233_v10 }
 0x19e   :  { %14864 = vmatprep.subr.mxu0 %v233_v10  ;;  %14843 = vmatpush3.msra.mxu1 %v233_v10 }
 0x19f   :  { %14844 = vmatprep.mubr.msk.f32.mxu1 %vm247_vm2, %v235_v56  ;;  %14865 = vmatpush3.msra.mxu0 %v233_v10 }
 0x1a0   :  { %14845 = vmatmul.mubr.msk.f32.vlgmr.msra.gmra.mxu1 %vm247_vm2, %v236_v8  ;;  %14847 = vmatprep.subr.mxu1 %v244_v11 }
 0x1a1   :  { %14877 = vmatprep.subr.mxu0 %v232_v2  ;;  %14848 = vmatpush3.msra.mxu1 %v244_v11 }
 0x1a2   :  { %14867 = vmatmul.mubr.msk.f32.vlgmr.msra.gmra.mxu0 %vm247_vm2, %v238_v12  ;;  %14855 = vmatprep.subr.mxu1 %v232_v2 }
 0x1a3   :  { %14878 = vmatpush3.msra.mxu0 %v232_v2  ;;  %14881 = vmatprep.mubr.msk.f32.mxu0 %vm247_vm2, %v239_v13 }
 0x1a4   :  { %14879 = vmatprep.subr.mxu0 %v231_v5 }
 0x1a5   :  { %14880 = vmatpush3.msra.mxu0 %v231_v5 }
 0x1a6   :  { %14884 = vmatprep.subr.mxu0 %v234_v9  ;;  %14882 = vmatmul.mubr.msk.f32.vlgmr.msra.gmra.mxu0 %vm247_vm2, %v240_v14 }
 0x1a7   :  { %14885 = vmatpush3.msra.mxu0 %v234_v9  ;;  %14888 = vmatprep.mubr.msk.f32.mxu0 %vm247_vm2, %v239_v13 }
 0x1a8   :  { %14886 = vmatprep.subr.mxu0 %v233_v10 }
 0x1a9   :  { %14887 = vmatpush3.msra.mxu0 %v233_v10 }
 0x1aa   :  { %14889 = vmatmul.mubr.msk.f32.vlgmr.msra.gmra.mxu0 %vm247_vm2, %v240_v14  ;;  %14899 = vmatprep.subr.mxu0 %v16397_v33 }
 0x1ab   :  { %14903 = vmatprep.mubr.msk.f32.mxu0 %vm16398_vm3, %v16397_v33 }
 0x25b   :  { %v14839_v15 = vpop.f32.mrf.mxu1 }
 0x25d   :  { %v320_v16 = vpop.f32.mrf.mxu1 }
 0x25e   :  { %14849 = vmatprep.mubr.msk.f32.mxu1 %vm195_vm1, %v320_v16 }
 0x25f   :  { %14850 = vmatmul.mubr.msk.f32.vlgmr.msra.gmra.mxu1 %vm195_vm1, %v14839_v15 }
 0x260   :  { %v14846_v17 = vpop.f32.mrf.mxu1  ;;  %14856 = vmatpush3.msra.mxu1 %v232_v2 }
 0x261   :  { %14857 = vmatprep.subr.mxu1 %v231_v5 }
 0x262   :  { %v395_v18 = vpop.f32.mrf.mxu1  ;;  %14858 = vmatpush3.msra.mxu1 %v231_v5  ;;  %v14868_v21 = vpop.f32.mrf.mxu0 }
 0x263   :  { %14852 = vmatprep.mubr.msk.f32.mxu1 %vm195_vm1, %v395_v18  ;;  %14869 = vmatprep.subr.mxu1 %v245_v19 }
 0x264   :  { %14853 = vmatmul.mubr.msk.f32.gmra.mxu1 %vm195_vm1, %v14846_v17  ;;  %v648_v24 = vpop.f32.mrf.mxu0 }
 0x265   :  { %14859 = vmatprep.mubr.msk.f32.mxu1 %vm247_vm2, %v16553_v57 }
 0x266   :  { %v14883_v27 = vpop.f32.mrf.mxu0 }
 0x268   :  { %14860 = vmatmul.mubr.msk.f32.vlgmr.msra.gmra.mxu1 %vm247_vm2, %v238_v12  ;;  %v830_v30 = vpop.f32.mrf.mxu0 }
 0x269   :  { %14870 = vmatpush3.msra.mxu1 %v245_v19 }
 0x26a   :  { %14891 = vmatprep.subr.mxu1 %v246_v20  ;;  %v14890_v31 = vpop.f32.mrf.mxu0 }
 0x26c   :  { %v905_v32 = vpop.f32.mrf.mxu0 }
 0x31f   :  { %v14851_v22 = vpop.f32.mrf.mxu1 }
 0x321   :  { %v482_v23 = vpop.f32.mrf.mxu1 }
 0x324   :  { %v14854_v25 = vpop.f32.mrf.mxu1 }
 0x326   :  { %v492_v26 = vpop.f32.mrf.mxu1 }
 0x328   :  { %v14861_v28 = vpop.f32.mrf.mxu1 }
 0x32a   :  { %v573_v29 = vpop.f32.mrf.mxu1 }
 0x32b   :  { %14871 = vmatprep.mubr.msk.f32.mxu1 %vm195_vm1, %v573_v29 }
 0x32c   :  { %14872 = vmatmul.mubr.msk.f32.vlgmr.msra.gmra.mxu1 %vm195_vm1, %v14861_v28 }
 0x32d   :  { %14874 = vmatprep.mubr.msk.f32.mxu1 %vm195_vm1, %v648_v24  ;;  %14892 = vmatpush3.msra.mxu1 %v246_v20 }
 0x32e   :  { %14913 = vmatprep.subr.mxu1 %v1134_v34 }
 0x330   :  { %14875 = vmatmul.mubr.msk.f32.gmra.mxu1 %vm195_vm1, %v14868_v21 }
 0x331   :  { %14893 = vmatprep.mubr.msk.f32.mxu1 %vm195_vm1, %v830_v30 }
 0x334   :  { %14894 = vmatmul.mubr.msk.f32.vlgmr.msra.gmra.mxu1 %vm195_vm1, %v14883_v27 }
 0x335   :  { %14896 = vmatprep.mubr.msk.f32.mxu1 %vm195_vm1, %v905_v32  ;;  %14914 = vmatpush3.msra.mxu1 %v1134_v34 }
 0x336   :  { %14915 = vmatprep.subr.mxu1 %v1133_v35 }
 0x337   :  { %14916 = vmatpush3.msra.mxu1 %v1133_v35 }
 0x338   :  { %14897 = vmatmul.mubr.msk.f32.gmra.mxu1 %vm195_vm1, %v14890_v31 }
 0x3ec   :  { %v14873_v38 = vpop.f32.mrf.mxu1 }
 0x3ed   :  { %v755_v44 = vadd.f32 %v14873_v38, %v14851_v22 }
 0x3ee   :  { %v735_v39 = vpop.f32.mrf.mxu1 }
 0x3ef   :  { %v754_v47 = vadd.f32 %v735_v39, %v482_v23 }
 0x3f0   :  { %v14876_v41 = vpop.f32.mrf.mxu1 }
 0x3f1   :  { %v757_v50 = vadd.f32 %v14876_v41, %v14854_v25 }
 0x3f2   :  { %v745_v43 = vpop.f32.mrf.mxu1 }
 0x3f3   :  { %v756_v57 = vadd.f32 %v745_v43, %v492_v26 }
 0x3f4   :  { %v14895_v46 = vpop.f32.mrf.mxu1 }
 0x3f5   :  { %v1012_v48 = vadd.f32 %v14895_v46, %v755_v44 }
 0x3f6   :  { %v992_v49 = vpop.f32.mrf.mxu1 }
 0x3f7   :  { %v16622_v51 = vadd.f32 %v1018_v45, %v1012_v48  ;;  %v1011_v52 = vadd.f32 %v992_v49, %v754_v47 }
 0x3f8   :  { %v14898_v53 = vpop.f32.mrf.mxu1 }
 0x3f9   :  { %v16625_v54 = vmul.f32 0.70710677, %v16622_v51  ;;  %v16627_v55 = vadd.f32 %v1018_v45, %v1011_v52  ;;  %v1014_v56 = vadd.f32 %v14898_v53, %v757_v50 }
 0x3fa   :  { %v1002_v58 = vpop.f32.mrf.mxu1 }
 0x3fb   :  { %v1032_v59 = vand.u32 2147483647, %v16625_v54  ;;  %v16631_v60 = vmul.f32 0.70710677, %v16627_v55  ;;  %v16633_v61 = vadd.f32 %v1018_v45, %v1014_v56  ;;  %v1013_v62 = vadd.f32 %v1002_v58, %v756_v57 }
 0x3fc   :  { %vm1112_vm4 = vcmp.ge.f32.partialorder %v16625_v54, 0.0 }
 0x3fd   :  { %v1036_v63 = vmul.f32 0.3275911, %v1032_v59  ;;  %v1031_v0 = vand.u32 2147483647, %v16631_v60  ;;  %v16637_v1 = vmul.f32 0.70710677, %v16633_v61  ;;  %v16639_v2 = vadd.f32 %v1018_v45, %v1013_v62 }
 0x3fe   :  { %v1088_v13 = vsub.f32 0.0, %v1032_v59  ;;  %vm1111_vm5 = vcmp.ge.f32.partialorder %v16631_v60, 0.0  ;;  %v241_v60 = vld [vmem:[%s18650_s24] sm:$0xff] }
 0x3ff   :  { %v1040_v3 = vadd.f32 1.0, %v1036_v63  ;;  %v1035_v4 = vmul.f32 0.3275911, %v1031_v0  ;;  %v1034_v5 = vand.u32 2147483647, %v16637_v1  ;;  %v1087_v14 = vsub.f32 0.0, %v1031_v0 }
 0x400   :  { %v16643_v6 = vmul.f32 0.70710677, %v16639_v2  ;;  %v1092_v15 = vmul.f32 %v1088_v13, %v1032_v59  ;;  %vm1114_vm6 = vcmp.ge.f32.partialorder %v16637_v1, 0.0 }
 0x401   :  { %16215 = vrcp.f32 %v1040_v3  ;;  %v1039_v7 = vadd.f32 1.0, %v1035_v4  ;;  %v1038_v8 = vmul.f32 0.3275911, %v1034_v5  ;;  %v1090_v16 = vsub.f32 0.0, %v1034_v5 }
 0x402   :  { %v1033_v9 = vand.u32 2147483647, %v16643_v6  ;;  %v1091_v18 = vmul.f32 %v1087_v14, %v1031_v0  ;;  %v1097_v20 = vmul.f32 1.442695, %v1092_v15  ;;  %vm1113_vm7 = vcmp.ge.f32.partialorder %v16643_v6, 0.0  ;;  %v1131_v6 = vld [vmem:[%s18624_s5] sm:$0xff] }
 0x403   :  { %16217 = vrcp.f32 %v1039_v7  ;;  %v1042_v10 = vadd.f32 1.0, %v1038_v8  ;;  %v1094_v22 = vmul.f32 %v1090_v16, %v1034_v5 }
 0x404   :  { %v1037_v11 = vmul.f32 0.3275911, %v1033_v9  ;;  %v1089_v21 = vsub.f32 0.0, %v1033_v9  ;;  %v1095_v25 = vmul.f32 1.442695, %v1091_v18 }
 0x405   :  { %16219 = vrcp.f32 %v1042_v10  ;;  %v1101_v31 = vmul.f32 1.442695, %v1094_v22 }
 0x406   :  { %v1041_v12 = vadd.f32 1.0, %v1037_v11  ;;  %v1093_v29 = vmul.f32 %v1089_v21, %v1033_v9 }
 0x408   :  { %16221 = vrcp.f32 %v1041_v12  ;;  %v1099_v41 = vmul.f32 1.442695, %v1093_v29 }
 0x409   :  { %16223 = vpow2.f32 %v1097_v20 }
 0x40a   :  { %16225 = vpow2.f32 %v1095_v25  ;;  %v1024_v25 = vmul.f32 0.5, %v16622_v51 }
 0x40b   :  { %16227 = vpow2.f32 %v1101_v31 }
 0x40c   :  { %16229 = vpow2.f32 %v1099_v41  ;;  %v1025_v41 = vmul.f32 0.5, %v16639_v2  ;;  %v1132_v2 = vld [vmem:[%s18624_s5 + $0x8] sm:$0xff] }
 0x40d   :  { %14917 = vmatprep.subr.mxu1 %v1132_v2 }
 0x40e   :  { %v16216_v17 = vpop.eup %16215  ;;  %14918 = vmatpush3.msra.mxu1 %v1132_v2 }
 0x40f   :  { %v1052_v19 = vmul.f32 1.0614054, %v16216_v17  ;;  %14919 = vmatprep.subr.mxu1 %v1131_v6 }
 0x410   :  { %v16218_v23 = vpop.eup %16217  ;;  %14920 = vmatpush3.msra.mxu1 %v1131_v6 }
 0x411   :  { %v1056_v24 = vadd.f32 -1.4531521, %v1052_v19  ;;  %v1051_v26 = vmul.f32 1.0614054, %v16218_v23  ;;  %14931 = vmatprep.subr.mxu1 %v16397_v33 }
 0x412   :  { %v16220_v27 = vpop.eup %16219 }
 0x413   :  { %v1060_v28 = vmul.f32 %v16216_v17, %v1056_v24  ;;  %v1054_v30 = vmul.f32 1.0614054, %v16220_v27  ;;  %v1055_v32 = vadd.f32 -1.4531521, %v1051_v26 }
 0x415   :  { %v1064_v34 = vadd.f32 1.4214138, %v1060_v28  ;;  %v16222_v35 = vpop.eup %16221  ;;  %v1058_v36 = vadd.f32 -1.4531521, %v1054_v30  ;;  %v1059_v38 = vmul.f32 %v16218_v23, %v1055_v32  ;;  %v1023_v32 = vmul.f32 0.5, %v16627_v55 }
 0x416   :  { %v1053_v43 = vmul.f32 1.0614054, %v16222_v35  ;;  %v16224_v3 = vpop.eup %16223 }
 0x417   :  { %v1068_v39 = vmul.f32 %v16216_v17, %v1064_v34  ;;  %v1062_v44 = vmul.f32 %v16220_v27, %v1058_v36  ;;  %v1063_v45 = vadd.f32 1.4214138, %v1059_v38  ;;  %v16226_v11 = vpop.eup %16225 }
 0x418   :  { %v1057_v47 = vadd.f32 -1.4531521, %v1053_v43  ;;  %v16228_v16 = vpop.eup %16227 }
 0x419   :  { %v1072_v46 = vadd.f32 -0.28449672, %v1068_v39  ;;  %v1066_v48 = vadd.f32 1.4214138, %v1062_v44  ;;  %v1067_v49 = vmul.f32 %v16218_v23, %v1063_v45  ;;  %v16230_v24 = vpop.eup %16229  ;;  %v242_v44 = vld [vmem:[%s18650_s24 + $0x8] sm:$0xff]  ;;  %v1138_v45 = vld [vmem:[%s18624_s5 + $0x38] sm:$0xff] }
 0x41a   :  { %v1061_v52 = vmul.f32 %v16222_v35, %v1057_v47 }
 0x41b   :  { %v1076_v50 = vmul.f32 %v16216_v17, %v1072_v46  ;;  %v1070_v53 = vmul.f32 %v16220_v27, %v1066_v48  ;;  %v1071_v56 = vadd.f32 -0.28449672, %v1067_v49  ;;  %v1137_v46 = vld [vmem:[%s18624_s5 + $0x30] sm:$0xff] }
 0x41c   :  { %v1065_v58 = vadd.f32 1.4214138, %v1061_v52  ;;  %v243_v52 = vld [vmem:[%s18650_s24 + $0x10] sm:$0xff] }
 0x41d   :  { %v1080_v57 = vadd.f32 0.2548296, %v1076_v50  ;;  %v1074_v59 = vadd.f32 -0.28449672, %v1070_v53  ;;  %v1075_v62 = vmul.f32 %v16218_v23, %v1071_v56  ;;  %v1136_v53 = vld [vmem:[%s18624_s5 + $0x28] sm:$0xff]  ;;  %v1135_v56 = vld [vmem:[%s18624_s5 + $0x20] sm:$0xff] }
 0x41e   :  { %v1069_v0 = vmul.f32 %v16222_v35, %v1065_v58 }
 0x41f   :  { %v1084_v63 = vmul.f32 %v16216_v17, %v1080_v57  ;;  %v1078_v4 = vmul.f32 %v16220_v27, %v1074_v59  ;;  %v1079_v5 = vadd.f32 0.2548296, %v1075_v62  ;;  %v1142_v59 = vld [vmem:[%s18624_s5 + $0x58] sm:$0xff] }
 0x420   :  { %v1073_v8 = vadd.f32 -0.28449672, %v1069_v0 }
 0x421   :  { %v1104_v7 = vmul.f32 %v16224_v3, %v1084_v63  ;;  %v1082_v9 = vadd.f32 0.2548296, %v1078_v4  ;;  %v1083_v10 = vmul.f32 %v16218_v23, %v1079_v5  ;;  %v1141_v3 = vld [vmem:[%s18624_s5 + $0x50] sm:$0xff]  ;;  %v1140_v5 = vld [vmem:[%s18624_s5 + $0x48] sm:$0xff] }
 0x422   :  { %v1077_v13 = vmul.f32 %v16222_v35, %v1073_v8  ;;  %v1139_v8 = vld [vmem:[%s18624_s5 + $0x40] sm:$0xff] }
 0x423   :  { %v1108_v12 = vsub.f32 1.0, %v1104_v7  ;;  %v1086_v14 = vmul.f32 %v16220_v27, %v1082_v9  ;;  %v1103_v15 = vmul.f32 %v16226_v11, %v1083_v10 }
 0x424   :  { %v1081_v19 = vadd.f32 0.2548296, %v1077_v13  ;;  %v16733_v13 = vsub.s32 1, %v16610_v37 }
 0x425   :  { %v1116_v18 = vsub.f32 0.0, %v1108_v12  ;;  %v1106_v20 = vmul.f32 %v16228_v16, %v1086_v14  ;;  %v1107_v17 = vsub.f32 1.0, %v1103_v15 }
 0x426   :  { %v1085_v22 = vmul.f32 %v16222_v35, %v1081_v19  ;;  %v1026_v35 = vmul.f32 0.5, %v16633_v61  ;;  %v1823_v16 = vrot.slane %v16618_v42, %v16733_v13 }
 0x427   :  { %v1120_v21 = vsel %vm1112_vm4, %v1108_v12, %v1116_v18  ;;  %v1110_v28 = vsub.f32 1.0, %v1106_v20  ;;  %v1115_v23 = vsub.f32 0.0, %v1107_v17 }
 0x428   :  { %v1124_v26 = vadd.f32 1.0, %v1120_v21  ;;  %v1105_v29 = vmul.f32 %v16230_v24, %v1085_v22 }
 0x429   :  { %v1118_v30 = vsub.f32 0.0, %v1110_v28  ;;  %v1119_v31 = vsel %vm1111_vm5, %v1107_v17, %v1115_v23 }
 0x42a   :  { %v1128_v27 = vmul.f32 %v1124_v26, %v1024_v25  ;;  %v1123_v54 = vadd.f32 1.0, %v1119_v31  ;;  %v1109_v34 = vsub.f32 1.0, %v1105_v29 }
 0x42b   :  { %v1122_v36 = vsel %vm1114_vm6, %v1110_v28, %v1118_v30 }
 0x42c   :  { %14900 = vmatpush3.msra.mxu0 %v1128_v27  ;;  %v1126_v51 = vadd.f32 1.0, %v1122_v36  ;;  %v1127_v38 = vmul.f32 %v1123_v54, %v1023_v32  ;;  %v1117_v39 = vsub.f32 0.0, %v1109_v34 }
 0x42d   :  { %14901 = vmatprep.subr.mxu0 %v16397_v33 }
 0x42e   :  { %v1130_v55 = vmul.f32 %v1126_v51, %v1026_v35  ;;  %14902 = vmatpush3.msra.mxu0 %v1127_v38  ;;  %v1121_v1 = vsel %vm1113_vm7, %v1109_v34, %v1117_v39 }
 0x42f   :  { %14904 = vmatmul.mubr.msk.f32.vlgmr.msra.gmra.mxu0 %vm247_vm2, %v241_v60  ;;  %14906 = vmatprep.subr.mxu0 %v16397_v33  ;;  %v1125_v61 = vadd.f32 1.0, %v1121_v1 }
 0x430   :  { %14907 = vmatpush3.msra.mxu0 %v1130_v55  ;;  %14910 = vmatprep.mubr.msk.f32.mxu0 %vm16398_vm3, %v16397_v33 }
 0x431   :  { %14908 = vmatprep.subr.mxu0 %v16397_v33  ;;  %v1129_v43 = vmul.f32 %v1125_v61, %v1025_v41 }
 0x433   :  { %14909 = vmatpush3.msra.mxu0 %v1129_v43 }
 0x434   :  { %14911 = vmatmul.mubr.msk.f32.vlgmr.msra.gmra.mxu0 %vm247_vm2, %v241_v60  ;;  %14924 = vmatprep.subr.mxu0 %v16397_v33 }
 0x435   :  { %14925 = vmatpush3.msra.mxu0 %v1128_v27  ;;  %14928 = vmatprep.mubr.msk.f32.mxu0 %vm16398_vm3, %v16397_v33 }
 0x436   :  { %14926 = vmatprep.subr.mxu0 %v16397_v33 }
 0x437   :  { %14927 = vmatpush3.msra.mxu0 %v1127_v38 }
 0x438   :  { %14929 = vmatmul.mubr.msk.f32.vlgmr.msra.gmra.mxu0 %vm247_vm2, %v242_v44  ;;  %14938 = vmatprep.subr.mxu0 %v1138_v45 }
 0x439   :  { %14939 = vmatpush3.msra.mxu0 %v1138_v45 }
 0x43a   :  { %14940 = vmatprep.subr.mxu0 %v1137_v46 }
 0x43b   :  { %14941 = vmatpush3.msra.mxu0 %v1137_v46 }
 0x43c   :  { %14942 = vmatprep.subr.mxu0 %v1136_v53 }
 0x43d   :  { %14943 = vmatpush3.msra.mxu0 %v1136_v53 }
 0x43e   :  { %14944 = vmatprep.subr.mxu0 %v1135_v56 }
 0x43f   :  { %14945 = vmatpush3.msra.mxu0 %v1135_v56 }
 0x440   :  { %14963 = vmatprep.subr.mxu0 %v1142_v59 }
 0x4ef   :  { %v1212_v47 = vpop.f32.mrf.mxu0 }
 0x4f0   :  { %14921 = vmatprep.mubr.msk.f32.mxu1 %vm1286_vm8, %v1212_v47 }
 0x4f1   :  { %v14905_v48 = vpop.f32.mrf.mxu0 }
 0x4f4   :  { %v1282_v49 = vpop.f32.mrf.mxu0 }
 0x4f5   :  { %14922 = vmatmul.mubr.msk.f32.vlgmr.msra.gmra.mxu1 %vm1286_vm8, %v1282_v49 }
 0x4f6   :  { %14932 = vmatpush3.msra.mxu1 %v1130_v55  ;;  %v14912_v50 = vpop.f32.mrf.mxu0  ;;  %14935 = vmatprep.mubr.msk.f32.mxu1 %vm16398_vm3, %v16397_v33 }
 0x4f7   :  { %14933 = vmatprep.subr.mxu1 %v16397_v33 }
 0x4f8   :  { %14934 = vmatpush3.msra.mxu1 %v1129_v43  ;;  %v1437_v57 = vpop.f32.mrf.mxu0 }
 0x4f9   :  { %14949 = vmatprep.subr.mxu1 %v16397_v33  ;;  %14936 = vmatmul.mubr.msk.f32.vlgmr.msra.gmra.mxu1 %vm247_vm2, %v242_v44 }
 0x4fa   :  { %14950 = vmatpush3.msra.mxu1 %v1128_v27  ;;  %14953 = vmatprep.mubr.msk.f32.mxu1 %vm16398_vm3, %v16397_v33  ;;  %v14930_v58 = vpop.f32.mrf.mxu0 }
 0x4fb   :  { %14951 = vmatprep.subr.mxu1 %v16397_v33  ;;  %14946 = vmatprep.mubr.msk.f32.mxu0 %vm1286_vm8, %v1437_v57 }
 0x4fc   :  { %14952 = vmatpush3.msra.mxu1 %v1127_v38 }
 0x4fd   :  { %14956 = vmatprep.subr.mxu1 %v16397_v33  ;;  %14954 = vmatmul.mubr.msk.f32.vlgmr.msra.gmra.mxu1 %vm247_vm2, %v243_v52 }
 0x4fe   :  { %14957 = vmatpush3.msra.mxu1 %v1130_v55  ;;  %14960 = vmatprep.mubr.msk.f32.mxu1 %vm16398_vm3, %v16397_v33 }
 0x4ff   :  { %14958 = vmatprep.subr.mxu1 %v16397_v33 }
 0x500   :  { %14959 = vmatpush3.msra.mxu1 %v1129_v43 }
 0x501   :  { %14961 = vmatmul.mubr.msk.f32.vlgmr.msra.gmra.mxu1 %vm247_vm2, %v243_v52  ;;  %14974 = vmatprep.subr.mxu1 %v16397_v33 }
 0x502   :  { %14982 = vmatprep.mubr.msk.f32.mxu1 %vm16398_vm3, %v16397_v33 }
 0x5b5   :  { %v14923_v62 = vpop.f32.mrf.mxu1 }
 0x5b7   :  { %v1359_v63 = vpop.f32.mrf.mxu1 }
 0x5b9   :  { %v1507_v0 = vpop.f32.mrf.mxu1 }
 0x5ba   :  { %14947 = vmatmul.mubr.msk.f32.vlgmr.msra.gmra.mxu0 %vm1286_vm8, %v1507_v0 }
 0x5bb   :  { %v14937_v4 = vpop.f32.mrf.mxu1  ;;  %14964 = vmatpush3.msra.mxu0 %v1142_v59 }
 0x5bc   :  { %14965 = vmatprep.subr.mxu0 %v1141_v3 }
 0x5bd   :  { %v1663_v7 = vpop.f32.mrf.mxu1  ;;  %14966 = vmatpush3.msra.mxu0 %v1141_v3 }
 0x5be   :  { %14967 = vmatprep.subr.mxu0 %v1140_v5  ;;  %14971 = vmatprep.mubr.msk.f32.mxu0 %vm1286_vm8, %v1663_v7 }
 0x5bf   :  { %v14955_v9 = vpop.f32.mrf.mxu1  ;;  %14968 = vmatpush3.msra.mxu0 %v1140_v5  ;;  %v64_v5 = vld [vmem:[%s18625_s6 + $0x8] sm:$0x1f] }
 0x5c0   :  { %14969 = vmatprep.subr.mxu0 %v1139_v8 }
 0x5c1   :  { %v1733_v10 = vpop.f32.mrf.mxu1  ;;  %14970 = vmatpush3.msra.mxu0 %v1139_v8 }
 0x5c2   :  { %14972 = vmatmul.mubr.msk.f32.vlgmr.msra.gmra.mxu0 %vm1286_vm8, %v1733_v10  ;;  %14985 = vmatprep.subr.mxu0 %v16397_v33  ;;  %v1883_v10 = vrot.slane %v16618_v42, 5 }
 0x5c3   :  { %v14962_v11 = vpop.f32.mrf.mxu1  ;;  %14993 = vmatprep.mubr.msk.f32.mxu0 %vm16398_vm3, %v16397_v33 }
 0x5c4   :  { %v1884_v11 = vrot.slane %v64_v5, 5  ;;  %v1912_v5 = vld [vmem:[%s18626_s7 + $0xb8] sm:$0xff] }
 0x67a   :  { %v14948_v12 = vpop.f32.mrf.mxu0 }
 0x67b   :  { %v1593_v15 = vadd.f32 %v14948_v12, %v14923_v62 }
 0x67c   :  { %v1583_v14 = vpop.f32.mrf.mxu0 }
 0x67d   :  { %v1592_v19 = vadd.f32 %v1583_v14, %v1359_v63 }
 0x682   :  { %v14973_v18 = vpop.f32.mrf.mxu0 }
 0x683   :  { %v1819_v20 = vadd.f32 %v14973_v18, %v1593_v15 }
 0x684   :  { %v1809_v17 = vpop.f32.mrf.mxu0 }
 0x685   :  { %v1825_v21 = vadd.f32 %v1823_v16, %v1819_v20  ;;  %v1818_v22 = vadd.f32 %v1809_v17, %v1592_v19  ;;  %v1885_v19 = vsel %vm1882_vm11, %v1883_v10, %v1884_v11  ;;  %v1910_v10 = vld [vmem:[%s18626_s7 + $0xa8] sm:$0xff]  ;;  %v1905_v11 = vld [vmem:[%s18626_s7 + $0x80] sm:$0xff] }
 0x687   :  { %v1829_v24 = vmul.f32 0.70710677, %v1825_v21  ;;  %v1824_v25 = vadd.f32 %v1823_v16, %v1818_v22  ;;  %v1827_v12 = vmul.f32 0.5, %v1825_v21 }
 0x689   :  { %v1831_v26 = vand.u32 2147483647, %v1829_v24  ;;  %v1828_v28 = vmul.f32 0.70710677, %v1824_v25  ;;  %vm1871_vm9 = vcmp.ge.f32.partialorder %v1829_v24, 0.0  ;;  %v1826_v14 = vmul.f32 0.5, %v1824_v25 }
 0x68b   :  { %v1833_v23 = vmul.f32 0.3275911, %v1831_v26  ;;  %v1830_v29 = vand.u32 2147483647, %v1828_v28  ;;  %v1859_v32 = vsub.f32 0.0, %v1831_v26  ;;  %vm1870_vm10 = vcmp.ge.f32.partialorder %v1828_v28, 0.0 }
 0x68d   :  { %v1835_v27 = vadd.f32 1.0, %v1833_v23  ;;  %v1832_v30 = vmul.f32 0.3275911, %v1830_v29  ;;  %v1858_v54 = vsub.f32 0.0, %v1830_v29  ;;  %v1861_v34 = vmul.f32 %v1859_v32, %v1831_v26  ;;  %v16760_v32 = vld [vmem:[%s18626_s7 + $0x18] sm:$0xff] }
 0x68e   :  { %14975 = vmatpush3.msra.mxu1 %v16760_v32 }
 0x68f   :  { %16231 = vrcp.f32 %v1835_v27  ;;  %v1834_v31 = vadd.f32 1.0, %v1832_v30  ;;  %v1860_v35 = vmul.f32 %v1858_v54, %v1830_v29  ;;  %v1864_v38 = vmul.f32 1.442695, %v1861_v34  ;;  %v16765_v54 = vld [vmem:[%s18626_s7 + $0x38] sm:$0xff]  ;;  %14976 = vmatprep.subr.mxu1 %v16397_v33  ;;  %v16774_v34 = vld [vmem:[%s18626_s7 + $0x10] sm:$0xff] }
 0x690   :  { %14986 = vmatpush3.msra.mxu0 %v16765_v54  ;;  %14977 = vmatpush3.msra.mxu1 %v16774_v34 }
 0x691   :  { %16233 = vrcp.f32 %v1834_v31  ;;  %v1862_v55 = vmul.f32 1.442695, %v1860_v35  ;;  %14987 = vmatprep.subr.mxu0 %v16397_v33  ;;  %14978 = vmatprep.subr.mxu1 %v16397_v33  ;;  %v16788_v35 = vld [vmem:[%s18626_s7 + $0x8] sm:$0xff] }
 0x692   :  { %16235 = vpow2.f32 %v1864_v38  ;;  %14979 = vmatpush3.msra.mxu1 %v16788_v35  ;;  %v16802_v38 = vld [vmem:[%s18626_s7] sm:$0xff] }
 0x693   :  { %16237 = vpow2.f32 %v1862_v55  ;;  %14980 = vmatprep.subr.mxu1 %v16397_v33 }
 0x694   :  { %14981 = vmatpush3.msra.mxu1 %v16802_v38 }
 0x695   :  { %14996 = vmatprep.subr.mxu1 %v16397_v33 }
 0x69c   :  { %v16232_v36 = vpop.eup %16231 }
 0x69d   :  { %v1841_v51 = vmul.f32 1.0614054, %v16232_v36 }
 0x69e   :  { %v16234_v60 = vpop.eup %16233 }
 0x69f   :  { %v1843_v39 = vadd.f32 -1.4531521, %v1841_v51  ;;  %v1840_v1 = vmul.f32 1.0614054, %v16234_v60  ;;  %v16236_v53 = vpop.eup %16235  ;;  %v16793_v51 = vld [vmem:[%s18626_s7 + $0x28] sm:$0xff] }
 0x6a0   :  { %v16238_v59 = vpop.eup %16237 }
 0x6a1   :  { %v1845_v41 = vmul.f32 %v16232_v36, %v1843_v39  ;;  %v1842_v61 = vadd.f32 -1.4531521, %v1840_v1 }
 0x6a3   :  { %v1847_v43 = vadd.f32 1.4214138, %v1845_v41  ;;  %v1844_v2 = vmul.f32 %v16234_v60, %v1842_v61 }
 0x6a5   :  { %v1849_v6 = vmul.f32 %v16232_v36, %v1847_v43  ;;  %v1846_v44 = vadd.f32 1.4214138, %v1844_v2  ;;  %v1949_v43 = vld [vmem:[%s18629_s10] sm:$0x3f] }
 0x6a7   :  { %v1851_v45 = vadd.f32 -0.28449672, %v1849_v6  ;;  %v1848_v46 = vmul.f32 %v16234_v60, %v1846_v44  ;;  %v1980_v6 = vrot.slane %v1949_v43, %v16613_v40 }
 0x6a9   :  { %v1853_v47 = vmul.f32 %v16232_v36, %v1851_v45  ;;  %v1850_v48 = vadd.f32 -0.28449672, %v1848_v46  ;;  %v1986_v45 = vrot.slane %v1949_v43, %v16733_v13 }
 0x6ab   :  { %v1855_v49 = vadd.f32 0.2548296, %v1853_v47  ;;  %v1852_v50 = vmul.f32 %v16234_v60, %v1850_v48 }
 0x6ad   :  { %v1857_v52 = vmul.f32 %v16232_v36, %v1855_v49  ;;  %v1854_v56 = vadd.f32 0.2548296, %v1852_v50  ;;  %v16779_v36 = vld [vmem:[%s18626_s7 + $0x30] sm:$0xff]  ;;  %v1900_v49 = vld [vmem:[%s18626_s7 + $0x58] sm:$0xff] }
 0x6ae   :  { %14988 = vmatpush3.msra.mxu0 %v16779_v36  ;;  %v1904_v50 = vld [vmem:[%s18626_s7 + $0x78] sm:$0xff] }
 0x6af   :  { %v1867_v57 = vmul.f32 %v16236_v53, %v1857_v52  ;;  %v1856_v58 = vmul.f32 %v16234_v60, %v1854_v56  ;;  %14989 = vmatprep.subr.mxu0 %v16397_v33  ;;  %v16807_v60 = vld [vmem:[%s18626_s7 + $0x20] sm:$0xff]  ;;  %v1899_v52 = vld [vmem:[%s18626_s7 + $0x50] sm:$0xff]  ;;  %v1898_v56 = vld [vmem:[%s18626_s7 + $0x48] sm:$0xff] }
 0x6b0   :  { %14990 = vmatpush3.msra.mxu0 %v16793_v51  ;;  %v1903_v53 = vld [vmem:[%s18626_s7 + $0x70] sm:$0xff] }
 0x6b1   :  { %v1869_v62 = vsub.f32 1.0, %v1867_v57  ;;  %v1866_v63 = vmul.f32 %v16238_v59, %v1856_v58  ;;  %14991 = vmatprep.subr.mxu0 %v16397_v33  ;;  %v1902_v57 = vld [vmem:[%s18626_s7 + $0x68] sm:$0xff]  ;;  %v1897_v58 = vld [vmem:[%s18626_s7 + $0x40] sm:$0xff] }
 0x6b2   :  { %14992 = vmatpush3.msra.mxu0 %v16807_v60  ;;  %v1901_v59 = vld [vmem:[%s18626_s7 + $0x60] sm:$0xff] }
 0x6b3   :  { %v1873_v0 = vsub.f32 0.0, %v1869_v62  ;;  %v1868_v3 = vsub.f32 1.0, %v1866_v63  ;;  %15007 = vmatprep.subr.mxu0 %v16397_v33 }
 0x6b5   :  { %v1875_v4 = vsel %vm1871_vm9, %v1869_v62, %v1873_v0  ;;  %v1872_v7 = vsub.f32 0.0, %v1868_v3 }
 0x6b6   :  { %v1877_v8 = vadd.f32 1.0, %v1875_v4  ;;  %v1908_v4 = vld [vmem:[%s18626_s7 + $0x98] sm:$0xff] }
 0x6b7   :  { %v1874_v9 = vsel %vm1870_vm10, %v1868_v3, %v1872_v7  ;;  %v1907_v7 = vld [vmem:[%s18626_s7 + $0x90] sm:$0xff] }
 0x6b8   :  { %v1876_v15 = vadd.f32 1.0, %v1874_v9  ;;  %v1879_v16 = vmul.f32 %v1877_v8, %v1827_v12  ;;  %v1911_v8 = vld [vmem:[%s18626_s7 + $0xb0] sm:$0xff]  ;;  %v1906_v9 = vld [vmem:[%s18626_s7 + $0x88] sm:$0xff]  ;;  %v1909_v12 = vld [vmem:[%s18626_s7 + $0xa0] sm:$0xff] }
 0x6ba   :  { %v1878_v18 = vmul.f32 %v1876_v15, %v1826_v14  ;;  %v16745_v22 = vadd.f32 %v1885_v19, %v1879_v16  ;;  %v1916_v14 = vld [vmem:[%s18626_s7 + $0xd8] sm:$0xff]  ;;  %v1915_v16 = vld [vmem:[%s18626_s7 + $0xd0] sm:$0xff] }
 0x6bb   :  { %v1920_v15 = vld [vmem:[%s18626_s7 + $0xf8] sm:$0xff] }
 0x6bc   :  { %v16741_v20 = vadd.f32 %v1885_v19, %v1878_v18  ;;  %v1953_v24 = vsel %vm1286_vm8, %v16745_v22, 0.0  ;;  %v1919_v18 = vld [vmem:[%s18626_s7 + $0xf0] sm:$0xff]  ;;  %v1914_v19 = vld [vmem:[%s18626_s7 + $0xc8] sm:$0xff] }
 0x6be   :  { %v1950_v17 = vsel %vm1286_vm8, %v16741_v20, 0.0 }
 0x6bf   :  { %1951 = vadd.xlane.f32.xlu1 %v1950_v17  ;;  %v1918_v17 = vld [vmem:[%s18626_s7 + $0xe8] sm:$0xff] }
 0x6c3   :  { %1954 = vadd.xlane.f32.xlu1 %v1953_v24  ;;  %v1913_v24 = vld [vmem:[%s18626_s7 + $0xc0] sm:$0xff] }
 0x748   :  { %v1952_v42 = vpop.xlane.xlu1 %1951 }
 0x749   :  { %v1957_v21 = vmul.f32 0.03125, %v1952_v42  ;;  %v1917_v42 = vld [vmem:[%s18626_s7 + $0xe0] sm:$0xff] }
 0x74b   :  { %v1959_v25 = vsub.f32 %v16741_v20, %v1957_v21  ;;  %v1924_v21 = vld [vmem:[%s18626_s7 + $0x118] sm:$0xff] }
 0x74c   :  { %v1955_v26 = vpop.xlane.xlu1 %1954 }
 0x74d   :  { %v1958_v28 = vmul.f32 0.03125, %v1955_v26  ;;  %v1961_v23 = vmul.f32 %v1959_v25, %v1959_v25  ;;  %v1923_v26 = vld [vmem:[%s18626_s7 + $0x110] sm:$0xff] }
 0x74f   :  { %v16751_v29 = vsub.f32 %v16745_v22, %v1958_v28  ;;  %v1963_v27 = vsel %vm1286_vm8, %v1961_v23, 0.0  ;;  %v1927_v28 = vld [vmem:[%s18626_s7 + $0x130] sm:$0xff]  ;;  %v1922_v23 = vld [vmem:[%s18626_s7 + $0x108] sm:$0xff] }
 0x750   :  { %1964 = vadd.xlane.f32.xlu0 %v1963_v27  ;;  %v1921_v27 = vld [vmem:[%s18626_s7 + $0x100] sm:$0xff] }
 0x751   :  { %v1962_v30 = vmul.f32 %v16751_v29, %v16751_v29 }
 0x753   :  { %v1966_v31 = vsel %vm1286_vm8, %v1962_v30, 0.0  ;;  %v1925_v30 = vld [vmem:[%s18626_s7 + $0x120] sm:$0xff] }
 0x754   :  { %1967 = vadd.xlane.f32.xlu1 %v1966_v31  ;;  %v1932_v31 = vld [vmem:[%s18626_s7 + $0x158] sm:$0xff] }
 0x7d9   :  { %v1965_v39 = vpop.xlane.xlu0 %1964 }
 0x7da   :  { %v1969_v55 = vmul.f32 0.03125, %v1965_v39 }
 0x7dc   :  { %v1971_v1 = vadd.f32 1e-05, %v1969_v55 }
 0x7dd   :  { %v1968_v41 = vpop.xlane.xlu1 %1967 }
 0x7de   :  { %16239 = vrsqrt.f32 %v1971_v1  ;;  %v1970_v61 = vmul.f32 0.03125, %v1968_v41 }
 0x7e0   :  { %v1972_v2 = vadd.f32 1e-05, %v1970_v61 }
 0x7e2   :  { %16241 = vrsqrt.f32 %v1972_v2 }
 0x7eb   :  { %v16240_v44 = vpop.eup %16239 }
 0x7ec   :  { %v1975_v46 = vmul.f32 %v16240_v44, %v1959_v25  ;;  %v1928_v25 = vld [vmem:[%s18626_s7 + $0x138] sm:$0xff] }
 0x7ee   :  { %v1981_v47 = vmul.f32 %v1980_v6, %v1975_v46 }
 0x7ef   :  { %v16242_v62 = vpop.eup %16241 }
 0x7f0   :  { %v16818_v48 = vadd.f32 %v1986_v45, %v1981_v47  ;;  %v1976_v63 = vmul.f32 %v16242_v62, %v16751_v29  ;;  %v1926_v29 = vld [vmem:[%s18626_s7 + $0x128] sm:$0xff] }
 0x7f2   :  { %14983 = vmatmul.mubr.msk.f32.vlgmr.msra.gmra.mxu1 %vm1286_vm8, %v16818_v48  ;;  %14994 = vmatmul.mubr.msk.f32.vlgmr.msra.gmra.mxu0 %vm1286_vm8, %v16818_v48  ;;  %v1982_v0 = vmul.f32 %v1980_v6, %v1976_v63 }
 0x7f3   :  { %14997 = vmatpush3.msra.mxu1 %v1900_v49  ;;  %15008 = vmatpush3.msra.mxu0 %v1904_v50 }
 0x7f4   :  { %14998 = vmatprep.subr.mxu1 %v16397_v33  ;;  %15009 = vmatprep.subr.mxu0 %v16397_v33  ;;  %v16877_v3 = vadd.f32 %v1986_v45, %v1982_v0 }
 0x7f5   :  { %14999 = vmatpush3.msra.mxu1 %v1899_v52  ;;  %15010 = vmatpush3.msra.mxu0 %v1903_v53 }
 0x7f6   :  { %15000 = vmatprep.subr.mxu1 %v16397_v33  ;;  %15011 = vmatprep.subr.mxu0 %v16397_v33 }
 0x7f7   :  { %15001 = vmatpush3.msra.mxu1 %v1898_v56  ;;  %15012 = vmatpush3.msra.mxu0 %v1902_v57 }
 0x7f8   :  { %15002 = vmatprep.subr.mxu1 %v16397_v33  ;;  %15013 = vmatprep.subr.mxu0 %v16397_v33 }
 0x7f9   :  { %15003 = vmatpush3.msra.mxu1 %v1897_v58  ;;  %15004 = vmatprep.mubr.msk.f32.mxu1 %vm16398_vm3, %v16397_v33 }
 0x7fa   :  { %15014 = vmatpush3.msra.mxu0 %v1901_v59  ;;  %15015 = vmatprep.mubr.msk.f32.mxu0 %vm16398_vm3, %v16397_v33 }
 0x7fb   :  { %15005 = vmatmul.mubr.msk.f32.vlgmr.msra.gmra.mxu1 %vm1286_vm8, %v16818_v48  ;;  %15016 = vmatmul.mubr.msk.f32.vlgmr.msra.gmra.mxu0 %vm1286_vm8, %v16818_v48 }
 0x7fc   :  { %15018 = vmatprep.subr.mxu1 %v16397_v33  ;;  %15029 = vmatprep.subr.mxu0 %v16397_v33 }
 0x7fd   :  { %15019 = vmatpush3.msra.mxu1 %v16760_v32  ;;  %15030 = vmatpush3.msra.mxu0 %v16765_v54  ;;  %v1936_v32 = vld [vmem:[%s18626_s7 + $0x178] sm:$0xff]  ;;  %v1931_v54 = vld [vmem:[%s18626_s7 + $0x150] sm:$0xff] }
 0x7fe   :  { %15020 = vmatprep.subr.mxu1 %v16397_v33  ;;  %15031 = vmatprep.subr.mxu0 %v16397_v33 }
 0x7ff   :  { %15021 = vmatpush3.msra.mxu1 %v16774_v34  ;;  %15032 = vmatpush3.msra.mxu0 %v16779_v36  ;;  %v1935_v34 = vld [vmem:[%s18626_s7 + $0x170] sm:$0xff]  ;;  %v1930_v36 = vld [vmem:[%s18626_s7 + $0x148] sm:$0xff] }
 0x800   :  { %15022 = vmatprep.subr.mxu1 %v16397_v33  ;;  %15033 = vmatprep.subr.mxu0 %v16397_v33 }
 0x801   :  { %15023 = vmatpush3.msra.mxu1 %v16788_v35  ;;  %15034 = vmatpush3.msra.mxu0 %v16793_v51  ;;  %v1934_v35 = vld [vmem:[%s18626_s7 + $0x168] sm:$0xff]  ;;  %v1929_v51 = vld [vmem:[%s18626_s7 + $0x140] sm:$0xff] }
 0x802   :  { %15024 = vmatprep.subr.mxu1 %v16397_v33  ;;  %15035 = vmatprep.subr.mxu0 %v16397_v33 }
 0x803   :  { %15025 = vmatpush3.msra.mxu1 %v16802_v38  ;;  %15026 = vmatprep.mubr.msk.f32.mxu1 %vm16398_vm3, %v16397_v33  ;;  %v1933_v38 = vld [vmem:[%s18626_s7 + $0x160] sm:$0xff] }
 0x804   :  { %15036 = vmatpush3.msra.mxu0 %v16807_v60  ;;  %15037 = vmatprep.mubr.msk.f32.mxu0 %vm16398_vm3, %v16397_v33 }
 0x805   :  { %15027 = vmatmul.mubr.msk.f32.vlgmr.msra.gmra.mxu1 %vm1286_vm8, %v16877_v3  ;;  %15038 = vmatmul.mubr.msk.f32.vlgmr.msra.gmra.mxu0 %vm1286_vm8, %v16877_v3 }
 0x806   :  { %15040 = vmatprep.subr.mxu1 %v16397_v33  ;;  %15051 = vmatprep.subr.mxu0 %v16397_v33 }
 0x807   :  { %15041 = vmatpush3.msra.mxu1 %v1900_v49  ;;  %15052 = vmatpush3.msra.mxu0 %v1904_v50 }
 0x808   :  { %15042 = vmatprep.subr.mxu1 %v16397_v33  ;;  %15053 = vmatprep.subr.mxu0 %v16397_v33 }
 0x809   :  { %15043 = vmatpush3.msra.mxu1 %v1899_v52  ;;  %15054 = vmatpush3.msra.mxu0 %v1903_v53  ;;  %v13894_v52 = vld [vmem:[%s18627_s8] ss:$0 sm:$0xff] }
 0x80a   :  { %15044 = vmatprep.subr.mxu1 %v16397_v33  ;;  %15055 = vmatprep.subr.mxu0 %v16397_v33 }
 0x80b   :  { %15045 = vmatpush3.msra.mxu1 %v1898_v56  ;;  %15056 = vmatpush3.msra.mxu0 %v1902_v57  ;;  %v13895_v56 = vld [vmem:[%s18627_s8 + $0x1] ss:$0 sm:$0xff] }
 0x80c   :  { %15046 = vmatprep.subr.mxu1 %v16397_v33  ;;  %15057 = vmatprep.subr.mxu0 %v16397_v33 }
 0x80d   :  { %15047 = vmatpush3.msra.mxu1 %v1897_v58  ;;  %15048 = vmatprep.mubr.msk.f32.mxu1 %vm16398_vm3, %v16397_v33 }
 0x80e   :  { %15058 = vmatpush3.msra.mxu0 %v1901_v59  ;;  %15059 = vmatprep.mubr.msk.f32.mxu0 %vm16398_vm3, %v16397_v33 }
 0x80f   :  { %15049 = vmatmul.mubr.msk.f32.vlgmr.msra.gmra.mxu1 %vm1286_vm8, %v16877_v3  ;;  %15060 = vmatmul.mubr.msk.f32.vlgmr.msra.gmra.mxu0 %vm1286_vm8, %v16877_v3 }
 0x810   :  { %15062 = vmatprep.subr.mxu1 %v16397_v33  ;;  %15073 = vmatprep.subr.mxu0 %v16397_v33 }
 0x811   :  { %15063 = vmatpush3.msra.mxu1 %v1908_v4  ;;  %15074 = vmatpush3.msra.mxu0 %v1912_v5 }
 0x812   :  { %15064 = vmatprep.subr.mxu1 %v16397_v33  ;;  %15075 = vmatprep.subr.mxu0 %v16397_v33 }
 0x813   :  { %15065 = vmatpush3.msra.mxu1 %v1907_v7  ;;  %15076 = vmatpush3.msra.mxu0 %v1911_v8 }
 0x814   :  { %15066 = vmatprep.subr.mxu1 %v16397_v33  ;;  %15077 = vmatprep.subr.mxu0 %v16397_v33 }
 0x815   :  { %15067 = vmatpush3.msra.mxu1 %v1906_v9  ;;  %15078 = vmatpush3.msra.mxu0 %v1910_v10 }
 0x816   :  { %15068 = vmatprep.subr.mxu1 %v16397_v33  ;;  %15079 = vmatprep.subr.mxu0 %v16397_v33 }
 0x817   :  { %15069 = vmatpush3.msra.mxu1 %v1905_v11  ;;  %15070 = vmatprep.mubr.msk.f32.mxu1 %vm16398_vm3, %v16397_v33 }
 0x818   :  { %15080 = vmatpush3.msra.mxu0 %v1909_v12  ;;  %15081 = vmatprep.mubr.msk.f32.mxu0 %vm16398_vm3, %v16397_v33 }
 0x819   :  { %15071 = vmatmul.mubr.msk.f32.vlgmr.msra.gmra.mxu1 %vm1286_vm8, %v16818_v48  ;;  %15082 = vmatmul.mubr.msk.f32.vlgmr.msra.gmra.mxu0 %vm1286_vm8, %v16818_v48 }
 0x81a   :  { %15084 = vmatprep.subr.mxu1 %v16397_v33  ;;  %15095 = vmatprep.subr.mxu0 %v16397_v33 }
 0x81b   :  { %15085 = vmatpush3.msra.mxu1 %v1916_v14  ;;  %15096 = vmatpush3.msra.mxu0 %v1920_v15 }
 0x81c   :  { %15086 = vmatprep.subr.mxu1 %v16397_v33  ;;  %15097 = vmatprep.subr.mxu0 %v16397_v33 }
 0x81d   :  { %15087 = vmatpush3.msra.mxu1 %v1915_v16  ;;  %15098 = vmatpush3.msra.mxu0 %v1919_v18 }
 0x81e   :  { %15088 = vmatprep.subr.mxu1 %v16397_v33  ;;  %15099 = vmatprep.subr.mxu0 %v16397_v33 }
 0x81f   :  { %15089 = vmatpush3.msra.mxu1 %v1914_v19  ;;  %15100 = vmatpush3.msra.mxu0 %v1918_v17 }
 0x820   :  { %15090 = vmatprep.subr.mxu1 %v16397_v33  ;;  %15101 = vmatprep.subr.mxu0 %v16397_v33 }
 0x821   :  { %15091 = vmatpush3.msra.mxu1 %v1913_v24  ;;  %15092 = vmatprep.mubr.msk.f32.mxu1 %vm16398_vm3, %v16397_v33 }
 0x822   :  { %15102 = vmatpush3.msra.mxu0 %v1917_v42  ;;  %15103 = vmatprep.mubr.msk.f32.mxu0 %vm16398_vm3, %v16397_v33 }
 0x823   :  { %15093 = vmatmul.mubr.msk.f32.vlgmr.msra.gmra.mxu1 %vm1286_vm8, %v16818_v48  ;;  %15104 = vmatmul.mubr.msk.f32.vlgmr.msra.gmra.mxu0 %vm1286_vm8, %v16818_v48 }
 0x824   :  { %15106 = vmatprep.subr.mxu1 %v16397_v33  ;;  %15117 = vmatprep.subr.mxu0 %v16397_v33 }
 0x825   :  { %15107 = vmatpush3.msra.mxu1 %v1908_v4  ;;  %15118 = vmatpush3.msra.mxu0 %v1912_v5  ;;  %v13897_v4 = vld [vmem:[%s18627_s8 + $0x3] ss:$0 sm:$0xff] }
 0x826   :  { %15108 = vmatprep.subr.mxu1 %v16397_v33  ;;  %15119 = vmatprep.subr.mxu0 %v16397_v33 }
 0x827   :  { %15109 = vmatpush3.msra.mxu1 %v1907_v7  ;;  %15120 = vmatpush3.msra.mxu0 %v1911_v8 }
 0x828   :  { %15110 = vmatprep.subr.mxu1 %v16397_v33  ;;  %15121 = vmatprep.subr.mxu0 %v16397_v33 }
 0x829   :  { %15111 = vmatpush3.msra.mxu1 %v1906_v9  ;;  %15122 = vmatpush3.msra.mxu0 %v1910_v10 }
 0x82a   :  { %15112 = vmatprep.subr.mxu1 %v16397_v33  ;;  %15123 = vmatprep.subr.mxu0 %v16397_v33 }
 0x82b   :  { %15113 = vmatpush3.msra.mxu1 %v1905_v11  ;;  %15114 = vmatprep.mubr.msk.f32.mxu1 %vm16398_vm3, %v16397_v33 }
 0x82c   :  { %15124 = vmatpush3.msra.mxu0 %v1909_v12  ;;  %15125 = vmatprep.mubr.msk.f32.mxu0 %vm16398_vm3, %v16397_v33 }
 0x82d   :  { %15115 = vmatmul.mubr.msk.f32.vlgmr.msra.gmra.mxu1 %vm1286_vm8, %v16877_v3  ;;  %15126 = vmatmul.mubr.msk.f32.vlgmr.msra.gmra.mxu0 %vm1286_vm8, %v16877_v3 }
 0x82e   :  { %15128 = vmatprep.subr.mxu1 %v16397_v33  ;;  %15139 = vmatprep.subr.mxu0 %v16397_v33 }
 0x82f   :  { %15129 = vmatpush3.msra.mxu1 %v1916_v14  ;;  %15140 = vmatpush3.msra.mxu0 %v1920_v15 }
 0x830   :  { %15130 = vmatprep.subr.mxu1 %v16397_v33  ;;  %15141 = vmatprep.subr.mxu0 %v16397_v33 }
 0x831   :  { %15131 = vmatpush3.msra.mxu1 %v1915_v16  ;;  %15142 = vmatpush3.msra.mxu0 %v1919_v18 }
 0x832   :  { %15132 = vmatprep.subr.mxu1 %v16397_v33  ;;  %15143 = vmatprep.subr.mxu0 %v16397_v33 }
 0x833   :  { %15133 = vmatpush3.msra.mxu1 %v1914_v19  ;;  %15144 = vmatpush3.msra.mxu0 %v1918_v17 }
 0x834   :  { %15134 = vmatprep.subr.mxu1 %v16397_v33  ;;  %15145 = vmatprep.subr.mxu0 %v16397_v33 }
 0x835   :  { %15135 = vmatpush3.msra.mxu1 %v1913_v24  ;;  %15136 = vmatprep.mubr.msk.f32.mxu1 %vm16398_vm3, %v16397_v33 }
 0x836   :  { %15146 = vmatpush3.msra.mxu0 %v1917_v42  ;;  %15147 = vmatprep.mubr.msk.f32.mxu0 %vm16398_vm3, %v16397_v33 }
 0x837   :  { %15137 = vmatmul.mubr.msk.f32.vlgmr.msra.gmra.mxu1 %vm1286_vm8, %v16877_v3  ;;  %15148 = vmatmul.mubr.msk.f32.vlgmr.msra.gmra.mxu0 %vm1286_vm8, %v16877_v3 }
 0x838   :  { %15150 = vmatprep.subr.mxu1 %v16397_v33  ;;  %15161 = vmatprep.subr.mxu0 %v16397_v33 }
 0x839   :  { %15151 = vmatpush3.msra.mxu1 %v1924_v21  ;;  %15162 = vmatpush3.msra.mxu0 %v1928_v25 }
 0x83a   :  { %15152 = vmatprep.subr.mxu1 %v16397_v33  ;;  %15163 = vmatprep.subr.mxu0 %v16397_v33 }
 0x83b   :  { %15153 = vmatpush3.msra.mxu1 %v1923_v26  ;;  %15164 = vmatpush3.msra.mxu0 %v1927_v28 }
 0x83c   :  { %15154 = vmatprep.subr.mxu1 %v16397_v33  ;;  %15165 = vmatprep.subr.mxu0 %v16397_v33 }
 0x83d   :  { %15155 = vmatpush3.msra.mxu1 %v1922_v23  ;;  %15166 = vmatpush3.msra.mxu0 %v1926_v29 }
 0x83e   :  { %15156 = vmatprep.subr.mxu1 %v16397_v33  ;;  %15167 = vmatprep.subr.mxu0 %v16397_v33 }
 0x83f   :  { %15157 = vmatpush3.msra.mxu1 %v1921_v27  ;;  %15158 = vmatprep.mubr.msk.f32.mxu1 %vm16398_vm3, %v16397_v33 }
 0x840   :  { %15168 = vmatpush3.msra.mxu0 %v1925_v30  ;;  %15169 = vmatprep.mubr.msk.f32.mxu0 %vm16398_vm3, %v16397_v33 }
 0x841   :  { %15159 = vmatmul.mubr.msk.f32.vlgmr.msra.gmra.mxu1 %vm1286_vm8, %v16818_v48  ;;  %15170 = vmatmul.mubr.msk.f32.vlgmr.msra.gmra.mxu0 %vm1286_vm8, %v16818_v48 }
 0x842   :  { %15172 = vmatprep.subr.mxu1 %v16397_v33  ;;  %15183 = vmatprep.subr.mxu0 %v16397_v33 }
 0x843   :  { %15173 = vmatpush3.msra.mxu1 %v1932_v31  ;;  %15184 = vmatpush3.msra.mxu0 %v1936_v32 }
 0x844   :  { %15174 = vmatprep.subr.mxu1 %v16397_v33  ;;  %15185 = vmatprep.subr.mxu0 %v16397_v33 }
 0x845   :  { %15175 = vmatpush3.msra.mxu1 %v1931_v54  ;;  %15186 = vmatpush3.msra.mxu0 %v1935_v34 }
 0x846   :  { %15176 = vmatprep.subr.mxu1 %v16397_v33  ;;  %15187 = vmatprep.subr.mxu0 %v16397_v33 }
 0x847   :  { %15177 = vmatpush3.msra.mxu1 %v1930_v36  ;;  %15188 = vmatpush3.msra.mxu0 %v1934_v35 }
 0x848   :  { %15178 = vmatprep.subr.mxu1 %v16397_v33  ;;  %15189 = vmatprep.subr.mxu0 %v16397_v33 }
 0x849   :  { %15179 = vmatpush3.msra.mxu1 %v1929_v51  ;;  %15180 = vmatprep.mubr.msk.f32.mxu1 %vm16398_vm3, %v16397_v33 }
 0x84a   :  { %15190 = vmatpush3.msra.mxu0 %v1933_v38  ;;  %15191 = vmatprep.mubr.msk.f32.mxu0 %vm16398_vm3, %v16397_v33 }
 0x84b   :  { %15181 = vmatmul.mubr.msk.f32.vlgmr.msra.gmra.mxu1 %vm1286_vm8, %v16818_v48  ;;  %15192 = vmatmul.mubr.msk.f32.vlgmr.msra.gmra.mxu0 %vm1286_vm8, %v16818_v48 }
 0x84c   :  { %15194 = vmatprep.subr.mxu1 %v16397_v33  ;;  %15205 = vmatprep.subr.mxu0 %v16397_v33 }
 0x84d   :  { %15195 = vmatpush3.msra.mxu1 %v1924_v21  ;;  %15206 = vmatpush3.msra.mxu0 %v1928_v25 }
 0x84e   :  { %15196 = vmatprep.subr.mxu1 %v16397_v33  ;;  %15207 = vmatprep.subr.mxu0 %v16397_v33 }
 0x84f   :  { %15197 = vmatpush3.msra.mxu1 %v1923_v26  ;;  %15208 = vmatpush3.msra.mxu0 %v1927_v28 }
 0x850   :  { %15198 = vmatprep.subr.mxu1 %v16397_v33  ;;  %15209 = vmatprep.subr.mxu0 %v16397_v33 }
 0x851   :  { %15199 = vmatpush3.msra.mxu1 %v1922_v23  ;;  %15210 = vmatpush3.msra.mxu0 %v1926_v29 }
 0x852   :  { %15200 = vmatprep.subr.mxu1 %v16397_v33  ;;  %15211 = vmatprep.subr.mxu0 %v16397_v33 }
 0x853   :  { %15201 = vmatpush3.msra.mxu1 %v1921_v27  ;;  %15202 = vmatprep.mubr.msk.f32.mxu1 %vm16398_vm3, %v16397_v33 }
 0x854   :  { %15212 = vmatpush3.msra.mxu0 %v1925_v30  ;;  %15213 = vmatprep.mubr.msk.f32.mxu0 %vm16398_vm3, %v16397_v33 }
 0x855   :  { %15203 = vmatmul.mubr.msk.f32.vlgmr.msra.gmra.mxu1 %vm1286_vm8, %v16877_v3  ;;  %15214 = vmatmul.mubr.msk.f32.vlgmr.msra.gmra.mxu0 %vm1286_vm8, %v16877_v3 }
 0x856   :  { %15216 = vmatprep.subr.mxu1 %v16397_v33  ;;  %15227 = vmatprep.subr.mxu0 %v16397_v33 }
 0x857   :  { %15217 = vmatpush3.msra.mxu1 %v1932_v31  ;;  %15228 = vmatpush3.msra.mxu0 %v1936_v32 }
 0x858   :  { %15218 = vmatprep.subr.mxu1 %v16397_v33  ;;  %15229 = vmatprep.subr.mxu0 %v16397_v33 }
 0x859   :  { %15219 = vmatpush3.msra.mxu1 %v1931_v54  ;;  %15230 = vmatpush3.msra.mxu0 %v1935_v34  ;;  %v13914_v54 = vld [vmem:[%s18627_s8 + $0x4] ss:$0 sm:$0xff]  ;;  %v13915_v34 = vld [vmem:[%s18627_s8 + $0x5] ss:$0 sm:$0xff] }
 0x85a   :  { %15220 = vmatprep.subr.mxu1 %v16397_v33  ;;  %15231 = vmatprep.subr.mxu0 %v16397_v33 }
 0x85b   :  { %15221 = vmatpush3.msra.mxu1 %v1930_v36  ;;  %15232 = vmatpush3.msra.mxu0 %v1934_v35 }
 0x85c   :  { %15222 = vmatprep.subr.mxu1 %v16397_v33  ;;  %15233 = vmatprep.subr.mxu0 %v16397_v33 }
 0x85d   :  { %15223 = vmatpush3.msra.mxu1 %v1929_v51  ;;  %15224 = vmatprep.mubr.msk.f32.mxu1 %vm16398_vm3, %v16397_v33 }
 0x85e   :  { %15234 = vmatpush3.msra.mxu0 %v1933_v38  ;;  %15235 = vmatprep.mubr.msk.f32.mxu0 %vm16398_vm3, %v16397_v33 }
 0x85f   :  { %15225 = vmatmul.mubr.msk.f32.vlgmr.msra.gmra.mxu1 %vm1286_vm8, %v16877_v3  ;;  %15236 = vmatmul.mubr.msk.f32.vlgmr.msra.gmra.mxu0 %vm1286_vm8, %v16877_v3  ;;  %v13896_v3 = vld [vmem:[%s18627_s8 + $0x2] ss:$0 sm:$0xff] }
 0x860   :  { %15238 = vmatprep.subr.mxu1 %v16397_v33  ;;  %15240 = vmatprep.mubr.msk.f32.mxu1 %vm16398_vm3, %v16397_v33 }
 0x861   :  { %15248 = vmatprep.subr.mxu0 %v16397_v33  ;;  %15250 = vmatprep.mubr.msk.f32.mxu0 %vm16398_vm3, %v16397_v33 }
 0x8b2   :  { %v2082_v60 = vpop.f32.mrf.mxu1  ;;  %v2152_v39 = vpop.f32.mrf.mxu0 }
 0x8b3   :  { %v2083_v53 = vadd.f32 %v13894_v52, %v2082_v60  ;;  %v2153_v62 = vadd.f32 %v13895_v56, %v2152_v39 }
 0x8b4   :  { %v14984_v55 = vpop.f32.mrf.mxu1  ;;  %v14995_v1 = vpop.f32.mrf.mxu0 }
 0x8b5   :  { %v2579_v59 = vmul.f32 0.35355338, %v2083_v53  ;;  %v2580_v5 = vmul.f32 0.35355338, %v2153_v62 }
 0x8bb   :  { %v2222_v41 = vpop.f32.mrf.mxu1  ;;  %v2292_v61 = vpop.f32.mrf.mxu0 }
 0x8bc   :  { %v2223_v7 = vadd.f32 %v13896_v3, %v2222_v41  ;;  %v2293_v8 = vadd.f32 %v13897_v4, %v2292_v61 }
 0x8bd   :  { %v15006_v43 = vpop.f32.mrf.mxu1  ;;  %v15017_v2 = vpop.f32.mrf.mxu0 }
 0x8be   :  { %v2581_v11 = vmul.f32 0.35355338, %v2223_v7  ;;  %v2582_v12 = vmul.f32 0.35355338, %v2293_v8 }
 0x8c5   :  { %v2365_v6 = vpop.f32.mrf.mxu1  ;;  %v2435_v44 = vpop.f32.mrf.mxu0 }
 0x8c6   :  { %v2366_v16 = vadd.f32 %v13894_v52, %v2365_v6  ;;  %v2436_v18 = vadd.f32 %v13895_v56, %v2435_v44 }
 0x8c7   :  { %v15028_v45 = vpop.f32.mrf.mxu1  ;;  %v15039_v46 = vpop.f32.mrf.mxu0 }
 0x8c8   :  { %v2583_v24 = vmul.f32 0.35355338, %v2366_v16  ;;  %v2584_v42 = vmul.f32 0.35355338, %v2436_v18 }
 0x8cf   :  { %v2505_v47 = vpop.f32.mrf.mxu1  ;;  %v2575_v48 = vpop.f32.mrf.mxu0 }
 0x8d0   :  { %v2506_v26 = vadd.f32 %v13896_v3, %v2505_v47  ;;  %v2576_v28 = vadd.f32 %v13897_v4, %v2575_v48 }
 0x8d1   :  { %v15050_v49 = vpop.f32.mrf.mxu1  ;;  %v15061_v50 = vpop.f32.mrf.mxu0 }
 0x8d2   :  { %v2585_v27 = vmul.f32 0.35355338, %v2506_v26  ;;  %v2586_v30 = vmul.f32 0.35355338, %v2576_v28 }
 0x8d9   :  { %v2653_v57 = vpop.f32.mrf.mxu1  ;;  %v2723_v58 = vpop.f32.mrf.mxu0 }
 0x8da   :  { %15239 = vmatpush3.xpose.msk.msra.mxu1 %vm195_vm1, %v2653_v57 }
 0x8db   :  { %v15072_v63 = vpop.f32.mrf.mxu1  ;;  %v15083_v0 = vpop.f32.mrf.mxu0  ;;  %15243 = vmatprep.subr.mxu1 %v16397_v33 }
 0x8dd   :  { %15241 = vmatmul.mubr.msk.f32.vlgmr.msra.gmra.mxu1 %vm195_vm1, %v2579_v59 }
 0x8de   :  { %15244 = vmatpush3.xpose.msk.msra.mxu1 %vm195_vm1, %v2723_v58  ;;  %15245 = vmatprep.mubr.msk.f32.mxu1 %vm16398_vm3, %v16397_v33 }
 0x8df   :  { %15253 = vmatprep.subr.mxu1 %v16397_v33 }
 0x8e1   :  { %15246 = vmatmul.mubr.msk.f32.vlgmr.msra.gmra.mxu1 %vm195_vm1, %v2580_v5 }
 0x8e2   :  { %15255 = vmatprep.mubr.msk.f32.mxu1 %vm16398_vm3, %v16397_v33 }
 0x8e3   :  { %v2793_v9 = vpop.f32.mrf.mxu1  ;;  %v2863_v10 = vpop.f32.mrf.mxu0 }
 0x8e4   :  { %15249 = vmatpush3.xpose.msk.msra.mxu0 %vm195_vm1, %v2793_v9  ;;  %15254 = vmatpush3.xpose.msk.msra.mxu1 %vm195_vm1, %v2863_v10 }
 0x8e5   :  { %v15094_v14 = vpop.f32.mrf.mxu1  ;;  %v15105_v15 = vpop.f32.mrf.mxu0  ;;  %15258 = vmatprep.subr.mxu0 %v16397_v33  ;;  %15263 = vmatprep.subr.mxu1 %v16397_v33 }
 0x8e7   :  { %15251 = vmatmul.mubr.msk.f32.vlgmr.msra.gmra.mxu0 %vm195_vm1, %v2581_v11  ;;  %15256 = vmatmul.mubr.msk.f32.vlgmr.msra.gmra.mxu1 %vm195_vm1, %v2582_v12 }
 0x8e8   :  { %15260 = vmatprep.mubr.msk.f32.mxu0 %vm16398_vm3, %v16397_v33  ;;  %15265 = vmatprep.mubr.msk.f32.mxu1 %vm16398_vm3, %v16397_v33 }
 0x8ed   :  { %v2933_v19 = vpop.f32.mrf.mxu1  ;;  %v3003_v17 = vpop.f32.mrf.mxu0 }
 0x8ee   :  { %15259 = vmatpush3.xpose.msk.msra.mxu0 %vm195_vm1, %v2933_v19  ;;  %15264 = vmatpush3.xpose.msk.msra.mxu1 %vm195_vm1, %v3003_v17 }
 0x8ef   :  { %v15116_v21 = vpop.f32.mrf.mxu1  ;;  %v15127_v25 = vpop.f32.mrf.mxu0  ;;  %15268 = vmatprep.subr.mxu0 %v16397_v33  ;;  %15273 = vmatprep.subr.mxu1 %v16397_v33 }
 0x8f1   :  { %15261 = vmatmul.mubr.msk.f32.vlgmr.msra.gmra.mxu0 %vm195_vm1, %v2583_v24  ;;  %15266 = vmatmul.mubr.msk.f32.vlgmr.msra.gmra.mxu1 %vm195_vm1, %v2584_v42 }
 0x8f2   :  { %15270 = vmatprep.mubr.msk.f32.mxu0 %vm16398_vm3, %v16397_v33  ;;  %15275 = vmatprep.mubr.msk.f32.mxu1 %vm16398_vm3, %v16397_v33 }
 0x8f7   :  { %v3073_v23 = vpop.f32.mrf.mxu1  ;;  %v3143_v29 = vpop.f32.mrf.mxu0 }
 0x8f8   :  { %15269 = vmatpush3.xpose.msk.msra.mxu0 %vm195_vm1, %v3073_v23  ;;  %15274 = vmatpush3.xpose.msk.msra.mxu1 %vm195_vm1, %v3143_v29 }
 0x8f9   :  { %v15138_v31 = vpop.f32.mrf.mxu1  ;;  %v15149_v32 = vpop.f32.mrf.mxu0  ;;  %15278 = vmatprep.subr.mxu0 %v16397_v33  ;;  %15283 = vmatprep.subr.mxu1 %v16397_v33 }
 0x8fb   :  { %15271 = vmatmul.mubr.msk.f32.vlgmr.msra.gmra.mxu0 %vm195_vm1, %v2585_v27  ;;  %15276 = vmatmul.mubr.msk.f32.vlgmr.msra.gmra.mxu1 %vm195_vm1, %v2586_v30 }
 0x8fc   :  { %15280 = vmatprep.mubr.msk.f32.mxu0 %vm16398_vm3, %v16397_v33  ;;  %15285 = vmatprep.mubr.msk.f32.mxu1 %vm16398_vm3, %v16397_v33 }
 0x901   :  { %v3237_v36 = vpop.f32.mrf.mxu1  ;;  %v3307_v35 = vpop.f32.mrf.mxu0 }
 0x902   :  { %v3238_v51 = vadd.f32 %v13914_v54, %v3237_v36  ;;  %v3308_v38 = vadd.f32 %v13915_v34, %v3307_v35 }
 0x903   :  { %v15160_v60 = vpop.f32.mrf.mxu1  ;;  %v15171_v39 = vpop.f32.mrf.mxu0 }
 0x904   :  { %15279 = vmatpush3.msra.mxu0 %v3238_v51  ;;  %15284 = vmatpush3.msra.mxu1 %v3308_v38 }
 0x905   :  { %15288 = vmatprep.subr.mxu0 %v16397_v33  ;;  %15293 = vmatprep.subr.mxu1 %v16397_v33 }
 0x90b   :  { %v17195_v55 = vpop.f32.mrf.mxu1  ;;  %v17197_v1 = vpop.f32.mrf.mxu0 }
 0x90d   :  { %v15182_v41 = vpop.f32.mrf.mxu1  ;;  %v15193_v61 = vpop.f32.mrf.mxu0 }
 0x915   :  { %v3517_v43 = vpop.f32.mrf.mxu1  ;;  %v3587_v2 = vpop.f32.mrf.mxu0 }
 0x916   :  { %v17199_v6 = vadd.f32 %v13914_v54, %v3517_v43  ;;  %v17201_v44 = vadd.f32 %v13915_v34, %v3587_v2 }
 0x917   :  { %v15204_v45 = vpop.f32.mrf.mxu1  ;;  %v15215_v46 = vpop.f32.mrf.mxu0 }
 0x91f   :  { %v17203_v47 = vpop.f32.mrf.mxu1  ;;  %v17205_v48 = vpop.f32.mrf.mxu0 }
 0x921   :  { %v15226_v49 = vpop.f32.mrf.mxu1  ;;  %v15237_v50 = vpop.f32.mrf.mxu0 }
 0x99d   :  { %v3803_v52 = vpop.f32.mrf.mxu1 }
 0x99e   :  { %v4339_v53 = vsel %vm195_vm1, %v3803_v52, -inf }
 0x99f   :  { %4340 = vmax.xlane.f32.xlu0 %v4339_v53  ;;  %v15242_v56 = vpop.f32.mrf.mxu1 }
 0x9a1   :  { %v3879_v57 = vpop.f32.mrf.mxu1 }
 0x9a2   :  { %v4342_v58 = vsel %vm195_vm1, %v3879_v57, -inf }
 0x9a3   :  { %4343 = vmax.xlane.f32.xlu1 %v4342_v58  ;;  %v15247_v59 = vpop.f32.mrf.mxu1 }
 0x9a7   :  { %v3955_v62 = vpop.f32.mrf.mxu0  ;;  %v4031_v63 = vpop.f32.mrf.mxu1 }
 0x9a8   :  { %v4345_v0 = vsel %vm195_vm1, %v3955_v62, -inf  ;;  %v4348_v3 = vsel %vm195_vm1, %v4031_v63, -inf }
 0x9a9   :  { %v15252_v4 = vpop.f32.mrf.mxu0  ;;  %4346 = vmax.xlane.f32.xlu0 %v4345_v0  ;;  %4349 = vmax.xlane.f32.xlu1 %v4348_v3  ;;  %v15257_v5 = vpop.f32.mrf.mxu1 }
 0x9b1   :  { %v4107_v7 = vpop.f32.mrf.mxu0  ;;  %v4183_v8 = vpop.f32.mrf.mxu1 }
 0x9b2   :  { %v4351_v9 = vsel %vm195_vm1, %v4107_v7, -inf  ;;  %v4354_v10 = vsel %vm195_vm1, %v4183_v8, -inf }
 0x9b3   :  { %v15262_v11 = vpop.f32.mrf.mxu0  ;;  %4352 = vmax.xlane.f32.xlu0 %v4351_v9  ;;  %4355 = vmax.xlane.f32.xlu1 %v4354_v10  ;;  %v15267_v12 = vpop.f32.mrf.mxu1 }
 0x9b4   :  { %v13916_v11 = vld [vmem:[%s18627_s8 + $0x6] ss:$0 sm:$0xff] }
 0x9bb   :  { %v4259_v14 = vpop.f32.mrf.mxu0  ;;  %v4335_v15 = vpop.f32.mrf.mxu1 }
 0x9bc   :  { %v4357_v16 = vsel %vm195_vm1, %v4259_v14, -inf  ;;  %v4360_v18 = vsel %vm195_vm1, %v4335_v15, -inf }
 0x9bd   :  { %v15272_v19 = vpop.f32.mrf.mxu0  ;;  %4358 = vmax.xlane.f32.xlu0 %v4357_v16  ;;  %4361 = vmax.xlane.f32.xlu1 %v4360_v18  ;;  %v15277_v17 = vpop.f32.mrf.mxu1  ;;  %v13917_v16 = vld [vmem:[%s18627_s8 + $0x7] ss:$0 sm:$0xff] }
 0x9be   :  { %v3448_v17 = vadd.f32 %v13917_v16, %v17197_v1 }
 0xa28   :  { %v4341_v24 = vpop.xlane.xlu0 %4340 }
 0xa29   :  { %v4363_v42 = vsub.f32 %v3803_v52, %v4341_v24 }
 0xa2b   :  { %v4371_v21 = vmul.f32 1.442695, %v4363_v42 }
 0xa2c   :  { %v4344_v25 = vpop.xlane.xlu1 %4343 }
 0xa2d   :  { %16243 = vpow2.f32 %v4371_v21  ;;  %v4364_v26 = vsub.f32 %v3879_v57, %v4344_v25 }
 0xa2f   :  { %v4373_v28 = vmul.f32 1.442695, %v4364_v26 }
 0xa31   :  { %16245 = vpow2.f32 %v4373_v28 }
 0xa32   :  { %v4347_v23 = vpop.xlane.xlu0 %4346  ;;  %v4350_v29 = vpop.xlane.xlu1 %4349 }
 0xa33   :  { %v4365_v27 = vsub.f32 %v3955_v62, %v4347_v23  ;;  %v4366_v30 = vsub.f32 %v4031_v63, %v4350_v29 }
 0xa35   :  { %v4375_v31 = vmul.f32 1.442695, %v4365_v27  ;;  %v4377_v32 = vmul.f32 1.442695, %v4366_v30  ;;  %v3728_v30 = vadd.f32 %v13917_v16, %v17205_v48 }
 0xa37   :  { %16247 = vpow2.f32 %v4375_v31 }
 0xa38   :  { %16249 = vpow2.f32 %v4377_v32 }
 0xa3a   :  { %v16244_v54 = vpop.eup %16243 }
 0xa3b   :  { %v4387_v34 = vsel %vm195_vm1, %v16244_v54, 0.0 }
 0xa3c   :  { %v4353_v36 = vpop.xlane.xlu0 %4352  ;;  %v4356_v35 = vpop.xlane.xlu1 %4355  ;;  %4388 = vadd.xlane.f32.xlu0 %v4387_v34  ;;  %v1946_v34 = vld [vmem:[%s18628_s9 + $0x8] sm:$0xff] }
 0xa3d   :  { %v4367_v51 = vsub.f32 %v4107_v7, %v4353_v36  ;;  %v4368_v38 = vsub.f32 %v4183_v8, %v4356_v35  ;;  %v1947_v36 = vld [vmem:[%s18628_s9 + $0x10] sm:$0xff] }
 0xa3e   :  { %v16246_v60 = vpop.eup %16245 }
 0xa3f   :  { %v4379_v39 = vmul.f32 1.442695, %v4367_v51  ;;  %v4381_v41 = vmul.f32 1.442695, %v4368_v38  ;;  %v4390_v61 = vsel %vm195_vm1, %v16246_v60, 0.0  ;;  %v1948_v38 = vld [vmem:[%s18628_s9 + $0x18] sm:$0xff] }
 0xa40   :  { %4391 = vadd.xlane.f32.xlu1 %v4390_v61 }
 0xa41   :  { %16251 = vpow2.f32 %v4379_v39 }
 0xa42   :  { %16253 = vpow2.f32 %v4381_v41 }
 0xa44   :  { %v16248_v43 = vpop.eup %16247 }
 0xa45   :  { %v16250_v2 = vpop.eup %16249  ;;  %v4393_v45 = vsel %vm195_vm1, %v16248_v43, 0.0 }
 0xa46   :  { %v4359_v46 = vpop.xlane.xlu0 %4358  ;;  %v4362_v49 = vpop.xlane.xlu1 %4361  ;;  %4394 = vadd.xlane.f32.xlu0 %v4393_v45  ;;  %v4396_v50 = vsel %vm195_vm1, %v16250_v2, 0.0 }
 0xa47   :  { %v4369_v52 = vsub.f32 %v4259_v14, %v4359_v46  ;;  %v4370_v53 = vsub.f32 %v4335_v15, %v4362_v49  ;;  %4397 = vadd.xlane.f32.xlu1 %v4396_v50  ;;  %v3378_v15 = vadd.f32 %v13916_v11, %v17195_v55 }
 0xa49   :  { %v4383_v56 = vmul.f32 1.442695, %v4369_v52  ;;  %v4385_v57 = vmul.f32 1.442695, %v4370_v53 }
 0xa4b   :  { %16255 = vpow2.f32 %v4383_v56 }
 0xa4c   :  { %16257 = vpow2.f32 %v4385_v57 }
 0xa4e   :  { %v16252_v58 = vpop.eup %16251 }
 0xa4f   :  { %v16254_v59 = vpop.eup %16253  ;;  %v4399_v62 = vsel %vm195_vm1, %v16252_v58, 0.0 }
 0xa50   :  { %4400 = vadd.xlane.f32.xlu0 %v4399_v62  ;;  %v4402_v63 = vsel %vm195_vm1, %v16254_v59, 0.0 }
 0xa51   :  { %4403 = vadd.xlane.f32.xlu1 %v4402_v63 }
 0xa58   :  { %v17221_v0 = vpop.eup %16255 }
 0xa59   :  { %v17223_v3 = vpop.eup %16257  ;;  %v4405_v4 = vsel %vm195_vm1, %v17221_v0, 0.0 }
 0xa5a   :  { %4406 = vadd.xlane.f32.xlu0 %v4405_v4  ;;  %v4408_v5 = vsel %vm195_vm1, %v17223_v3, 0.0 }
 0xa5b   :  { %4409 = vadd.xlane.f32.xlu1 %v4408_v5 }
 0xac5   :  { %v4389_v7 = vpop.xlane.xlu0 %4388 }
 0xac6   :  { %16259 = vrcp.f32 %v4389_v7 }
 0xac9   :  { %v4392_v8 = vpop.xlane.xlu1 %4391 }
 0xaca   :  { %16261 = vrcp.f32 %v4392_v8  ;;  %v17317_v8 = vld [vmem:[%s18629_s10] sm:$0x3f] }
 0xacf   :  { %v4395_v9 = vpop.xlane.xlu0 %4394 }
 0xad0   :  { %16263 = vrcp.f32 %v4395_v9  ;;  %v4398_v10 = vpop.xlane.xlu1 %4397 }
 0xad1   :  { %16265 = vrcp.f32 %v4398_v10 }
 0xad3   :  { %v16260_v12 = vpop.eup %16259 }
 0xad4   :  { %v4412_v14 = vmul.f32 %v16260_v12, %v16244_v54  ;;  %v1945_v54 = vld [vmem:[%s18628_s9] sm:$0xff] }
 0xad6   :  { %15281 = vmatmul.mubr.msk.f32.vlgmr.msra.gmra.mxu0 %vm195_vm1, %v4412_v14 }
 0xad7   :  { %v16262_v18 = vpop.eup %16261  ;;  %15289 = vmatpush3.msra.mxu0 %v3378_v15  ;;  %15290 = vmatprep.mubr.msk.f32.mxu0 %vm16398_vm3, %v16397_v33 }
 0xad8   :  { %v4414_v19 = vmul.f32 %v16262_v18, %v16246_v60  ;;  %15298 = vmatprep.subr.mxu0 %v16397_v33 }
 0xad9   :  { %v4401_v24 = vpop.xlane.xlu0 %4400 }
 0xada   :  { %16267 = vrcp.f32 %v4401_v24  ;;  %v4404_v42 = vpop.xlane.xlu1 %4403  ;;  %15286 = vmatmul.mubr.msk.f32.vlgmr.msra.gmra.mxu1 %vm195_vm1, %v4414_v19 }
 0xadb   :  { %16269 = vrcp.f32 %v4404_v42  ;;  %15294 = vmatpush3.msra.mxu1 %v3448_v17  ;;  %15295 = vmatprep.mubr.msk.f32.mxu1 %vm16398_vm3, %v16397_v33 }
 0xadc   :  { %15303 = vmatprep.subr.mxu1 %v16397_v33 }
 0xadd   :  { %v16264_v55 = vpop.eup %16263 }
 0xade   :  { %v16266_v21 = vpop.eup %16265  ;;  %v4416_v25 = vmul.f32 %v16264_v55, %v16248_v43 }
 0xadf   :  { %v4418_v26 = vmul.f32 %v16266_v21, %v16250_v2 }
 0xae0   :  { %15291 = vmatmul.mubr.msk.f32.vlgmr.msra.gmra.mxu0 %vm195_vm1, %v4416_v25 }
 0xae1   :  { %15296 = vmatmul.mubr.msk.f32.vlgmr.msra.gmra.mxu1 %vm195_vm1, %v4418_v26  ;;  %15299 = vmatpush3.msra.mxu0 %v17199_v6  ;;  %v3658_v6 = vadd.f32 %v13916_v11, %v17203_v47 }
 0xae2   :  { %15304 = vmatpush3.msra.mxu1 %v17201_v44  ;;  %15300 = vmatprep.mubr.msk.f32.mxu0 %vm16398_vm3, %v16397_v33 }
 0xae3   :  { %v4407_v1 = vpop.xlane.xlu0 %4406  ;;  %15305 = vmatprep.mubr.msk.f32.mxu1 %vm16398_vm3, %v16397_v33  ;;  %15308 = vmatprep.subr.mxu0 %v16397_v33 }
 0xae4   :  { %16271 = vrcp.f32 %v4407_v1  ;;  %v4410_v28 = vpop.xlane.xlu1 %4409  ;;  %15313 = vmatprep.subr.mxu1 %v16397_v33 }
 0xae5   :  { %16273 = vrcp.f32 %v4410_v28 }
 0xae7   :  { %v16268_v23 = vpop.eup %16267 }
 0xae8   :  { %v16270_v29 = vpop.eup %16269  ;;  %v4420_v27 = vmul.f32 %v16268_v23, %v16252_v58 }
 0xae9   :  { %v4422_v44 = vmul.f32 %v16270_v29, %v16254_v59 }
 0xaea   :  { %15301 = vmatmul.mubr.msk.f32.vlgmr.msra.gmra.mxu0 %vm195_vm1, %v4420_v27 }
 0xaeb   :  { %15306 = vmatmul.mubr.msk.f32.vlgmr.msra.gmra.mxu1 %vm195_vm1, %v4422_v44  ;;  %15309 = vmatpush3.msra.mxu0 %v3658_v6 }
 0xaec   :  { %15314 = vmatpush3.msra.mxu1 %v3728_v30  ;;  %15310 = vmatprep.mubr.msk.f32.mxu0 %vm16398_vm3, %v16397_v33 }
 0xaed   :  { %15315 = vmatprep.mubr.msk.f32.mxu1 %vm16398_vm3, %v16397_v33  ;;  %15318 = vmatprep.subr.mxu0 %v16397_v33 }
 0xaee   :  { %15323 = vmatprep.subr.mxu1 %v16397_v33 }
 0xaf1   :  { %v16272_v47 = vpop.eup %16271 }
 0xaf2   :  { %v16274_v31 = vpop.eup %16273  ;;  %v4424_v48 = vmul.f32 %v16272_v47, %v17221_v0  ;;  %v17312_v0 = vsub.s32 4, %v16610_v37 }
 0xaf3   :  { %v4426_v32 = vmul.f32 %v16274_v31, %v17223_v3 }
 0xaf4   :  { %15311 = vmatmul.mubr.msk.f32.vlgmr.msra.gmra.mxu0 %vm195_vm1, %v4424_v48  ;;  %v5604_v9 = vrot.slane %v17317_v8, %v17312_v0 }
 0xaf5   :  { %15316 = vmatmul.mubr.msk.f32.vlgmr.msra.gmra.mxu1 %vm195_vm1, %v4426_v32  ;;  %15320 = vmatprep.mubr.msk.f32.mxu0 %vm16398_vm3, %v16397_v33 }
 0xaf6   :  { %15325 = vmatprep.mubr.msk.f32.mxu1 %vm16398_vm3, %v16397_v33  ;;  %15319 = vmatpush3.msra.mxu0 %v1945_v54 }
 0xaf7   :  { %15328 = vmatprep.subr.mxu0 %v16397_v33  ;;  %15324 = vmatpush3.msra.mxu1 %v1946_v34 }
 0xaf8   :  { %15333 = vmatprep.subr.mxu1 %v16397_v33 }
 0xb96   :  { %v4496_v35 = vpop.f32.mrf.mxu0 }
 0xb97   :  { %15321 = vmatmul.mubr.msk.f32.vlgmr.msra.gmra.mxu0 %vm195_vm1, %v4496_v35  ;;  %v5648_v35 = vld [vmem:[%s18630_s11 + $0x8] sm:$0xff] }
 0xb98   :  { %v15282_v51 = vpop.f32.mrf.mxu0  ;;  %15329 = vmatpush3.msra.mxu0 %v1947_v36  ;;  %15330 = vmatprep.mubr.msk.f32.mxu0 %vm16398_vm3, %v16397_v33 }
 0xb99   :  { %15338 = vmatprep.subr.mxu0 %v16397_v33  ;;  %v5647_v51 = vld [vmem:[%s18630_s11] sm:$0xff] }
 0xb9a   :  { %v4569_v60 = vpop.f32.mrf.mxu1 }
 0xb9b   :  { %15326 = vmatmul.mubr.msk.f32.vlgmr.msra.gmra.mxu1 %vm195_vm1, %v4569_v60 }
 0xb9c   :  { %v15287_v39 = vpop.f32.mrf.mxu1  ;;  %15334 = vmatpush3.msra.mxu1 %v1948_v38  ;;  %15335 = vmatprep.mubr.msk.f32.mxu1 %vm16398_vm3, %v16397_v33 }
 0xb9d   :  { %15343 = vmatprep.subr.mxu1 %v16397_v33 }
 0xba0   :  { %v4642_v41 = vpop.f32.mrf.mxu0 }
 0xba1   :  { %v4715_v61 = vpop.f32.mrf.mxu1  ;;  %15331 = vmatmul.mubr.msk.f32.vlgmr.msra.gmra.mxu0 %vm195_vm1, %v4642_v41  ;;  %v17349_v41 = vsub.s32 2, %v16610_v37 }
 0xba2   :  { %15336 = vmatmul.mubr.msk.f32.vlgmr.msra.gmra.mxu1 %vm195_vm1, %v4715_v61  ;;  %v15292_v43 = vpop.f32.mrf.mxu0  ;;  %15339 = vmatpush3.msra.mxu0 %v1945_v54  ;;  %v17352_v61 = vsub.s32 3, %v16610_v37 }
 0xba3   :  { %v15297_v2 = vpop.f32.mrf.mxu1  ;;  %15340 = vmatprep.mubr.msk.f32.mxu0 %vm16398_vm3, %v16397_v33  ;;  %15344 = vmatpush3.msra.mxu1 %v1946_v34  ;;  %v5650_v34 = vld [vmem:[%s18630_s11 + $0x18] sm:$0xff]  ;;  %v5638_v43 = vrot.slane %v17317_v8, %v17349_v41 }
 0xba4   :  { %15345 = vmatprep.mubr.msk.f32.mxu1 %vm16398_vm3, %v16397_v33  ;;  %15348 = vmatprep.subr.mxu0 %v16397_v33 }
 0xba5   :  { %15353 = vmatprep.subr.mxu1 %v16397_v33 }
 0xbaa   :  { %v4788_v45 = vpop.f32.mrf.mxu0 }
 0xbab   :  { %v4861_v46 = vpop.f32.mrf.mxu1  ;;  %15341 = vmatmul.mubr.msk.f32.vlgmr.msra.gmra.mxu0 %vm195_vm1, %v4788_v45 }
 0xbac   :  { %15346 = vmatmul.mubr.msk.f32.vlgmr.msra.gmra.mxu1 %vm195_vm1, %v4861_v46  ;;  %v15302_v49 = vpop.f32.mrf.mxu0  ;;  %15349 = vmatpush3.msra.mxu0 %v1947_v36  ;;  %v5649_v36 = vld [vmem:[%s18630_s11 + $0x10] sm:$0xff]  ;;  %v5644_v46 = vrot.slane %v17317_v8, %v17352_v61 }
 0xbad   :  { %v15307_v50 = vpop.f32.mrf.mxu1  ;;  %15350 = vmatprep.mubr.msk.f32.mxu0 %vm16398_vm3, %v16397_v33  ;;  %15354 = vmatpush3.msra.mxu1 %v1948_v38 }
 0xbae   :  { %15355 = vmatprep.mubr.msk.f32.mxu1 %vm16398_vm3, %v16397_v33  ;;  %15358 = vmatprep.subr.mxu0 %v5650_v34 }
 0xbb4   :  { %v4934_v52 = vpop.f32.mrf.mxu0 }
 0xbb5   :  { %v5007_v53 = vpop.f32.mrf.mxu1  ;;  %15351 = vmatmul.mubr.msk.f32.vlgmr.msra.gmra.mxu0 %vm195_vm1, %v4934_v52 }
 0xbb6   :  { %15356 = vmatmul.mubr.msk.f32.vlgmr.msra.gmra.mxu1 %vm195_vm1, %v5007_v53  ;;  %v15312_v56 = vpop.f32.mrf.mxu0  ;;  %15359 = vmatpush3.msra.mxu0 %v5650_v34 }
 0xbb7   :  { %v15317_v57 = vpop.f32.mrf.mxu1  ;;  %15360 = vmatprep.subr.mxu0 %v5649_v36 }
 0xbb8   :  { %15361 = vmatpush3.msra.mxu0 %v5649_v36 }
 0xbb9   :  { %15362 = vmatprep.subr.mxu0 %v5648_v35 }
 0xbba   :  { %15363 = vmatpush3.msra.mxu0 %v5648_v35 }
 0xbbb   :  { %15364 = vmatprep.subr.mxu0 %v5647_v51 }
 0xbbc   :  { %15365 = vmatpush3.msra.mxu0 %v5647_v51 }
 0xbbd   :  { %15388 = vmatprep.subr.mxu0 %v16397_v33 }
 0xc57   :  { %v5080_v58 = vpop.f32.mrf.mxu0 }
 0xc59   :  { %v15322_v59 = vpop.f32.mrf.mxu0 }
 0xc5b   :  { %v5153_v62 = vpop.f32.mrf.mxu1 }
 0xc5c   :  { %v5595_v3 = vadd.f32 %v5153_v62, %v5080_v58 }
 0xc5d   :  { %v15327_v63 = vpop.f32.mrf.mxu1 }
 0xc5e   :  { %v5802_v63 = vld [vmem:[%s18632_s13 + $0x38] sm:$0xff] }
 0xc5f   :  { %15369 = vmatprep.subr.mxu1 %v5802_v63 }
 0xc60   :  { %15370 = vmatpush3.msra.mxu1 %v5802_v63 }
 0xc61   :  { %v5226_v4 = vpop.f32.mrf.mxu0 }
 0xc62   :  { %v5597_v5 = vadd.f32 %v5595_v3, %v5226_v4  ;;  %v5299_v7 = vpop.f32.mrf.mxu1  ;;  %v5801_v3 = vld [vmem:[%s18632_s13 + $0x30] sm:$0xff]  ;;  %v5800_v4 = vld [vmem:[%s18632_s13 + $0x28] sm:$0xff] }
 0xc63   :  { %v15332_v10 = vpop.f32.mrf.mxu0  ;;  %15371 = vmatprep.subr.mxu1 %v5801_v3 }
 0xc64   :  { %v5599_v11 = vadd.f32 %v5597_v5, %v5299_v7  ;;  %v15337_v12 = vpop.f32.mrf.mxu1  ;;  %15372 = vmatpush3.msra.mxu1 %v5801_v3  ;;  %v5799_v5 = vld [vmem:[%s18632_s13 + $0x20] sm:$0xff]  ;;  %v5798_v7 = vld [vmem:[%s18632_s13 + $0x18] sm:$0xff]  ;;  %v5796_v10 = vld [vmem:[%s18632_s13 + $0x8] sm:$0xff] }
 0xc65   :  { %15373 = vmatprep.subr.mxu1 %v5800_v4  ;;  %v13960_v12 = vld [vmem:[%s18631_s12] ss:$0 sm:$0xff] }
 0xc66   :  { %v5605_v14 = vadd.f32 %v5604_v9, %v5599_v11  ;;  %15374 = vmatpush3.msra.mxu1 %v5800_v4  ;;  %v5795_v11 = vld [vmem:[%s18632_s13] sm:$0xff] }
 0xc67   :  { %15375 = vmatprep.subr.mxu1 %v5799_v5 }
 0xc68   :  { %v17322_v15 = vadd.f32 %v5605_v14, %v16741_v20  ;;  %15376 = vmatpush3.msra.mxu1 %v5799_v5 }
 0xc69   :  { %15377 = vmatprep.subr.mxu1 %v5798_v7 }
 0xc6a   :  { %v5609_v16 = vsel %vm1286_vm8, %v17322_v15, 0.0  ;;  %15378 = vmatpush3.msra.mxu1 %v5798_v7 }
 0xc6b   :  { %v5372_v18 = vpop.f32.mrf.mxu0  ;;  %5610 = vadd.xlane.f32.xlu0 %v5609_v16 }
 0xc6c   :  { %v5445_v19 = vpop.f32.mrf.mxu1 }
 0xc6d   :  { %v15342_v17 = vpop.f32.mrf.mxu0  ;;  %v5596_v42 = vadd.f32 %v5445_v19, %v5372_v18 }
 0xc6e   :  { %v15347_v24 = vpop.f32.mrf.mxu1 }
 0xc75   :  { %v5518_v55 = vpop.f32.mrf.mxu0 }
 0xc76   :  { %v5598_v21 = vadd.f32 %v5596_v42, %v5518_v55  ;;  %v5591_v25 = vpop.f32.mrf.mxu1 }
 0xc77   :  { %v15352_v26 = vpop.f32.mrf.mxu0 }
 0xc78   :  { %v5600_v1 = vadd.f32 %v5598_v21, %v5591_v25  ;;  %v15357_v28 = vpop.f32.mrf.mxu1 }
 0xc7a   :  { %v5606_v23 = vadd.f32 %v5604_v9, %v5600_v1  ;;  %v5797_v9 = vld [vmem:[%s18632_s13 + $0x10] sm:$0xff] }
 0xc7b   :  { %15379 = vmatprep.subr.mxu1 %v5797_v9 }
 0xc7c   :  { %v17327_v29 = vadd.f32 %v5606_v23, %v16745_v22  ;;  %15380 = vmatpush3.msra.mxu1 %v5797_v9 }
 0xc7d   :  { %15381 = vmatprep.subr.mxu1 %v5796_v10 }
 0xc7e   :  { %v5612_v20 = vsel %vm1286_vm8, %v17327_v29, 0.0  ;;  %15382 = vmatpush3.msra.mxu1 %v5796_v10 }
 0xc7f   :  { %5613 = vadd.xlane.f32.xlu1 %v5612_v20  ;;  %15383 = vmatprep.subr.mxu1 %v5795_v11 }
 0xc80   :  { %15384 = vmatpush3.msra.mxu1 %v5795_v11 }
 0xc81   :  { %15410 = vmatprep.subr.mxu1 %v16397_v33 }
 0xcf4   :  { %v5611_v27 = vpop.xlane.xlu0 %5610 }
 0xcf5   :  { %v5615_v6 = vmul.f32 0.03125, %v5611_v27 }
 0xcf7   :  { %v5617_v44 = vsub.f32 %v17322_v15, %v5615_v6 }
 0xcf9   :  { %v5619_v30 = vmul.f32 %v5617_v44, %v5617_v44 }
 0xcfb   :  { %v5621_v47 = vsel %vm1286_vm8, %v5619_v30, 0.0 }
 0xcfc   :  { %5622 = vadd.xlane.f32.xlu0 %v5621_v47 }
 0xd08   :  { %v5614_v31 = vpop.xlane.xlu1 %5613 }
 0xd09   :  { %v5616_v48 = vmul.f32 0.03125, %v5614_v31 }
 0xd0b   :  { %v5618_v32 = vsub.f32 %v17327_v29, %v5616_v48 }
 0xd0d   :  { %v5620_v54 = vmul.f32 %v5618_v32, %v5618_v32 }
 0xd0f   :  { %v5624_v22 = vsel %vm1286_vm8, %v5620_v54, 0.0 }
 0xd10   :  { %5625 = vadd.xlane.f32.xlu1 %v5624_v22 }
 0xd85   :  { %v5623_v38 = vpop.xlane.xlu0 %5622 }
 0xd86   :  { %v5627_v60 = vmul.f32 0.03125, %v5623_v38 }
 0xd88   :  { %v5629_v39 = vadd.f32 1e-05, %v5627_v60 }
 0xd8a   :  { %16275 = vrsqrt.f32 %v5629_v39 }
 0xd97   :  { %v16276_v2 = vpop.eup %16275 }
 0xd98   :  { %v5633_v45 = vmul.f32 %v16276_v2, %v5617_v44 }
 0xd99   :  { %v5626_v49 = vpop.xlane.xlu1 %5625 }
 0xd9a   :  { %v5628_v50 = vmul.f32 0.03125, %v5626_v49  ;;  %v5639_v52 = vmul.f32 %v5638_v43, %v5633_v45 }
 0xd9c   :  { %v5630_v53 = vadd.f32 1e-05, %v5628_v50  ;;  %v5645_v56 = vadd.f32 %v5644_v46, %v5639_v52 }
 0xd9e   :  { %16277 = vrsqrt.f32 %v5630_v53  ;;  %15366 = vmatprep.mubr.msk.f32.mxu0 %vm1286_vm8, %v5645_v56 }
 0xdab   :  { %v16278_v57 = vpop.eup %16277 }
 0xdac   :  { %v5634_v58 = vmul.f32 %v16278_v57, %v5618_v32 }
 0xdae   :  { %v5640_v59 = vmul.f32 %v5638_v43, %v5634_v58 }
 0xdb0   :  { %v5646_v62 = vadd.f32 %v5644_v46, %v5640_v59 }
 0xdb2   :  { %15367 = vmatmul.mubr.msk.f32.vlgmr.msra.gmra.mxu0 %vm1286_vm8, %v5646_v62 }
 0xdb3   :  { %15396 = vmatprep.mubr.msk.f32.mxu0 %vm16398_vm3, %v16397_v33 }
 0xe72   :  { %v15368_v14 = vpop.f32.mrf.mxu0 }
 0xe73   :  { %v5740_v16 = vadd.f32 %v15368_v14, %v13960_v12  ;;  %v5886_v14 = vsub.s32 5, %v16610_v37 }
 0xe74   :  { %v5723_v18 = vpop.f32.mrf.mxu0 }
 0xe75   :  { %v5744_v19 = vmul.f32 0.70710677, %v5740_v16  ;;  %v5739_v17 = vadd.f32 %v13960_v12, %v5723_v18  ;;  %v5742_v10 = vmul.f32 0.5, %v5740_v16  ;;  %v5887_v18 = vrot.slane %v17317_v8, %v5886_v14 }
 0xe77   :  { %v5746_v24 = vand.u32 2147483647, %v5744_v19  ;;  %v5743_v42 = vmul.f32 0.70710677, %v5739_v17  ;;  %vm5786_vm12 = vcmp.ge.f32.partialorder %v5744_v19, 0.0  ;;  %v5741_v7 = vmul.f32 0.5, %v5739_v17 }
 0xe79   :  { %v5748_v55 = vmul.f32 0.3275911, %v5746_v24  ;;  %v5745_v21 = vand.u32 2147483647, %v5743_v42  ;;  %v5774_v28 = vsub.f32 0.0, %v5746_v24  ;;  %vm5785_vm13 = vcmp.ge.f32.partialorder %v5743_v42, 0.0 }
 0xe7b   :  { %v5750_v25 = vadd.f32 1.0, %v5748_v55  ;;  %v5747_v26 = vmul.f32 0.3275911, %v5745_v21  ;;  %v5773_v23 = vsub.f32 0.0, %v5745_v21  ;;  %v5776_v20 = vmul.f32 %v5774_v28, %v5746_v24 }
 0xe7d   :  { %16279 = vrcp.f32 %v5750_v25  ;;  %v5749_v1 = vadd.f32 1.0, %v5747_v26  ;;  %v5775_v6 = vmul.f32 %v5773_v23, %v5745_v21  ;;  %v5779_v30 = vmul.f32 1.442695, %v5776_v20 }
 0xe7f   :  { %16281 = vrcp.f32 %v5749_v1  ;;  %v5777_v32 = vmul.f32 1.442695, %v5775_v6 }
 0xe80   :  { %16283 = vpow2.f32 %v5779_v30  ;;  %v17418_v30 = vld [vmem:[%s18626_s7 + $0x1d8] sm:$0xff] }
 0xe81   :  { %16285 = vpow2.f32 %v5777_v32  ;;  %v17437_v32 = vld [vmem:[%s18626_s7 + $0x1c8] sm:$0xff] }
 0xe8a   :  { %v16280_v27 = vpop.eup %16279 }
 0xe8b   :  { %v5756_v44 = vmul.f32 1.0614054, %v16280_v27 }
 0xe8c   :  { %v16282_v47 = vpop.eup %16281 }
 0xe8d   :  { %v5758_v31 = vadd.f32 -1.4531521, %v5756_v44  ;;  %v5755_v48 = vmul.f32 1.0614054, %v16282_v47  ;;  %v16284_v49 = vpop.eup %16283  ;;  %v13966_v44 = vld [vmem:[%s18626_s7 + $0x198] sm:$0xff] }
 0xe8e   :  { %v16286_v56 = vpop.eup %16285  ;;  %15389 = vmatpush3.msra.mxu0 %v13966_v44 }
 0xe8f   :  { %v5760_v54 = vmul.f32 %v16280_v27, %v5758_v31  ;;  %v5757_v22 = vadd.f32 -1.4531521, %v5755_v48  ;;  %v17427_v31 = vld [vmem:[%s18626_s7 + $0x1d0] sm:$0xff]  ;;  %15390 = vmatprep.subr.mxu0 %v16397_v33  ;;  %v13964_v48 = vld [vmem:[%s18626_s7 + $0x188] sm:$0xff] }
 0xe91   :  { %v5762_v34 = vadd.f32 1.4214138, %v5760_v54  ;;  %v5759_v36 = vmul.f32 %v16282_v47, %v5757_v22  ;;  %v13963_v54 = vld [vmem:[%s18626_s7 + $0x180] sm:$0xff] }
 0xe92   :  { %v17448_v22 = vld [vmem:[%s18626_s7 + $0x1c0] sm:$0xff] }
 0xe93   :  { %v5764_v35 = vmul.f32 %v16280_v27, %v5762_v34  ;;  %v5761_v51 = vadd.f32 1.4214138, %v5759_v36 }
 0xe95   :  { %v5766_v38 = vadd.f32 -0.28449672, %v5764_v35  ;;  %v5763_v60 = vmul.f32 %v16282_v47, %v5761_v51 }
 0xe97   :  { %v5768_v39 = vmul.f32 %v16280_v27, %v5766_v38  ;;  %v5765_v43 = vadd.f32 -0.28449672, %v5763_v60 }
 0xe99   :  { %v5770_v2 = vadd.f32 0.2548296, %v5768_v39  ;;  %v5767_v45 = vmul.f32 %v16282_v47, %v5765_v43  ;;  %v14023_v39 = vld [vmem:[%s18629_s10 + $0x8] sm:$0x3f] }
 0xe9b   :  { %v5772_v46 = vmul.f32 %v16280_v27, %v5770_v2  ;;  %v5769_v50 = vadd.f32 0.2548296, %v5767_v45  ;;  %v5986_v2 = vrot.slane %v14023_v39, %v16613_v40  ;;  %v13969_v40 = vld [vmem:[%s18626_s7 + $0x1b0] sm:$0xff] }
 0xe9d   :  { %v5782_v52 = vmul.f32 %v16284_v49, %v5772_v46  ;;  %v5771_v53 = vmul.f32 %v16282_v47, %v5769_v50  ;;  %v13965_v47 = vld [vmem:[%s18626_s7 + $0x190] sm:$0xff]  ;;  %v5992_v46 = vrot.slane %v14023_v39, %v16733_v13  ;;  %v13968_v13 = vld [vmem:[%s18626_s7 + $0x1a8] sm:$0xff] }
 0xe9e   :  { %15391 = vmatpush3.msra.mxu0 %v13965_v47 }
 0xe9f   :  { %v5784_v57 = vsub.f32 1.0, %v5782_v52  ;;  %v5781_v58 = vmul.f32 %v16286_v56, %v5771_v53  ;;  %15392 = vmatprep.subr.mxu0 %v16397_v33  ;;  %v13970_v53 = vld [vmem:[%s18626_s7 + $0x1b8] sm:$0xff] }
 0xea0   :  { %15393 = vmatpush3.msra.mxu0 %v13964_v48 }
 0xea1   :  { %v5788_v59 = vsub.f32 0.0, %v5784_v57  ;;  %v5783_v62 = vsub.f32 1.0, %v5781_v58  ;;  %15394 = vmatprep.subr.mxu0 %v16397_v33  ;;  %v13967_v58 = vld [vmem:[%s18626_s7 + $0x1a0] sm:$0xff] }
 0xea2   :  { %15395 = vmatpush3.msra.mxu0 %v13963_v54 }
 0xea3   :  { %v5790_v63 = vsel %vm5786_vm12, %v5784_v57, %v5788_v59  ;;  %v5787_v3 = vsub.f32 0.0, %v5783_v62  ;;  %15399 = vmatprep.subr.mxu0 %v16397_v33 }
 0xea4   :  { %v5792_v4 = vadd.f32 1.0, %v5790_v63  ;;  %v13977_v63 = vld [vmem:[%s18626_s7 + $0x1f0] sm:$0xff] }
 0xea5   :  { %v5789_v5 = vsel %vm5785_vm13, %v5783_v62, %v5787_v3  ;;  %v13978_v62 = vld [vmem:[%s18626_s7 + $0x1f8] sm:$0xff]  ;;  %v13976_v3 = vld [vmem:[%s18626_s7 + $0x1e8] sm:$0xff] }
 0xea6   :  { %v5791_v9 = vadd.f32 1.0, %v5789_v5  ;;  %v5794_v12 = vmul.f32 %v5792_v4, %v5742_v10  ;;  %v13975_v4 = vld [vmem:[%s18626_s7 + $0x1e0] sm:$0xff]  ;;  %v13982_v5 = vld [vmem:[%s18626_s7 + $0x218] sm:$0xff] }
 0xea7   :  { %v13979_v10 = vld [vmem:[%s18626_s7 + $0x200] sm:$0xff] }
 0xea8   :  { %v5793_v11 = vmul.f32 %v5791_v9, %v5741_v7  ;;  %v13981_v7 = vld [vmem:[%s18626_s7 + $0x210] sm:$0xff]  ;;  %v13980_v9 = vld [vmem:[%s18626_s7 + $0x208] sm:$0xff] }
 0xeaa   :  { %15385 = vmatprep.mubr.msk.f32.mxu1 %vm77_vm0, %v5793_v11  ;;  %v13990_v11 = vld [vmem:[%s18626_s7 + $0x258] sm:$0xff] }
 0xeab   :  { %15386 = vmatmul.mubr.msk.f32.vlgmr.msra.gmra.mxu1 %vm77_vm0, %v5794_v12  ;;  %v13989_v12 = vld [vmem:[%s18626_s7 + $0x250] sm:$0xff] }
 0xeac   :  { %15418 = vmatprep.mubr.msk.f32.mxu1 %vm16398_vm3, %v16397_v33  ;;  %15411 = vmatpush3.msra.mxu1 %v17418_v30 }
 0xead   :  { %15412 = vmatprep.subr.mxu1 %v16397_v33 }
 0xeae   :  { %15413 = vmatpush3.msra.mxu1 %v17427_v31 }
 0xeaf   :  { %15414 = vmatprep.subr.mxu1 %v16397_v33 }
 0xeb0   :  { %15415 = vmatpush3.msra.mxu1 %v17437_v32 }
 0xeb1   :  { %15416 = vmatprep.subr.mxu1 %v16397_v33 }
 0xeb2   :  { %15417 = vmatpush3.msra.mxu1 %v17448_v22 }
 0xeb3   :  { %15432 = vmatprep.subr.mxu1 %v16397_v33 }
 0xf6b   :  { %v15387_v19 = vpop.f32.mrf.mxu1 }
 0xf6c   :  { %v5889_v24 = vadd.f32 %v15387_v19, %v5887_v18  ;;  %v13987_v19 = vld [vmem:[%s18626_s7 + $0x240] sm:$0xff] }
 0xf6d   :  { %v5875_v17 = vpop.f32.mrf.mxu1 }
 0xf6e   :  { %v17399_v16 = vadd.f32 %v5889_v24, %v17327_v29  ;;  %v5888_v42 = vadd.f32 %v5887_v18, %v5875_v17  ;;  %v13988_v18 = vld [vmem:[%s18626_s7 + $0x248] sm:$0xff]  ;;  %v13986_v24 = vld [vmem:[%s18626_s7 + $0x238] sm:$0xff]  ;;  %v13985_v17 = vld [vmem:[%s18626_s7 + $0x230] sm:$0xff] }
 0xf70   :  { %v17402_v55 = vadd.f32 %v5888_v42, %v17322_v15  ;;  %v5960_v21 = vsel %vm1286_vm8, %v17399_v16, 0.0  ;;  %v13984_v42 = vld [vmem:[%s18626_s7 + $0x228] sm:$0xff] }
 0xf71   :  { %5961 = vadd.xlane.f32.xlu1 %v5960_v21  ;;  %v13983_v21 = vld [vmem:[%s18626_s7 + $0x220] sm:$0xff] }
 0xf72   :  { %v5957_v25 = vsel %vm1286_vm8, %v17402_v55, 0.0 }
 0xf73   :  { %5958 = vadd.xlane.f32.xlu0 %v5957_v25  ;;  %v13994_v25 = vld [vmem:[%s18626_s7 + $0x278] sm:$0xff] }
 0xffa   :  { %v5962_v26 = vpop.xlane.xlu1 %5961 }
 0xffb   :  { %v5964_v8 = vmul.f32 0.03125, %v5962_v26  ;;  %v13993_v26 = vld [vmem:[%s18626_s7 + $0x270] sm:$0xff] }
 0xffc   :  { %v5959_v1 = vpop.xlane.xlu0 %5958 }
 0xffd   :  { %v5966_v28 = vsub.f32 %v17399_v16, %v5964_v8  ;;  %v5963_v23 = vmul.f32 0.03125, %v5959_v1  ;;  %v13992_v8 = vld [vmem:[%s18626_s7 + $0x268] sm:$0xff]  ;;  %v13991_v1 = vld [vmem:[%s18626_s7 + $0x260] sm:$0xff] }
 0xfff   :  { %v5965_v29 = vsub.f32 %v17402_v55, %v5963_v23  ;;  %v5968_v20 = vmul.f32 %v5966_v28, %v5966_v28  ;;  %v13997_v23 = vld [vmem:[%s18626_s7 + $0x290] sm:$0xff] }
0x1001   :  { %v5972_v15 = vsel %vm1286_vm8, %v5968_v20, 0.0  ;;  %v5967_v27 = vmul.f32 %v5965_v29, %v5965_v29  ;;  %v13995_v20 = vld [vmem:[%s18626_s7 + $0x280] sm:$0xff] }
0x1002   :  { %5973 = vadd.xlane.f32.xlu1 %v5972_v15  ;;  %v14006_v15 = vld [vmem:[%s18626_s7 + $0x2d8] sm:$0xff] }
0x1003   :  { %v5969_v6 = vsel %vm1286_vm8, %v5967_v27, 0.0  ;;  %v14005_v27 = vld [vmem:[%s18626_s7 + $0x2d0] sm:$0xff] }
0x1004   :  { %5970 = vadd.xlane.f32.xlu0 %v5969_v6  ;;  %v14004_v6 = vld [vmem:[%s18626_s7 + $0x2c8] sm:$0xff] }
0x108b   :  { %v5974_v34 = vpop.xlane.xlu1 %5973 }
0x108c   :  { %v5976_v35 = vmul.f32 0.03125, %v5974_v34  ;;  %v14007_v34 = vld [vmem:[%s18626_s7 + $0x2e0] sm:$0xff] }
0x108d   :  { %v5971_v36 = vpop.xlane.xlu0 %5970 }
0x108e   :  { %v5975_v51 = vmul.f32 0.03125, %v5971_v36  ;;  %v5978_v60 = vadd.f32 1e-05, %v5976_v35 }
0x1090   :  { %v5977_v38 = vadd.f32 1e-05, %v5975_v51 }
0x1092   :  { %16287 = vrsqrt.f32 %v5977_v38 }
0x1093   :  { %16289 = vrsqrt.f32 %v5978_v60 }
0x109f   :  { %v16288_v43 = vpop.eup %16287 }
0x10a0   :  { %v5981_v45 = vmul.f32 %v16288_v43, %v5965_v29  ;;  %v16290_v50 = vpop.eup %16289  ;;  %v13996_v29 = vld [vmem:[%s18626_s7 + $0x288] sm:$0xff] }
0x10a1   :  { %v5982_v56 = vmul.f32 %v16290_v50, %v5966_v28  ;;  %v13998_v28 = vld [vmem:[%s18626_s7 + $0x298] sm:$0xff] }
0x10a2   :  { %v5987_v49 = vmul.f32 %v5986_v2, %v5981_v45 }
0x10a3   :  { %v5988_v57 = vmul.f32 %v5986_v2, %v5982_v56 }
0x10a4   :  { %v17461_v52 = vadd.f32 %v5992_v46, %v5987_v49 }
0x10a5   :  { %v17487_v59 = vadd.f32 %v5992_v46, %v5988_v57 }
0x10a6   :  { %15397 = vmatmul.mubr.msk.f32.vlgmr.msra.gmra.mxu0 %vm1286_vm8, %v17461_v52  ;;  %15419 = vmatmul.mubr.msk.f32.vlgmr.msra.gmra.mxu1 %vm1286_vm8, %v17461_v52 }
0x10a7   :  { %15400 = vmatpush3.msra.mxu0 %v13970_v53  ;;  %15433 = vmatpush3.msra.mxu1 %v13966_v44  ;;  %v14003_v44 = vld [vmem:[%s18626_s7 + $0x2c0] sm:$0xff] }
0x10a8   :  { %15401 = vmatprep.subr.mxu0 %v16397_v33  ;;  %15434 = vmatprep.subr.mxu1 %v16397_v33 }
0x10a9   :  { %15402 = vmatpush3.msra.mxu0 %v13969_v40  ;;  %15435 = vmatpush3.msra.mxu1 %v13965_v47  ;;  %v14001_v47 = vld [vmem:[%s18626_s7 + $0x2b0] sm:$0xff] }
0x10aa   :  { %15403 = vmatprep.subr.mxu0 %v16397_v33  ;;  %15436 = vmatprep.subr.mxu1 %v16397_v33 }
0x10ab   :  { %15404 = vmatpush3.msra.mxu0 %v13968_v13  ;;  %15437 = vmatpush3.msra.mxu1 %v13964_v48  ;;  %v13999_v48 = vld [vmem:[%s18626_s7 + $0x2a0] sm:$0xff] }
0x10ac   :  { %15405 = vmatprep.subr.mxu0 %v16397_v33  ;;  %15438 = vmatprep.subr.mxu1 %v16397_v33 }
0x10ad   :  { %15406 = vmatpush3.msra.mxu0 %v13967_v58  ;;  %15407 = vmatprep.mubr.msk.f32.mxu0 %vm16398_vm3, %v16397_v33 }
0x10ae   :  { %15439 = vmatpush3.msra.mxu1 %v13963_v54  ;;  %15440 = vmatprep.mubr.msk.f32.mxu1 %vm16398_vm3, %v16397_v33  ;;  %v14009_v54 = vld [vmem:[%s18626_s7 + $0x2f0] sm:$0xff] }
0x10af   :  { %15408 = vmatmul.mubr.msk.f32.vlgmr.msra.gmra.mxu0 %vm1286_vm8, %v17461_v52  ;;  %15421 = vmatprep.subr.mxu0 %v16397_v33 }
0x10b0   :  { %15441 = vmatmul.mubr.msk.f32.vlgmr.msra.gmra.mxu1 %vm1286_vm8, %v17487_v59  ;;  %15454 = vmatprep.subr.mxu1 %v16397_v33 }
0x10b1   :  { %15422 = vmatpush3.msra.mxu0 %v13978_v62  ;;  %15455 = vmatpush3.msra.mxu1 %v17418_v30  ;;  %v14002_v30 = vld [vmem:[%s18626_s7 + $0x2b8] sm:$0xff] }
0x10b2   :  { %15423 = vmatprep.subr.mxu0 %v16397_v33  ;;  %15456 = vmatprep.subr.mxu1 %v16397_v33 }
0x10b3   :  { %15424 = vmatpush3.msra.mxu0 %v13977_v63  ;;  %15457 = vmatpush3.msra.mxu1 %v17427_v31  ;;  %v14000_v31 = vld [vmem:[%s18626_s7 + $0x2a8] sm:$0xff] }
0x10b4   :  { %15425 = vmatprep.subr.mxu0 %v16397_v33  ;;  %15458 = vmatprep.subr.mxu1 %v16397_v33 }
0x10b5   :  { %15426 = vmatpush3.msra.mxu0 %v13976_v3  ;;  %15459 = vmatpush3.msra.mxu1 %v17437_v32  ;;  %v14010_v32 = vld [vmem:[%s18626_s7 + $0x2f8] sm:$0xff] }
0x10b6   :  { %15427 = vmatprep.subr.mxu0 %v16397_v33  ;;  %15460 = vmatprep.subr.mxu1 %v16397_v33 }
0x10b7   :  { %15428 = vmatpush3.msra.mxu0 %v13975_v4  ;;  %15429 = vmatprep.mubr.msk.f32.mxu0 %vm16398_vm3, %v16397_v33 }
0x10b8   :  { %15461 = vmatpush3.msra.mxu1 %v17448_v22  ;;  %15462 = vmatprep.mubr.msk.f32.mxu1 %vm16398_vm3, %v16397_v33  ;;  %v14008_v22 = vld [vmem:[%s18626_s7 + $0x2e8] sm:$0xff] }
0x10b9   :  { %15430 = vmatmul.mubr.msk.f32.vlgmr.msra.gmra.mxu0 %vm1286_vm8, %v17461_v52  ;;  %15443 = vmatprep.subr.mxu0 %v16397_v33 }
0x10ba   :  { %15463 = vmatmul.mubr.msk.f32.vlgmr.msra.gmra.mxu1 %vm1286_vm8, %v17487_v59  ;;  %15476 = vmatprep.subr.mxu1 %v16397_v33 }
0x10bb   :  { %15444 = vmatpush3.msra.mxu0 %v13970_v53  ;;  %15477 = vmatpush3.msra.mxu1 %v13982_v5 }
0x10bc   :  { %15445 = vmatprep.subr.mxu0 %v16397_v33  ;;  %15478 = vmatprep.subr.mxu1 %v16397_v33 }
0x10bd   :  { %15446 = vmatpush3.msra.mxu0 %v13969_v40  ;;  %15479 = vmatpush3.msra.mxu1 %v13981_v7 }
0x10be   :  { %15447 = vmatprep.subr.mxu0 %v16397_v33  ;;  %15480 = vmatprep.subr.mxu1 %v16397_v33 }
0x10bf   :  { %15448 = vmatpush3.msra.mxu0 %v13968_v13  ;;  %15481 = vmatpush3.msra.mxu1 %v13980_v9 }
0x10c0   :  { %15449 = vmatprep.subr.mxu0 %v16397_v33  ;;  %15482 = vmatprep.subr.mxu1 %v16397_v33 }
0x10c1   :  { %15450 = vmatpush3.msra.mxu0 %v13967_v58  ;;  %15451 = vmatprep.mubr.msk.f32.mxu0 %vm16398_vm3, %v16397_v33 }
0x10c2   :  { %15483 = vmatpush3.msra.mxu1 %v13979_v10  ;;  %15484 = vmatprep.mubr.msk.f32.mxu1 %vm16398_vm3, %v16397_v33 }
0x10c3   :  { %15452 = vmatmul.mubr.msk.f32.vlgmr.msra.gmra.mxu0 %vm1286_vm8, %v17487_v59  ;;  %15465 = vmatprep.subr.mxu0 %v16397_v33 }
0x10c4   :  { %15485 = vmatmul.mubr.msk.f32.vlgmr.msra.gmra.mxu1 %vm1286_vm8, %v17461_v52  ;;  %15498 = vmatprep.subr.mxu1 %v16397_v33 }
0x10c5   :  { %15466 = vmatpush3.msra.mxu0 %v13978_v62  ;;  %15499 = vmatpush3.msra.mxu1 %v13990_v11 }
0x10c6   :  { %15467 = vmatprep.subr.mxu0 %v16397_v33  ;;  %15500 = vmatprep.subr.mxu1 %v16397_v33 }
0x10c7   :  { %15468 = vmatpush3.msra.mxu0 %v13977_v63  ;;  %15501 = vmatpush3.msra.mxu1 %v13989_v12 }
0x10c8   :  { %15469 = vmatprep.subr.mxu0 %v16397_v33  ;;  %15502 = vmatprep.subr.mxu1 %v16397_v33 }
0x10c9   :  { %15470 = vmatpush3.msra.mxu0 %v13976_v3  ;;  %15503 = vmatpush3.msra.mxu1 %v13988_v18 }
0x10ca   :  { %15471 = vmatprep.subr.mxu0 %v16397_v33  ;;  %15504 = vmatprep.subr.mxu1 %v16397_v33 }
0x10cb   :  { %15472 = vmatpush3.msra.mxu0 %v13975_v4  ;;  %15473 = vmatprep.mubr.msk.f32.mxu0 %vm16398_vm3, %v16397_v33 }
0x10cc   :  { %15505 = vmatpush3.msra.mxu1 %v13987_v19  ;;  %15506 = vmatprep.mubr.msk.f32.mxu1 %vm16398_vm3, %v16397_v33 }
0x10cd   :  { %15474 = vmatmul.mubr.msk.f32.vlgmr.msra.gmra.mxu0 %vm1286_vm8, %v17487_v59  ;;  %15487 = vmatprep.subr.mxu0 %v16397_v33 }
0x10ce   :  { %15507 = vmatmul.mubr.msk.f32.vlgmr.msra.gmra.mxu1 %vm1286_vm8, %v17461_v52  ;;  %15520 = vmatprep.subr.mxu1 %v16397_v33 }
0x10cf   :  { %15488 = vmatpush3.msra.mxu0 %v13986_v24  ;;  %15521 = vmatpush3.msra.mxu1 %v13982_v5 }
0x10d0   :  { %15489 = vmatprep.subr.mxu0 %v16397_v33  ;;  %15522 = vmatprep.subr.mxu1 %v16397_v33 }
0x10d1   :  { %15490 = vmatpush3.msra.mxu0 %v13985_v17  ;;  %15523 = vmatpush3.msra.mxu1 %v13981_v7 }
0x10d2   :  { %15491 = vmatprep.subr.mxu0 %v16397_v33  ;;  %15524 = vmatprep.subr.mxu1 %v16397_v33 }
0x10d3   :  { %15492 = vmatpush3.msra.mxu0 %v13984_v42  ;;  %15525 = vmatpush3.msra.mxu1 %v13980_v9  ;;  %v14025_v9 = vld [vmem:[%s18627_s8 + $0x9] ss:$0 sm:$0xff] }
0x10d4   :  { %15493 = vmatprep.subr.mxu0 %v16397_v33  ;;  %15526 = vmatprep.subr.mxu1 %v16397_v33 }
0x10d5   :  { %15494 = vmatpush3.msra.mxu0 %v13983_v21  ;;  %15495 = vmatprep.mubr.msk.f32.mxu0 %vm16398_vm3, %v16397_v33 }
0x10d6   :  { %15527 = vmatpush3.msra.mxu1 %v13979_v10  ;;  %15528 = vmatprep.mubr.msk.f32.mxu1 %vm16398_vm3, %v16397_v33 }
0x10d7   :  { %15496 = vmatmul.mubr.msk.f32.vlgmr.msra.gmra.mxu0 %vm1286_vm8, %v17461_v52  ;;  %15509 = vmatprep.subr.mxu0 %v16397_v33 }
0x10d8   :  { %15529 = vmatmul.mubr.msk.f32.vlgmr.msra.gmra.mxu1 %vm1286_vm8, %v17487_v59  ;;  %15542 = vmatprep.subr.mxu1 %v16397_v33 }
0x10d9   :  { %15510 = vmatpush3.msra.mxu0 %v13994_v25  ;;  %15543 = vmatpush3.msra.mxu1 %v13990_v11 }
0x10da   :  { %15511 = vmatprep.subr.mxu0 %v16397_v33  ;;  %15544 = vmatprep.subr.mxu1 %v16397_v33 }
0x10db   :  { %15512 = vmatpush3.msra.mxu0 %v13993_v26  ;;  %15545 = vmatpush3.msra.mxu1 %v13989_v12 }
0x10dc   :  { %15513 = vmatprep.subr.mxu0 %v16397_v33  ;;  %15546 = vmatprep.subr.mxu1 %v16397_v33 }
0x10dd   :  { %15514 = vmatpush3.msra.mxu0 %v13992_v8  ;;  %15547 = vmatpush3.msra.mxu1 %v13988_v18 }
0x10de   :  { %15515 = vmatprep.subr.mxu0 %v16397_v33  ;;  %15548 = vmatprep.subr.mxu1 %v16397_v33 }
0x10df   :  { %15516 = vmatpush3.msra.mxu0 %v13991_v1  ;;  %15517 = vmatprep.mubr.msk.f32.mxu0 %vm16398_vm3, %v16397_v33 }
0x10e0   :  { %15549 = vmatpush3.msra.mxu1 %v13987_v19  ;;  %15550 = vmatprep.mubr.msk.f32.mxu1 %vm16398_vm3, %v16397_v33 }
0x10e1   :  { %15518 = vmatmul.mubr.msk.f32.vlgmr.msra.gmra.mxu0 %vm1286_vm8, %v17461_v52  ;;  %15531 = vmatprep.subr.mxu0 %v16397_v33 }
0x10e2   :  { %15551 = vmatmul.mubr.msk.f32.vlgmr.msra.gmra.mxu1 %vm1286_vm8, %v17487_v59  ;;  %15564 = vmatprep.subr.mxu1 %v16397_v33 }
0x10e3   :  { %15532 = vmatpush3.msra.mxu0 %v13986_v24  ;;  %15565 = vmatpush3.msra.mxu1 %v13998_v28 }
0x10e4   :  { %15533 = vmatprep.subr.mxu0 %v16397_v33  ;;  %15566 = vmatprep.subr.mxu1 %v16397_v33 }
0x10e5   :  { %15534 = vmatpush3.msra.mxu0 %v13985_v17  ;;  %15567 = vmatpush3.msra.mxu1 %v13997_v23 }
0x10e6   :  { %15535 = vmatprep.subr.mxu0 %v16397_v33  ;;  %15568 = vmatprep.subr.mxu1 %v16397_v33 }
0x10e7   :  { %15536 = vmatpush3.msra.mxu0 %v13984_v42  ;;  %15569 = vmatpush3.msra.mxu1 %v13996_v29 }
0x10e8   :  { %15537 = vmatprep.subr.mxu0 %v16397_v33  ;;  %15570 = vmatprep.subr.mxu1 %v16397_v33 }
0x10e9   :  { %15538 = vmatpush3.msra.mxu0 %v13983_v21  ;;  %15539 = vmatprep.mubr.msk.f32.mxu0 %vm16398_vm3, %v16397_v33  ;;  %v14027_v21 = vld [vmem:[%s18627_s8 + $0xb] ss:$0 sm:$0xff] }
0x10ea   :  { %15571 = vmatpush3.msra.mxu1 %v13995_v20  ;;  %15572 = vmatprep.mubr.msk.f32.mxu1 %vm16398_vm3, %v16397_v33 }
0x10eb   :  { %15540 = vmatmul.mubr.msk.f32.vlgmr.msra.gmra.mxu0 %vm1286_vm8, %v17487_v59  ;;  %15553 = vmatprep.subr.mxu0 %v16397_v33 }
0x10ec   :  { %15573 = vmatmul.mubr.msk.f32.vlgmr.msra.gmra.mxu1 %vm1286_vm8, %v17461_v52  ;;  %15586 = vmatprep.subr.mxu1 %v16397_v33 }
0x10ed   :  { %15554 = vmatpush3.msra.mxu0 %v13994_v25  ;;  %15587 = vmatpush3.msra.mxu1 %v14006_v15 }
0x10ee   :  { %15555 = vmatprep.subr.mxu0 %v16397_v33  ;;  %15588 = vmatprep.subr.mxu1 %v16397_v33 }
0x10ef   :  { %15556 = vmatpush3.msra.mxu0 %v13993_v26  ;;  %15589 = vmatpush3.msra.mxu1 %v14005_v27 }
0x10f0   :  { %15557 = vmatprep.subr.mxu0 %v16397_v33  ;;  %15590 = vmatprep.subr.mxu1 %v16397_v33 }
0x10f1   :  { %15558 = vmatpush3.msra.mxu0 %v13992_v8  ;;  %15591 = vmatpush3.msra.mxu1 %v14004_v6 }
0x10f2   :  { %15559 = vmatprep.subr.mxu0 %v16397_v33  ;;  %15592 = vmatprep.subr.mxu1 %v16397_v33 }
0x10f3   :  { %15560 = vmatpush3.msra.mxu0 %v13991_v1  ;;  %15561 = vmatprep.mubr.msk.f32.mxu0 %vm16398_vm3, %v16397_v33 }
0x10f4   :  { %15593 = vmatpush3.msra.mxu1 %v14003_v44  ;;  %15594 = vmatprep.mubr.msk.f32.mxu1 %vm16398_vm3, %v16397_v33 }
0x10f5   :  { %15562 = vmatmul.mubr.msk.f32.vlgmr.msra.gmra.mxu0 %vm1286_vm8, %v17487_v59  ;;  %15575 = vmatprep.subr.mxu0 %v16397_v33 }
0x10f6   :  { %15595 = vmatmul.mubr.msk.f32.vlgmr.msra.gmra.mxu1 %vm1286_vm8, %v17461_v52  ;;  %15608 = vmatprep.subr.mxu1 %v16397_v33 }
0x10f7   :  { %15576 = vmatpush3.msra.mxu0 %v14002_v30  ;;  %15609 = vmatpush3.msra.mxu1 %v13998_v28 }
0x10f8   :  { %15577 = vmatprep.subr.mxu0 %v16397_v33  ;;  %15610 = vmatprep.subr.mxu1 %v16397_v33 }
0x10f9   :  { %15578 = vmatpush3.msra.mxu0 %v14001_v47  ;;  %15611 = vmatpush3.msra.mxu1 %v13997_v23 }
0x10fa   :  { %15579 = vmatprep.subr.mxu0 %v16397_v33  ;;  %15612 = vmatprep.subr.mxu1 %v16397_v33 }
0x10fb   :  { %15580 = vmatpush3.msra.mxu0 %v14000_v31  ;;  %15613 = vmatpush3.msra.mxu1 %v13996_v29 }
0x10fc   :  { %15581 = vmatprep.subr.mxu0 %v16397_v33  ;;  %15614 = vmatprep.subr.mxu1 %v16397_v33 }
0x10fd   :  { %15582 = vmatpush3.msra.mxu0 %v13999_v48  ;;  %15583 = vmatprep.mubr.msk.f32.mxu0 %vm16398_vm3, %v16397_v33 }
0x10fe   :  { %15615 = vmatpush3.msra.mxu1 %v13995_v20  ;;  %15616 = vmatprep.mubr.msk.f32.mxu1 %vm16398_vm3, %v16397_v33 }
0x10ff   :  { %15584 = vmatmul.mubr.msk.f32.vlgmr.msra.gmra.mxu0 %vm1286_vm8, %v17461_v52  ;;  %15597 = vmatprep.subr.mxu0 %v16397_v33 }
0x1100   :  { %15617 = vmatmul.mubr.msk.f32.vlgmr.msra.gmra.mxu1 %vm1286_vm8, %v17487_v59  ;;  %15630 = vmatprep.subr.mxu1 %v16397_v33 }
0x1101   :  { %15598 = vmatpush3.msra.mxu0 %v14010_v32  ;;  %15631 = vmatpush3.msra.mxu1 %v14006_v15 }
0x1102   :  { %15599 = vmatprep.subr.mxu0 %v16397_v33  ;;  %15632 = vmatprep.subr.mxu1 %v16397_v33 }
0x1103   :  { %15600 = vmatpush3.msra.mxu0 %v14009_v54  ;;  %15633 = vmatpush3.msra.mxu1 %v14005_v27  ;;  %v14044_v27 = vld [vmem:[%s18627_s8 + $0xc] ss:$0 sm:$0xff] }
0x1104   :  { %15601 = vmatprep.subr.mxu0 %v16397_v33  ;;  %15634 = vmatprep.subr.mxu1 %v16397_v33 }
0x1105   :  { %15602 = vmatpush3.msra.mxu0 %v14008_v22  ;;  %15635 = vmatpush3.msra.mxu1 %v14004_v6 }
0x1106   :  { %15603 = vmatprep.subr.mxu0 %v16397_v33  ;;  %15636 = vmatprep.subr.mxu1 %v16397_v33 }
0x1107   :  { %15604 = vmatpush3.msra.mxu0 %v14007_v34  ;;  %15605 = vmatprep.mubr.msk.f32.mxu0 %vm16398_vm3, %v16397_v33 }
0x1108   :  { %15637 = vmatpush3.msra.mxu1 %v14003_v44  ;;  %15638 = vmatprep.mubr.msk.f32.mxu1 %vm16398_vm3, %v16397_v33 }
0x1109   :  { %15606 = vmatmul.mubr.msk.f32.vlgmr.msra.gmra.mxu0 %vm1286_vm8, %v17461_v52  ;;  %15619 = vmatprep.subr.mxu0 %v16397_v33  ;;  %v14024_v52 = vld [vmem:[%s18627_s8 + $0x8] ss:$0 sm:$0xff] }
0x110a   :  { %15639 = vmatmul.mubr.msk.f32.vlgmr.msra.gmra.mxu1 %vm1286_vm8, %v17487_v59  ;;  %15620 = vmatpush3.msra.mxu0 %v14002_v30 }
0x110b   :  { %15621 = vmatprep.subr.mxu0 %v16397_v33  ;;  %15627 = vmatprep.mubr.msk.f32.mxu0 %vm16398_vm3, %v16397_v33 }
0x110c   :  { %15622 = vmatpush3.msra.mxu0 %v14001_v47  ;;  %15652 = vmatprep.subr.mxu1 %v16397_v33 }
0x110d   :  { %15623 = vmatprep.subr.mxu0 %v16397_v33  ;;  %15654 = vmatprep.mubr.msk.f32.mxu1 %vm16398_vm3, %v16397_v33 }
0x110e   :  { %15624 = vmatpush3.msra.mxu0 %v14000_v31 }
0x110f   :  { %15625 = vmatprep.subr.mxu0 %v16397_v33 }
0x1110   :  { %15626 = vmatpush3.msra.mxu0 %v13999_v48 }
0x1111   :  { %15628 = vmatmul.mubr.msk.f32.vlgmr.msra.gmra.mxu0 %vm1286_vm8, %v17487_v59  ;;  %15641 = vmatprep.subr.mxu0 %v16397_v33 }
0x1112   :  { %15642 = vmatpush3.msra.mxu0 %v14010_v32  ;;  %15649 = vmatprep.mubr.msk.f32.mxu0 %vm16398_vm3, %v16397_v33 }
0x1113   :  { %15643 = vmatprep.subr.mxu0 %v16397_v33 }
0x1114   :  { %15644 = vmatpush3.msra.mxu0 %v14009_v54 }
0x1115   :  { %15645 = vmatprep.subr.mxu0 %v16397_v33 }
0x1116   :  { %15646 = vmatpush3.msra.mxu0 %v14008_v22 }
0x1117   :  { %15647 = vmatprep.subr.mxu0 %v16397_v33 }
0x1118   :  { %15648 = vmatpush3.msra.mxu0 %v14007_v34 }
0x1119   :  { %15650 = vmatmul.mubr.msk.f32.vlgmr.msra.gmra.mxu0 %vm1286_vm8, %v17487_v59  ;;  %15662 = vmatprep.subr.mxu0 %v16397_v33  ;;  %v14026_v59 = vld [vmem:[%s18627_s8 + $0xa] ss:$0 sm:$0xff] }
0x111a   :  { %15664 = vmatprep.mubr.msk.f32.mxu0 %vm16398_vm3, %v16397_v33 }
0x1166   :  { %v6088_v36 = vpop.f32.mrf.mxu0  ;;  %v6228_v35 = vpop.f32.mrf.mxu1 }
0x1167   :  { %v6089_v53 = vadd.f32 %v14024_v52, %v6088_v36  ;;  %v6229_v62 = vadd.f32 %v14026_v59, %v6228_v35 }
0x1168   :  { %v15398_v51 = vpop.f32.mrf.mxu0  ;;  %v15420_v38 = vpop.f32.mrf.mxu1 }
0x1169   :  { %v6585_v57 = vmul.f32 0.35355338, %v6089_v53  ;;  %v6587_v5 = vmul.f32 0.35355338, %v6229_v62  ;;  %v14045_v51 = vld [vmem:[%s18627_s8 + $0xd] ss:$0 sm:$0xff] }
0x116f   :  { %v6158_v60 = vpop.f32.mrf.mxu0 }
0x1170   :  { %v6371_v39 = vpop.f32.mrf.mxu1  ;;  %v6159_v10 = vadd.f32 %v14025_v9, %v6158_v60 }
0x1171   :  { %v15409_v43 = vpop.f32.mrf.mxu0  ;;  %v6372_v11 = vadd.f32 %v14024_v52, %v6371_v39 }
0x1172   :  { %v15442_v2 = vpop.f32.mrf.mxu1  ;;  %v6586_v19 = vmul.f32 0.35355338, %v6159_v10 }
0x1173   :  { %v6589_v17 = vmul.f32 0.35355338, %v6372_v11 }
0x1179   :  { %v6298_v45 = vpop.f32.mrf.mxu0 }
0x117a   :  { %v6511_v46 = vpop.f32.mrf.mxu1  ;;  %v6299_v25 = vadd.f32 %v14027_v21, %v6298_v45 }
0x117b   :  { %v15431_v49 = vpop.f32.mrf.mxu0  ;;  %v6512_v26 = vadd.f32 %v14026_v59, %v6511_v46 }
0x117c   :  { %v15464_v50 = vpop.f32.mrf.mxu1  ;;  %v6588_v28 = vmul.f32 0.35355338, %v6299_v25 }
0x117d   :  { %v6591_v29 = vmul.f32 0.35355338, %v6512_v26 }
0x1183   :  { %v6441_v56 = vpop.f32.mrf.mxu0 }
0x1184   :  { %v6659_v40 = vpop.f32.mrf.mxu1  ;;  %v6442_v15 = vadd.f32 %v14025_v9, %v6441_v56 }
0x1185   :  { %15653 = vmatpush3.xpose.msk.msra.mxu1 %vm195_vm1, %v6659_v40  ;;  %v15453_v13 = vpop.f32.mrf.mxu0 }
0x1186   :  { %v15486_v58 = vpop.f32.mrf.mxu1  ;;  %15657 = vmatprep.subr.mxu1 %v16397_v33  ;;  %v6590_v30 = vmul.f32 0.35355338, %v6442_v15 }
0x1188   :  { %15655 = vmatmul.mubr.msk.f32.vlgmr.msra.gmra.mxu1 %vm195_vm1, %v6585_v57 }
0x1189   :  { %15659 = vmatprep.mubr.msk.f32.mxu1 %vm16398_vm3, %v16397_v33 }
0x118d   :  { %v6581_v63 = vpop.f32.mrf.mxu0 }
0x118e   :  { %v6799_v3 = vpop.f32.mrf.mxu1  ;;  %v6582_v32 = vadd.f32 %v14027_v21, %v6581_v63 }
0x118f   :  { %15663 = vmatpush3.xpose.msk.msra.mxu0 %vm195_vm1, %v6799_v3  ;;  %v15475_v4 = vpop.f32.mrf.mxu0 }
0x1190   :  { %v15508_v7 = vpop.f32.mrf.mxu1  ;;  %15672 = vmatprep.subr.mxu0 %v16397_v33  ;;  %v6592_v34 = vmul.f32 0.35355338, %v6582_v32 }
0x1192   :  { %15665 = vmatmul.mubr.msk.f32.vlgmr.msra.gmra.mxu0 %vm195_vm1, %v6587_v5 }
0x1193   :  { %15674 = vmatprep.mubr.msk.f32.mxu0 %vm16398_vm3, %v16397_v33 }
0x1197   :  { %v6729_v12 = vpop.f32.mrf.mxu0 }
0x1198   :  { %v6939_v18 = vpop.f32.mrf.mxu1  ;;  %15658 = vmatpush3.xpose.msk.msra.mxu1 %vm195_vm1, %v6729_v12 }
0x1199   :  { %15673 = vmatpush3.xpose.msk.msra.mxu0 %vm195_vm1, %v6939_v18  ;;  %v15497_v24 = vpop.f32.mrf.mxu0  ;;  %15667 = vmatprep.subr.mxu1 %v16397_v33 }
0x119a   :  { %v15530_v42 = vpop.f32.mrf.mxu1  ;;  %15682 = vmatprep.subr.mxu0 %v16397_v33 }
0x119b   :  { %15660 = vmatmul.mubr.msk.f32.vlgmr.msra.gmra.mxu1 %vm195_vm1, %v6586_v19 }
0x119c   :  { %15675 = vmatmul.mubr.msk.f32.vlgmr.msra.gmra.mxu0 %vm195_vm1, %v6589_v17  ;;  %15669 = vmatprep.mubr.msk.f32.mxu1 %vm16398_vm3, %v16397_v33 }
0x119d   :  { %15684 = vmatprep.mubr.msk.f32.mxu0 %vm16398_vm3, %v16397_v33 }
0x11a1   :  { %v6869_v8 = vpop.f32.mrf.mxu0 }
0x11a2   :  { %v7079_v1 = vpop.f32.mrf.mxu1  ;;  %15668 = vmatpush3.xpose.msk.msra.mxu1 %vm195_vm1, %v6869_v8 }
0x11a3   :  { %15683 = vmatpush3.xpose.msk.msra.mxu0 %vm195_vm1, %v7079_v1  ;;  %v15519_v23 = vpop.f32.mrf.mxu0  ;;  %15677 = vmatprep.subr.mxu1 %v16397_v33 }
0x11a4   :  { %v15552_v20 = vpop.f32.mrf.mxu1  ;;  %15692 = vmatprep.subr.mxu0 %v16397_v33 }
0x11a5   :  { %15670 = vmatmul.mubr.msk.f32.vlgmr.msra.gmra.mxu1 %vm195_vm1, %v6588_v28 }
0x11a6   :  { %15685 = vmatmul.mubr.msk.f32.vlgmr.msra.gmra.mxu0 %vm195_vm1, %v6591_v29  ;;  %15679 = vmatprep.mubr.msk.f32.mxu1 %vm16398_vm3, %v16397_v33 }
0x11a7   :  { %15694 = vmatprep.mubr.msk.f32.mxu0 %vm16398_vm3, %v16397_v33 }
0x11ab   :  { %v7009_v6 = vpop.f32.mrf.mxu0 }
0x11ac   :  { %v7243_v44 = vpop.f32.mrf.mxu1  ;;  %15678 = vmatpush3.xpose.msk.msra.mxu1 %vm195_vm1, %v7009_v6 }
0x11ad   :  { %v7244_v47 = vadd.f32 %v14044_v27, %v7243_v44  ;;  %v15541_v31 = vpop.f32.mrf.mxu0  ;;  %15687 = vmatprep.subr.mxu1 %v16397_v33 }
0x11ae   :  { %v15574_v48 = vpop.f32.mrf.mxu1 }
0x11af   :  { %15693 = vmatpush3.msra.mxu0 %v7244_v47  ;;  %15680 = vmatmul.mubr.msk.f32.vlgmr.msra.gmra.mxu1 %vm195_vm1, %v6590_v30 }
0x11b0   :  { %15689 = vmatprep.mubr.msk.f32.mxu1 %vm16398_vm3, %v16397_v33  ;;  %15702 = vmatprep.subr.mxu0 %v16397_v33 }
0x11b5   :  { %v7149_v54 = vpop.f32.mrf.mxu0 }
0x11b6   :  { %v17824_v22 = vpop.f32.mrf.mxu1  ;;  %15688 = vmatpush3.xpose.msk.msra.mxu1 %vm195_vm1, %v7149_v54 }
0x11b7   :  { %v15563_v36 = vpop.f32.mrf.mxu0  ;;  %15697 = vmatprep.subr.mxu1 %v16397_v33 }
0x11b8   :  { %v15596_v35 = vpop.f32.mrf.mxu1 }
0x11b9   :  { %15690 = vmatmul.mubr.msk.f32.vlgmr.msra.gmra.mxu1 %vm195_vm1, %v6592_v34 }
0x11ba   :  { %15699 = vmatprep.mubr.msk.f32.mxu1 %vm16398_vm3, %v16397_v33 }
0x11bf   :  { %v7313_v38 = vpop.f32.mrf.mxu0 }
0x11c0   :  { %v7314_v60 = vadd.f32 %v14045_v51, %v7313_v38  ;;  %v7523_v39 = vpop.f32.mrf.mxu1 }
0x11c1   :  { %v17834_v43 = vadd.f32 %v14044_v27, %v7523_v39  ;;  %v15585_v2 = vpop.f32.mrf.mxu0 }
0x11c2   :  { %v15618_v45 = vpop.f32.mrf.mxu1  ;;  %15698 = vmatpush3.msra.mxu1 %v7314_v60 }
0x11c3   :  { %15707 = vmatprep.subr.mxu1 %v16397_v33 }
0x11c9   :  { %v17837_v46 = vpop.f32.mrf.mxu0 }
0x11ca   :  { %v17839_v49 = vpop.f32.mrf.mxu1 }
0x11cb   :  { %v15607_v50 = vpop.f32.mrf.mxu0 }
0x11cc   :  { %v15640_v52 = vpop.f32.mrf.mxu1 }
0x11d1   :  { %v7593_v53 = vpop.f32.mrf.mxu0 }
0x11d2   :  { %v17841_v56 = vadd.f32 %v14045_v51, %v7593_v53 }
0x11d3   :  { %v15629_v40 = vpop.f32.mrf.mxu0 }
0x11d9   :  { %v17843_v13 = vpop.f32.mrf.mxu0 }
0x11db   :  { %v15651_v57 = vpop.f32.mrf.mxu0 }
0x1248   :  { %v7809_v58 = vpop.f32.mrf.mxu1 }
0x1249   :  { %v8345_v59 = vsel %vm195_vm1, %v7809_v58, -inf }
0x124a   :  { %8346 = vmax.xlane.f32.xlu0 %v8345_v59  ;;  %v15656_v62 = vpop.f32.mrf.mxu1 }
0x1252   :  { %v7961_v63 = vpop.f32.mrf.mxu0 }
0x1253   :  { %v8351_v3 = vsel %vm195_vm1, %v7961_v63, -inf }
0x1254   :  { %8352 = vmax.xlane.f32.xlu0 %v8351_v3  ;;  %v15666_v4 = vpop.f32.mrf.mxu0 }
0x125b   :  { %v7885_v5 = vpop.f32.mrf.mxu1 }
0x125c   :  { %v8113_v7 = vpop.f32.mrf.mxu0  ;;  %v8348_v9 = vsel %vm195_vm1, %v7885_v5, -inf }
0x125d   :  { %8349 = vmax.xlane.f32.xlu1 %v8348_v9  ;;  %v15661_v10 = vpop.f32.mrf.mxu1  ;;  %v8357_v11 = vsel %vm195_vm1, %v8113_v7, -inf }
0x125e   :  { %8358 = vmax.xlane.f32.xlu0 %v8357_v11  ;;  %v15676_v12 = vpop.f32.mrf.mxu0 }
0x1265   :  { %v8037_v18 = vpop.f32.mrf.mxu1 }
0x1266   :  { %v8265_v19 = vpop.f32.mrf.mxu0  ;;  %v8354_v24 = vsel %vm195_vm1, %v8037_v18, -inf }
0x1267   :  { %8355 = vmax.xlane.f32.xlu1 %v8354_v24  ;;  %v15671_v17 = vpop.f32.mrf.mxu1  ;;  %v8363_v42 = vsel %vm195_vm1, %v8265_v19, -inf }
0x1268   :  { %8364 = vmax.xlane.f32.xlu0 %v8363_v42  ;;  %v15686_v21 = vpop.f32.mrf.mxu0  ;;  %v14046_v42 = vld [vmem:[%s18627_s8 + $0xe] ss:$0 sm:$0xff] }
0x126f   :  { %v8189_v25 = vpop.f32.mrf.mxu1 }
0x1270   :  { %v8360_v26 = vsel %vm195_vm1, %v8189_v25, -inf }
0x1271   :  { %8361 = vmax.xlane.f32.xlu1 %v8360_v26  ;;  %v15681_v8 = vpop.f32.mrf.mxu1  ;;  %v7384_v26 = vadd.f32 %v14046_v42, %v17824_v22 }
0x1279   :  { %v8341_v1 = vpop.f32.mrf.mxu1 }
0x127a   :  { %v8366_v28 = vsel %vm195_vm1, %v8341_v1, -inf }
0x127b   :  { %8367 = vmax.xlane.f32.xlu1 %v8366_v28  ;;  %v15691_v23 = vpop.f32.mrf.mxu1 }
0x12d3   :  { %v8347_v29 = vpop.xlane.xlu0 %8346 }
0x12d4   :  { %v8369_v20 = vsub.f32 %v7809_v58, %v8347_v29 }
0x12d6   :  { %v8377_v15 = vmul.f32 1.442695, %v8369_v20  ;;  %v14047_v20 = vld [vmem:[%s18627_s8 + $0xf] ss:$0 sm:$0xff] }
0x12d8   :  { %16291 = vpow2.f32 %v8377_v15 }
0x12dd   :  { %v8353_v27 = vpop.xlane.xlu0 %8352 }
0x12de   :  { %v8371_v6 = vsub.f32 %v7961_v63, %v8353_v27 }
0x12e0   :  { %v8381_v44 = vmul.f32 1.442695, %v8371_v6 }
0x12e2   :  { %16293 = vpow2.f32 %v8381_v44  ;;  %v7454_v44 = vadd.f32 %v14047_v20, %v17837_v46 }
0x12e5   :  { %v16292_v30 = vpop.eup %16291 }
0x12e6   :  { %v8350_v47 = vpop.xlane.xlu1 %8349  ;;  %v8393_v31 = vsel %vm195_vm1, %v16292_v30, 0.0 }
0x12e7   :  { %v8370_v48 = vsub.f32 %v7885_v5, %v8350_v47  ;;  %v8359_v32 = vpop.xlane.xlu0 %8358  ;;  %8394 = vadd.xlane.f32.xlu0 %v8393_v31 }
0x12e8   :  { %v8373_v54 = vsub.f32 %v8113_v7, %v8359_v32 }
0x12e9   :  { %v8379_v34 = vmul.f32 1.442695, %v8370_v48 }
0x12ea   :  { %v8385_v36 = vmul.f32 1.442695, %v8373_v54 }
0x12eb   :  { %16295 = vpow2.f32 %v8379_v34 }
0x12ec   :  { %16297 = vpow2.f32 %v8385_v36  ;;  %v7734_v36 = vadd.f32 %v14047_v20, %v17843_v13  ;;  %v14019_v13 = vld [vmem:[%s18628_s9 + $0x20] sm:$0xff] }
0x12ef   :  { %v16294_v35 = vpop.eup %16293 }
0x12f0   :  { %v8356_v51 = vpop.xlane.xlu1 %8355  ;;  %v8399_v38 = vsel %vm195_vm1, %v16294_v35, 0.0 }
0x12f1   :  { %v8372_v60 = vsub.f32 %v8037_v18, %v8356_v51  ;;  %v8365_v39 = vpop.xlane.xlu0 %8364  ;;  %8400 = vadd.xlane.f32.xlu0 %v8399_v38  ;;  %v14020_v51 = vld [vmem:[%s18628_s9 + $0x28] sm:$0xff]  ;;  %v14021_v38 = vld [vmem:[%s18628_s9 + $0x30] sm:$0xff] }
0x12f2   :  { %v8375_v2 = vsub.f32 %v8265_v19, %v8365_v39 }
0x12f3   :  { %v8383_v45 = vmul.f32 1.442695, %v8372_v60 }
0x12f4   :  { %v8389_v50 = vmul.f32 1.442695, %v8375_v2 }
0x12f5   :  { %16299 = vpow2.f32 %v8383_v45 }
0x12f6   :  { %16301 = vpow2.f32 %v8389_v50  ;;  %v14022_v50 = vld [vmem:[%s18628_s9 + $0x38] sm:$0xff] }
0x12f8   :  { %v16296_v52 = vpop.eup %16295 }
0x12f9   :  { %v16298_v53 = vpop.eup %16297  ;;  %v8396_v40 = vsel %vm195_vm1, %v16296_v52, 0.0 }
0x12fa   :  { %v8362_v57 = vpop.xlane.xlu1 %8361  ;;  %8397 = vadd.xlane.f32.xlu1 %v8396_v40  ;;  %v8405_v58 = vsel %vm195_vm1, %v16298_v53, 0.0 }
0x12fb   :  { %v8374_v59 = vsub.f32 %v8189_v25, %v8362_v57  ;;  %8406 = vadd.xlane.f32.xlu0 %v8405_v58 }
0x12fd   :  { %v8387_v62 = vmul.f32 1.442695, %v8374_v59 }
0x12ff   :  { %16303 = vpow2.f32 %v8387_v62 }
0x1302   :  { %v16300_v63 = vpop.eup %16299 }
0x1303   :  { %v16302_v3 = vpop.eup %16301  ;;  %v8402_v4 = vsel %vm195_vm1, %v16300_v63, 0.0 }
0x1304   :  { %v8368_v5 = vpop.xlane.xlu1 %8367  ;;  %8403 = vadd.xlane.f32.xlu1 %v8402_v4  ;;  %v8411_v7 = vsel %vm195_vm1, %v16302_v3, 0.0 }
0x1305   :  { %v8376_v9 = vsub.f32 %v8341_v1, %v8368_v5  ;;  %8412 = vadd.xlane.f32.xlu0 %v8411_v7 }
0x1307   :  { %v8391_v10 = vmul.f32 1.442695, %v8376_v9 }
0x1309   :  { %16305 = vpow2.f32 %v8391_v10 }
0x130c   :  { %v16304_v11 = vpop.eup %16303 }
0x130d   :  { %v8408_v12 = vsel %vm195_vm1, %v16304_v11, 0.0 }
0x130e   :  { %8409 = vadd.xlane.f32.xlu1 %v8408_v12 }
0x1316   :  { %v17860_v18 = vpop.eup %16305 }
0x1317   :  { %v8414_v19 = vsel %vm195_vm1, %v17860_v18, 0.0 }
0x1318   :  { %8415 = vadd.xlane.f32.xlu1 %v8414_v19 }
0x1370   :  { %v8395_v24 = vpop.xlane.xlu0 %8394 }
0x1371   :  { %16307 = vrcp.f32 %v8395_v24 }
0x137a   :  { %v8401_v17 = vpop.xlane.xlu0 %8400 }
0x137b   :  { %16309 = vrcp.f32 %v8401_v17 }
0x137e   :  { %v16308_v21 = vpop.eup %16307 }
0x137f   :  { %v8418_v25 = vmul.f32 %v16308_v21, %v16292_v30 }
0x1381   :  { %15695 = vmatmul.mubr.msk.f32.vlgmr.msra.gmra.mxu0 %vm195_vm1, %v8418_v25  ;;  %v17948_v25 = vld [vmem:[%s18629_s10 + $0x8] sm:$0x3f] }
0x1382   :  { %15703 = vmatpush3.msra.mxu0 %v7384_v26  ;;  %15704 = vmatprep.mubr.msk.f32.mxu0 %vm16398_vm3, %v16397_v33  ;;  %v9610_v26 = vrot.slane %v17948_v25, %v17312_v0 }
0x1383   :  { %v8398_v8 = vpop.xlane.xlu1 %8397  ;;  %15712 = vmatprep.subr.mxu0 %v16397_v33 }
0x1384   :  { %16311 = vrcp.f32 %v8398_v8  ;;  %v8407_v1 = vpop.xlane.xlu0 %8406 }
0x1385   :  { %16313 = vrcp.f32 %v8407_v1 }
0x1388   :  { %v16310_v28 = vpop.eup %16309 }
0x1389   :  { %v8422_v23 = vmul.f32 %v16310_v28, %v16294_v35 }
0x138b   :  { %15705 = vmatmul.mubr.msk.f32.vlgmr.msra.gmra.mxu0 %vm195_vm1, %v8422_v23 }
0x138c   :  { %15713 = vmatpush3.msra.mxu0 %v17834_v43  ;;  %15714 = vmatprep.mubr.msk.f32.mxu0 %vm16398_vm3, %v16397_v33  ;;  %v7664_v43 = vadd.f32 %v14046_v42, %v17839_v49 }
0x138d   :  { %v8404_v22 = vpop.xlane.xlu1 %8403  ;;  %15722 = vmatprep.subr.mxu0 %v16397_v33 }
0x138e   :  { %16315 = vrcp.f32 %v8404_v22  ;;  %v8413_v29 = vpop.xlane.xlu0 %8412 }
0x138f   :  { %16317 = vrcp.f32 %v8413_v29 }
0x1391   :  { %v16312_v15 = vpop.eup %16311 }
0x1392   :  { %v16314_v27 = vpop.eup %16313  ;;  %v8420_v6 = vmul.f32 %v16312_v15, %v16296_v52 }
0x1393   :  { %v8426_v30 = vmul.f32 %v16314_v27, %v16298_v53 }
0x1394   :  { %15700 = vmatmul.mubr.msk.f32.vlgmr.msra.gmra.mxu1 %vm195_vm1, %v8420_v6 }
0x1395   :  { %15708 = vmatpush3.msra.mxu1 %v7454_v44  ;;  %15715 = vmatmul.mubr.msk.f32.vlgmr.msra.gmra.mxu0 %vm195_vm1, %v8426_v30 }
0x1396   :  { %15723 = vmatpush3.msra.mxu0 %v7664_v43  ;;  %15709 = vmatprep.mubr.msk.f32.mxu1 %vm16398_vm3, %v16397_v33 }
0x1397   :  { %v8410_v47 = vpop.xlane.xlu1 %8409  ;;  %15717 = vmatprep.subr.mxu1 %v16397_v33  ;;  %15724 = vmatprep.mubr.msk.f32.mxu0 %vm16398_vm3, %v16397_v33 }
0x1398   :  { %16319 = vrcp.f32 %v8410_v47  ;;  %15732 = vmatprep.subr.mxu0 %v16397_v33 }
0x139b   :  { %v16316_v46 = vpop.eup %16315 }
0x139c   :  { %v16318_v49 = vpop.eup %16317  ;;  %v8424_v31 = vmul.f32 %v16316_v46, %v16300_v63 }
0x139d   :  { %v8430_v48 = vmul.f32 %v16318_v49, %v16302_v3 }
0x139e   :  { %15710 = vmatmul.mubr.msk.f32.vlgmr.msra.gmra.mxu1 %vm195_vm1, %v8424_v31 }
0x139f   :  { %15718 = vmatpush3.msra.mxu1 %v17841_v56  ;;  %15725 = vmatmul.mubr.msk.f32.vlgmr.msra.gmra.mxu0 %vm195_vm1, %v8430_v48 }
0x13a0   :  { %15719 = vmatprep.mubr.msk.f32.mxu1 %vm16398_vm3, %v16397_v33  ;;  %15727 = vmatprep.subr.mxu1 %v16397_v33 }
0x13a1   :  { %v8416_v32 = vpop.xlane.xlu1 %8415  ;;  %15734 = vmatprep.mubr.msk.f32.mxu0 %vm16398_vm3, %v16397_v33  ;;  %15733 = vmatpush3.msra.mxu0 %v14019_v13 }
0x13a2   :  { %16321 = vrcp.f32 %v8416_v32  ;;  %15742 = vmatprep.subr.mxu0 %v16397_v33 }
0x13a5   :  { %v16320_v54 = vpop.eup %16319 }
0x13a6   :  { %v8428_v34 = vmul.f32 %v16320_v54, %v16304_v11 }
0x13a8   :  { %15720 = vmatmul.mubr.msk.f32.vlgmr.msra.gmra.mxu1 %vm195_vm1, %v8428_v34 }
0x13a9   :  { %15728 = vmatpush3.msra.mxu1 %v7734_v36  ;;  %15729 = vmatprep.mubr.msk.f32.mxu1 %vm16398_vm3, %v16397_v33 }
0x13aa   :  { %15737 = vmatprep.subr.mxu1 %v16397_v33 }
0x13af   :  { %v16322_v56 = vpop.eup %16321 }
0x13b0   :  { %v8432_v35 = vmul.f32 %v16322_v56, %v17860_v18 }
0x13b2   :  { %15730 = vmatmul.mubr.msk.f32.vlgmr.msra.gmra.mxu1 %vm195_vm1, %v8432_v35 }
0x13b3   :  { %15739 = vmatprep.mubr.msk.f32.mxu1 %vm16398_vm3, %v16397_v33  ;;  %15738 = vmatpush3.msra.mxu1 %v14020_v51 }
0x13b4   :  { %15747 = vmatprep.subr.mxu1 %v16397_v33 }
0x1441   :  { %v8502_v60 = vpop.f32.mrf.mxu0 }
0x1442   :  { %15735 = vmatmul.mubr.msk.f32.vlgmr.msra.gmra.mxu0 %vm195_vm1, %v8502_v60  ;;  %v14090_v60 = vld [vmem:[%s18630_s11 + $0x30] sm:$0xff] }
0x1443   :  { %v15696_v39 = vpop.f32.mrf.mxu0  ;;  %15743 = vmatpush3.msra.mxu0 %v14021_v38  ;;  %15744 = vmatprep.mubr.msk.f32.mxu0 %vm16398_vm3, %v16397_v33 }
0x1444   :  { %15752 = vmatprep.subr.mxu0 %v16397_v33  ;;  %v14089_v39 = vld [vmem:[%s18630_s11 + $0x28] sm:$0xff] }
0x144b   :  { %v8648_v2 = vpop.f32.mrf.mxu0 }
0x144c   :  { %15745 = vmatmul.mubr.msk.f32.vlgmr.msra.gmra.mxu0 %vm195_vm1, %v8648_v2  ;;  %v14088_v2 = vld [vmem:[%s18630_s11 + $0x20] sm:$0xff] }
0x144d   :  { %v15706_v45 = vpop.f32.mrf.mxu0  ;;  %15753 = vmatpush3.msra.mxu0 %v14019_v13  ;;  %15754 = vmatprep.mubr.msk.f32.mxu0 %vm16398_vm3, %v16397_v33 }
0x144e   :  { %15762 = vmatprep.subr.mxu0 %v16397_v33 }
0x1454   :  { %v8575_v52 = vpop.f32.mrf.mxu1 }
0x1455   :  { %v8794_v53 = vpop.f32.mrf.mxu0  ;;  %15740 = vmatmul.mubr.msk.f32.vlgmr.msra.gmra.mxu1 %vm195_vm1, %v8575_v52 }
0x1456   :  { %15755 = vmatmul.mubr.msk.f32.vlgmr.msra.gmra.mxu0 %vm195_vm1, %v8794_v53  ;;  %v15701_v40 = vpop.f32.mrf.mxu1  ;;  %15748 = vmatpush3.msra.mxu1 %v14022_v50  ;;  %v9644_v53 = vrot.slane %v17948_v25, %v17349_v41 }
0x1457   :  { %v15716_v57 = vpop.f32.mrf.mxu0  ;;  %15749 = vmatprep.mubr.msk.f32.mxu1 %vm16398_vm3, %v16397_v33  ;;  %15763 = vmatpush3.msra.mxu0 %v14021_v38  ;;  %v14091_v38 = vld [vmem:[%s18630_s11 + $0x38] sm:$0xff] }
0x1458   :  { %15764 = vmatprep.mubr.msk.f32.mxu0 %vm16398_vm3, %v16397_v33  ;;  %15757 = vmatprep.subr.mxu1 %v16397_v33 }
0x1459   :  { %15772 = vmatprep.subr.mxu0 %v14091_v38 }
0x145e   :  { %v8721_v58 = vpop.f32.mrf.mxu1 }
0x145f   :  { %v8940_v59 = vpop.f32.mrf.mxu0  ;;  %15750 = vmatmul.mubr.msk.f32.vlgmr.msra.gmra.mxu1 %vm195_vm1, %v8721_v58  ;;  %v9650_v58 = vrot.slane %v17948_v25, %v17352_v61 }
0x1460   :  { %15765 = vmatmul.mubr.msk.f32.vlgmr.msra.gmra.mxu0 %vm195_vm1, %v8940_v59  ;;  %v15711_v62 = vpop.f32.mrf.mxu1  ;;  %15758 = vmatpush3.msra.mxu1 %v14020_v51 }
0x1461   :  { %v15726_v63 = vpop.f32.mrf.mxu0  ;;  %15759 = vmatprep.mubr.msk.f32.mxu1 %vm16398_vm3, %v16397_v33  ;;  %15767 = vmatprep.subr.mxu1 %v16397_v33 }
0x1462   :  { %15773 = vmatpush3.msra.mxu0 %v14091_v38 }
0x1463   :  { %15774 = vmatprep.subr.mxu0 %v14090_v60 }
0x1464   :  { %15775 = vmatpush3.msra.mxu0 %v14090_v60 }
0x1465   :  { %15776 = vmatprep.subr.mxu0 %v14089_v39 }
0x1466   :  { %15777 = vmatpush3.msra.mxu0 %v14089_v39 }
0x1467   :  { %15778 = vmatprep.subr.mxu0 %v14088_v2 }
0x1468   :  { %v8867_v3 = vpop.f32.mrf.mxu1  ;;  %15779 = vmatpush3.msra.mxu0 %v14088_v2 }
0x1469   :  { %15760 = vmatmul.mubr.msk.f32.vlgmr.msra.gmra.mxu1 %vm195_vm1, %v8867_v3  ;;  %15802 = vmatprep.subr.mxu0 %v16397_v33 }
0x146a   :  { %v15721_v4 = vpop.f32.mrf.mxu1  ;;  %15768 = vmatpush3.msra.mxu1 %v14022_v50  ;;  %15769 = vmatprep.mubr.msk.f32.mxu1 %vm16398_vm3, %v16397_v33 }
0x1472   :  { %v9013_v5 = vpop.f32.mrf.mxu1 }
0x1473   :  { %15770 = vmatmul.mubr.msk.f32.vlgmr.msra.gmra.mxu1 %vm195_vm1, %v9013_v5 }
0x1474   :  { %v15731_v7 = vpop.f32.mrf.mxu1 }
0x1502   :  { %v9086_v9 = vpop.f32.mrf.mxu0 }
0x1504   :  { %v15736_v10 = vpop.f32.mrf.mxu0 }
0x150c   :  { %v9232_v11 = vpop.f32.mrf.mxu0 }
0x150e   :  { %v15746_v12 = vpop.f32.mrf.mxu0 }
0x150f   :  { %v14102_v12 = vld [vmem:[%s18632_s13 + $0x70] sm:$0xff] }
0x1515   :  { %v9159_v18 = vpop.f32.mrf.mxu1 }
0x1516   :  { %v9378_v19 = vpop.f32.mrf.mxu0  ;;  %v9601_v42 = vadd.f32 %v9159_v18, %v9086_v9  ;;  %v14101_v18 = vld [vmem:[%s18632_s13 + $0x68] sm:$0xff] }
0x1517   :  { %v15741_v24 = vpop.f32.mrf.mxu1 }
0x1518   :  { %v15756_v17 = vpop.f32.mrf.mxu0  ;;  %v9603_v21 = vadd.f32 %v9601_v42, %v9232_v11  ;;  %v14103_v11 = vld [vmem:[%s18632_s13 + $0x78] sm:$0xff]  ;;  %v14097_v42 = vld [vmem:[%s18632_s13 + $0x48] sm:$0xff] }
0x1519   :  { %15783 = vmatprep.subr.mxu1 %v14103_v11  ;;  %v14099_v24 = vld [vmem:[%s18632_s13 + $0x58] sm:$0xff]  ;;  %v14098_v17 = vld [vmem:[%s18632_s13 + $0x50] sm:$0xff] }
0x151a   :  { %15784 = vmatpush3.msra.mxu1 %v14103_v11 }
0x151b   :  { %15785 = vmatprep.subr.mxu1 %v14102_v12 }
0x151c   :  { %15786 = vmatpush3.msra.mxu1 %v14102_v12 }
0x151d   :  { %15787 = vmatprep.subr.mxu1 %v14101_v18 }
0x151e   :  { %15788 = vmatpush3.msra.mxu1 %v14101_v18 }
0x151f   :  { %v9305_v8 = vpop.f32.mrf.mxu1 }
0x1520   :  { %v9605_v1 = vadd.f32 %v9603_v21, %v9305_v8  ;;  %v9524_v28 = vpop.f32.mrf.mxu0  ;;  %v14096_v21 = vld [vmem:[%s18632_s13 + $0x40] sm:$0xff] }
0x1521   :  { %v15751_v23 = vpop.f32.mrf.mxu1 }
0x1522   :  { %v9611_v22 = vadd.f32 %v9610_v26, %v9605_v1  ;;  %v15766_v29 = vpop.f32.mrf.mxu0 }
0x1524   :  { %v17953_v20 = vadd.f32 %v9611_v22, %v17402_v55 }
0x1526   :  { %v9615_v15 = vsel %vm1286_vm8, %v17953_v20, 0.0 }
0x1527   :  { %9616 = vadd.xlane.f32.xlu0 %v9615_v15 }
0x1529   :  { %v9451_v27 = vpop.f32.mrf.mxu1 }
0x152a   :  { %v9602_v44 = vadd.f32 %v9451_v27, %v9378_v19  ;;  %v14100_v19 = vld [vmem:[%s18632_s13 + $0x60] sm:$0xff] }
0x152b   :  { %v15761_v6 = vpop.f32.mrf.mxu1  ;;  %15789 = vmatprep.subr.mxu1 %v14100_v19 }
0x152c   :  { %v9604_v30 = vadd.f32 %v9602_v44, %v9524_v28  ;;  %15790 = vmatpush3.msra.mxu1 %v14100_v19 }
0x152d   :  { %15791 = vmatprep.subr.mxu1 %v14099_v24 }
0x152e   :  { %15792 = vmatpush3.msra.mxu1 %v14099_v24 }
0x152f   :  { %15793 = vmatprep.subr.mxu1 %v14098_v17 }
0x1530   :  { %15794 = vmatpush3.msra.mxu1 %v14098_v17 }
0x1531   :  { %15795 = vmatprep.subr.mxu1 %v14097_v42 }
0x1532   :  { %15796 = vmatpush3.msra.mxu1 %v14097_v42 }
0x1533   :  { %v9597_v43 = vpop.f32.mrf.mxu1  ;;  %15797 = vmatprep.subr.mxu1 %v14096_v21 }
0x1534   :  { %v9606_v47 = vadd.f32 %v9604_v30, %v9597_v43  ;;  %15798 = vmatpush3.msra.mxu1 %v14096_v21 }
0x1535   :  { %v15771_v46 = vpop.f32.mrf.mxu1  ;;  %15824 = vmatprep.subr.mxu1 %v16397_v33 }
0x1536   :  { %v9612_v49 = vadd.f32 %v9610_v26, %v9606_v47  ;;  %v14095_v26 = vld [vmem:[%s18631_s12 + $0x1] ss:$0 sm:$0xff]  ;;  %s16375_s12 = scalar_lea.vmem %s13845_s30, 32 }
0x1537   :  { %p16376_p0 = scmp.ne.s32.totalorder %s13845_s30, %s16375_s12  ;;  %p16381_p2 = scmp.lt.s32.totalorder %s16375_s12, %s16375_s12 }
0x1538   :  { %v17958_v31 = vadd.f32 %v9612_v49, %v17399_v16 }
0x1539   :  { %p16382_p3 = por %p16381_p2, %p16380_p1 }
0x153a   :  { %v9618_v48 = vsel %vm1286_vm8, %v17958_v31, 0.0 }
0x153b   :  { %9619 = vadd.xlane.f32.xlu1 %v9618_v48  ;;  %p16383_p4 = pnand %p16382_p3, %p16376_p0 }
0x15b0   :  { %v9617_v55 = vpop.xlane.xlu0 %9616 }
0x15b1   :  { %v9621_v32 = vmul.f32 0.03125, %v9617_v55 }
0x15b3   :  { %v9623_v54 = vsub.f32 %v17953_v20, %v9621_v32 }
0x15b5   :  { %v9625_v34 = vmul.f32 %v9623_v54, %v9623_v54 }
0x15b7   :  { %v9627_v36 = vsel %vm1286_vm8, %v9625_v34, 0.0 }
0x15b8   :  { %9628 = vadd.xlane.f32.xlu0 %v9627_v36 }
0x15c4   :  { %v9620_v56 = vpop.xlane.xlu1 %9619 }
0x15c5   :  { %v9622_v35 = vmul.f32 0.03125, %v9620_v56 }
0x15c7   :  { %v9624_v13 = vsub.f32 %v17958_v31, %v9622_v35 }
0x15c9   :  { %v9626_v51 = vmul.f32 %v9624_v13, %v9624_v13 }
0x15cb   :  { %v9630_v16 = vsel %vm1286_vm8, %v9626_v51, 0.0 }
0x15cc   :  { %9631 = vadd.xlane.f32.xlu1 %v9630_v16 }
0x1641   :  { %v9629_v45 = vpop.xlane.xlu0 %9628 }
0x1642   :  { %v9633_v50 = vmul.f32 0.03125, %v9629_v45 }
0x1644   :  { %v9635_v52 = vadd.f32 1e-05, %v9633_v50 }
0x1646   :  { %16323 = vrsqrt.f32 %v9635_v52 }
0x1653   :  { %v16324_v40 = vpop.eup %16323 }
0x1654   :  { %v9639_v57 = vmul.f32 %v16324_v40, %v9623_v54 }
0x1655   :  { %v9632_v59 = vpop.xlane.xlu1 %9631 }
0x1656   :  { %v9634_v62 = vmul.f32 0.03125, %v9632_v59  ;;  %v9645_v63 = vmul.f32 %v9644_v53, %v9639_v57 }
0x1658   :  { %v9636_v3 = vadd.f32 1e-05, %v9634_v62  ;;  %v9651_v4 = vadd.f32 %v9650_v58, %v9645_v63 }
0x165a   :  { %16325 = vrsqrt.f32 %v9636_v3  ;;  %15780 = vmatprep.mubr.msk.f32.mxu0 %vm1286_vm8, %v9651_v4 }
0x1667   :  { %v16326_v5 = vpop.eup %16325 }
0x1668   :  { %v9640_v7 = vmul.f32 %v16326_v5, %v9624_v13 }
0x166a   :  { %v9646_v9 = vmul.f32 %v9644_v53, %v9640_v7 }
0x166c   :  { %v9652_v10 = vadd.f32 %v9650_v58, %v9646_v9 }
0x166e   :  { %15781 = vmatmul.mubr.msk.f32.vlgmr.msra.gmra.mxu0 %vm1286_vm8, %v9652_v10 }
0x166f   :  { %15810 = vmatprep.mubr.msk.f32.mxu0 %vm16398_vm3, %v16397_v33 }
0x172e   :  { %v15782_v8 = vpop.f32.mrf.mxu0 }
0x172f   :  { %v9748_v1 = vadd.f32 %v15782_v8, %v14095_v26 }
0x1730   :  { %v9730_v28 = vpop.f32.mrf.mxu0 }
0x1731   :  { %v9752_v23 = vmul.f32 0.70710677, %v9748_v1  ;;  %v9747_v22 = vadd.f32 %v14095_v26, %v9730_v28  ;;  %v9750_v17 = vmul.f32 0.5, %v9748_v1  ;;  %v9896_v26 = vrot.slane %v17948_v25, %v5886_v14 }
0x1733   :  { %v9754_v29 = vand.u32 2147483647, %v9752_v23  ;;  %v9751_v15 = vmul.f32 0.70710677, %v9747_v22  ;;  %vm9794_vm14 = vcmp.ge.f32.partialorder %v9752_v23, 0.0  ;;  %v9749_v19 = vmul.f32 0.5, %v9747_v22 }
0x1735   :  { %v9756_v27 = vmul.f32 0.3275911, %v9754_v29  ;;  %v9753_v6 = vand.u32 2147483647, %v9751_v15  ;;  %v9782_v47 = vsub.f32 0.0, %v9754_v29  ;;  %vm9793_vm15 = vcmp.ge.f32.partialorder %v9751_v15, 0.0 }
0x1737   :  { %v9758_v44 = vadd.f32 1.0, %v9756_v27  ;;  %v9755_v30 = vmul.f32 0.3275911, %v9753_v6  ;;  %v9781_v46 = vsub.f32 0.0, %v9753_v6  ;;  %v9784_v49 = vmul.f32 %v9782_v47, %v9754_v29 }
0x1739   :  { %16327 = vrcp.f32 %v9758_v44  ;;  %v9757_v43 = vadd.f32 1.0, %v9755_v30  ;;  %v9783_v55 = vmul.f32 %v9781_v46, %v9753_v6  ;;  %v9787_v54 = vmul.f32 1.442695, %v9784_v49  ;;  %v18034_v49 = vld [vmem:[%s18633_s14 + $0x58] sm:$0xff] }
0x173b   :  { %16329 = vrcp.f32 %v9757_v43  ;;  %v9785_v35 = vmul.f32 1.442695, %v9783_v55  ;;  %v18045_v55 = vld [vmem:[%s18633_s14 + $0x50] sm:$0xff] }
0x173c   :  { %16331 = vpow2.f32 %v9787_v54  ;;  %v18054_v54 = vld [vmem:[%s18633_s14 + $0x48] sm:$0xff] }
0x173d   :  { %16333 = vpow2.f32 %v9785_v35 }
0x1746   :  { %v16328_v48 = vpop.eup %16327 }
0x1747   :  { %v9764_v32 = vmul.f32 1.0614054, %v16328_v48 }
0x1748   :  { %v16330_v34 = vpop.eup %16329 }
0x1749   :  { %v9766_v36 = vadd.f32 -1.4531521, %v9764_v32  ;;  %v9763_v56 = vmul.f32 1.0614054, %v16330_v34  ;;  %v16332_v58 = vpop.eup %16331  ;;  %v9940_v32 = vld [vmem:[%s18633_s14 + $0x8] sm:$0xff] }
0x174a   :  { %v16334_v3 = vpop.eup %16333 }
0x174b   :  { %v9768_v13 = vmul.f32 %v16328_v48, %v9766_v36  ;;  %v9765_v51 = vadd.f32 -1.4531521, %v9763_v56  ;;  %v18064_v36 = vld [vmem:[%s18633_s14 + $0x40] sm:$0xff] }
0x174d   :  { %v9770_v16 = vadd.f32 1.4214138, %v9768_v13  ;;  %v9767_v38 = vmul.f32 %v16330_v34, %v9765_v51 }
0x174f   :  { %v9772_v60 = vmul.f32 %v16328_v48, %v9770_v16  ;;  %v9769_v39 = vadd.f32 1.4214138, %v9767_v38 }
0x1751   :  { %v9774_v2 = vadd.f32 -0.28449672, %v9772_v60  ;;  %v9771_v45 = vmul.f32 %v16330_v34, %v9769_v39  ;;  %v16373_v39 = vld [vmem:[%s18625_s6] sm:$0xff] }
0x1753   :  { %v9776_v50 = vmul.f32 %v16328_v48, %v9774_v2  ;;  %v9773_v52 = vadd.f32 -0.28449672, %v9771_v45  ;;  %v9930_v2 = vrot.slane %v16373_v39, %v17349_v41  ;;  %v9945_v41 = vld [vmem:[%s18633_s14 + $0x30] sm:$0xff] }
0x1755   :  { %v9778_v53 = vadd.f32 0.2548296, %v9776_v50  ;;  %v9775_v40 = vmul.f32 %v16330_v34, %v9773_v52  ;;  %v9936_v50 = vrot.slane %v16373_v39, %v17352_v61  ;;  %v9944_v61 = vld [vmem:[%s18633_s14 + $0x28] sm:$0xff]  ;;  %v14106_v39 = vld [vmem:[%s18634_s15] ss:$0 sm:$0xff] }
0x1757   :  { %v9780_v57 = vmul.f32 %v16328_v48, %v9778_v53  ;;  %v9777_v59 = vadd.f32 0.2548296, %v9775_v40  ;;  %v9941_v48 = vld [vmem:[%s18633_s14 + $0x10] sm:$0xff] }
0x1759   :  { %v9790_v62 = vmul.f32 %v16332_v58, %v9780_v57  ;;  %v9779_v63 = vmul.f32 %v16330_v34, %v9777_v59  ;;  %v9939_v34 = vld [vmem:[%s18633_s14] sm:$0xff]  ;;  %v9946_v57 = vld [vmem:[%s18633_s14 + $0x38] sm:$0xff] }
0x175b   :  { %v9792_v4 = vsub.f32 1.0, %v9790_v62  ;;  %v9789_v5 = vmul.f32 %v16334_v3, %v9779_v63  ;;  %v9943_v62 = vld [vmem:[%s18633_s14 + $0x20] sm:$0xff]  ;;  %v9954_v3 = vld [vmem:[%s18633_s14 + $0x78] sm:$0xff] }
0x175d   :  { %v9796_v7 = vsub.f32 0.0, %v9792_v4  ;;  %v9791_v9 = vsub.f32 1.0, %v9789_v5  ;;  %v9952_v5 = vld [vmem:[%s18633_s14 + $0x68] sm:$0xff] }
0x175f   :  { %v9798_v10 = vsel %vm9794_vm14, %v9792_v4, %v9796_v7  ;;  %v9795_v11 = vsub.f32 0.0, %v9791_v9  ;;  %v9953_v4 = vld [vmem:[%s18633_s14 + $0x70] sm:$0xff]  ;;  %v9951_v7 = vld [vmem:[%s18633_s14 + $0x60] sm:$0xff] }
0x1760   :  { %v9800_v12 = vadd.f32 1.0, %v9798_v10  ;;  %v9957_v10 = vld [vmem:[%s18633_s14 + $0x90] sm:$0xff] }
0x1761   :  { %v9797_v18 = vsel %vm9793_vm15, %v9791_v9, %v9795_v11  ;;  %v9958_v9 = vld [vmem:[%s18633_s14 + $0x98] sm:$0xff]  ;;  %v9956_v11 = vld [vmem:[%s18633_s14 + $0x88] sm:$0xff] }
0x1762   :  { %v9799_v24 = vadd.f32 1.0, %v9797_v18  ;;  %v9802_v21 = vmul.f32 %v9800_v12, %v9750_v17  ;;  %v9955_v12 = vld [vmem:[%s18633_s14 + $0x80] sm:$0xff]  ;;  %v9966_v18 = vld [vmem:[%s18633_s14 + $0xd8] sm:$0xff] }
0x1763   :  { %v9963_v17 = vld [vmem:[%s18633_s14 + $0xc0] sm:$0xff] }
0x1764   :  { %v9801_v42 = vmul.f32 %v9799_v24, %v9749_v19  ;;  %v9965_v19 = vld [vmem:[%s18633_s14 + $0xd0] sm:$0xff]  ;;  %v9964_v24 = vld [vmem:[%s18633_s14 + $0xc8] sm:$0xff] }
0x1766   :  { %15799 = vmatprep.mubr.msk.f32.mxu1 %vm77_vm0, %v9801_v42  ;;  %v9962_v42 = vld [vmem:[%s18633_s14 + $0xb8] sm:$0xff] }
0x1767   :  { %15800 = vmatmul.mubr.msk.f32.vlgmr.msra.gmra.mxu1 %vm77_vm0, %v9802_v21  ;;  %v9961_v21 = vld [vmem:[%s18633_s14 + $0xb0] sm:$0xff]  ;;  %vm13763_vm0 = vcmask 1041409  }
0x1768   :  { %15832 = vmatprep.mubr.msk.f32.mxu1 %vm16398_vm3, %v16397_v33  ;;  %15825 = vmatpush3.msra.mxu1 %v18034_v49 }
0x1769   :  { %15826 = vmatprep.subr.mxu1 %v16397_v33 }
0x176a   :  { %15827 = vmatpush3.msra.mxu1 %v18045_v55 }
0x176b   :  { %15828 = vmatprep.subr.mxu1 %v16397_v33 }
0x176c   :  { %15829 = vmatpush3.msra.mxu1 %v18054_v54 }
0x176d   :  { %15830 = vmatprep.subr.mxu1 %v16397_v33 }
0x176e   :  { %15831 = vmatpush3.msra.mxu1 %v18064_v36 }
0x176f   :  { %15846 = vmatprep.subr.mxu1 %v16397_v33 }
0x1827   :  { %v15801_v8 = vpop.f32.mrf.mxu1 }
0x1828   :  { %v9898_v28 = vadd.f32 %v15801_v8, %v9896_v26  ;;  %v9959_v8 = vld [vmem:[%s18633_s14 + $0xa0] sm:$0xff] }
0x1829   :  { %v9884_v23 = vpop.f32.mrf.mxu1 }
0x182a   :  { %v9897_v29 = vadd.f32 %v9896_v26, %v9884_v23  ;;  %v9900_v22 = vadd.f32 %v9898_v28, %v17958_v31  ;;  %v9960_v26 = vld [vmem:[%s18633_s14 + $0xa8] sm:$0xff]  ;;  %v9970_v28 = vld [vmem:[%s18633_s14 + $0xf8] sm:$0xff]  ;;  %v9969_v23 = vld [vmem:[%s18633_s14 + $0xf0] sm:$0xff] }
0x182c   :  { %v9904_v1 = vsel %vm1286_vm8, %v9900_v22, 0.0  ;;  %v9899_v15 = vadd.f32 %v9897_v29, %v17953_v20  ;;  %v9942_v20 = vld [vmem:[%s18633_s14 + $0x18] sm:$0xff]  ;;  %v9968_v29 = vld [vmem:[%s18633_s14 + $0xe8] sm:$0xff] }
0x182d   :  { %9905 = vadd.xlane.f32.xlu1 %v9904_v1  ;;  %15803 = vmatpush3.msra.mxu0 %v9942_v20  ;;  %v9974_v1 = vld [vmem:[%s18633_s14 + $0x118] sm:$0xff] }
0x182e   :  { %v9901_v27 = vsel %vm1286_vm8, %v9899_v15, 0.0  ;;  %15804 = vmatprep.subr.mxu0 %v16397_v33 }
0x182f   :  { %9902 = vadd.xlane.f32.xlu0 %v9901_v27  ;;  %15805 = vmatpush3.msra.mxu0 %v9941_v48  ;;  %v9972_v27 = vld [vmem:[%s18633_s14 + $0x108] sm:$0xff] }
0x1830   :  { %15806 = vmatprep.subr.mxu0 %v16397_v33 }
0x1831   :  { %15807 = vmatpush3.msra.mxu0 %v9940_v32 }
0x1832   :  { %15808 = vmatprep.subr.mxu0 %v16397_v33 }
0x1833   :  { %15809 = vmatpush3.msra.mxu0 %v9939_v34 }
0x1834   :  { %15813 = vmatprep.subr.mxu0 %v16397_v33 }
0x18b6   :  { %v9906_v6 = vpop.xlane.xlu1 %9905 }
0x18b7   :  { %v9908_v44 = vmul.f32 0.03125, %v9906_v6  ;;  %v9971_v6 = vld [vmem:[%s18633_s14 + $0x100] sm:$0xff] }
0x18b8   :  { %v9903_v30 = vpop.xlane.xlu0 %9902 }
0x18b9   :  { %v9910_v37 = vsub.f32 %v9900_v22, %v9908_v44  ;;  %v9907_v43 = vmul.f32 0.03125, %v9903_v30  ;;  %v9967_v22 = vld [vmem:[%s18633_s14 + $0xe0] sm:$0xff]  ;;  %v9982_v44 = vld [vmem:[%s18633_s14 + $0x158] sm:$0xff]  ;;  %v9981_v30 = vld [vmem:[%s18633_s14 + $0x150] sm:$0xff] }
0x18bb   :  { %v9909_v14 = vsub.f32 %v9899_v15, %v9907_v43  ;;  %v9912_v25 = vmul.f32 %v9910_v37, %v9910_v37  ;;  %v9973_v15 = vld [vmem:[%s18633_s14 + $0x110] sm:$0xff]  ;;  %v9979_v43 = vld [vmem:[%s18633_s14 + $0x140] sm:$0xff] }
0x18bd   :  { %v9916_v47 = vsel %vm1286_vm8, %v9912_v25, 0.0  ;;  %v9911_v46 = vmul.f32 %v9909_v14, %v9909_v14  ;;  %v9977_v25 = vld [vmem:[%s18633_s14 + $0x130] sm:$0xff] }
0x18be   :  { %9917 = vadd.xlane.f32.xlu1 %v9916_v47  ;;  %v9976_v47 = vld [vmem:[%s18633_s14 + $0x128] sm:$0xff] }
0x18bf   :  { %v9913_v31 = vsel %vm1286_vm8, %v9911_v46, 0.0  ;;  %v9975_v46 = vld [vmem:[%s18633_s14 + $0x120] sm:$0xff] }
0x18c0   :  { %9914 = vadd.xlane.f32.xlu0 %v9913_v31  ;;  %v9986_v31 = vld [vmem:[%s18633_s14 + $0x178] sm:$0xff] }
0x1947   :  { %v9918_v56 = vpop.xlane.xlu1 %9917 }
0x1948   :  { %v9920_v13 = vmul.f32 0.03125, %v9918_v56 }
0x1949   :  { %v9915_v35 = vpop.xlane.xlu0 %9914 }
0x194a   :  { %v9919_v51 = vmul.f32 0.03125, %v9915_v35  ;;  %v9922_v38 = vadd.f32 1e-05, %v9920_v13 }
0x194c   :  { %v9921_v16 = vadd.f32 1e-05, %v9919_v51 }
0x194e   :  { %16335 = vrsqrt.f32 %v9921_v16 }
0x194f   :  { %16337 = vrsqrt.f32 %v9922_v38 }
0x195b   :  { %v16336_v60 = vpop.eup %16335 }
0x195c   :  { %v9925_v45 = vmul.f32 %v16336_v60, %v9909_v14  ;;  %v16338_v53 = vpop.eup %16337  ;;  %v9978_v14 = vld [vmem:[%s18633_s14 + $0x138] sm:$0xff] }
0x195d   :  { %v9926_v58 = vmul.f32 %v16338_v53, %v9910_v37  ;;  %v9980_v37 = vld [vmem:[%s18633_s14 + $0x148] sm:$0xff] }
0x195e   :  { %v9931_v52 = vmul.f32 %v9930_v2, %v9925_v45 }
0x195f   :  { %v9932_v59 = vmul.f32 %v9930_v2, %v9926_v58  ;;  %v14118_v2 = vld [vmem:[%s18634_s15 + $0x4] ss:$0 sm:$0xff] }
0x1960   :  { %v18077_v40 = vadd.f32 %v9936_v50, %v9931_v52 }
0x1961   :  { %v18103_v63 = vadd.f32 %v9936_v50, %v9932_v59 }
0x1962   :  { %15811 = vmatmul.mubr.msk.f32.vlgmr.msra.gmra.mxu0 %vm1286_vm8, %v18077_v40  ;;  %15833 = vmatmul.mubr.msk.f32.vlgmr.msra.gmra.mxu1 %vm1286_vm8, %v18077_v40 }
0x1963   :  { %15814 = vmatpush3.msra.mxu0 %v9946_v57  ;;  %15847 = vmatpush3.msra.mxu1 %v9942_v20  ;;  %v9985_v20 = vld [vmem:[%s18633_s14 + $0x170] sm:$0xff] }
0x1964   :  { %15815 = vmatprep.subr.mxu0 %v16397_v33  ;;  %15848 = vmatprep.subr.mxu1 %v16397_v33 }
0x1965   :  { %15816 = vmatpush3.msra.mxu0 %v9945_v41  ;;  %15849 = vmatpush3.msra.mxu1 %v9941_v48  ;;  %v9983_v48 = vld [vmem:[%s18633_s14 + $0x160] sm:$0xff] }
0x1966   :  { %15817 = vmatprep.subr.mxu0 %v16397_v33  ;;  %15850 = vmatprep.subr.mxu1 %v16397_v33 }
0x1967   :  { %15818 = vmatpush3.msra.mxu0 %v9944_v61  ;;  %15851 = vmatpush3.msra.mxu1 %v9940_v32 }
0x1968   :  { %15819 = vmatprep.subr.mxu0 %v16397_v33  ;;  %15852 = vmatprep.subr.mxu1 %v16397_v33 }
0x1969   :  { %15820 = vmatpush3.msra.mxu0 %v9943_v62  ;;  %15821 = vmatprep.mubr.msk.f32.mxu0 %vm16398_vm3, %v16397_v33 }
0x196a   :  { %15853 = vmatpush3.msra.mxu1 %v9939_v34  ;;  %15854 = vmatprep.mubr.msk.f32.mxu1 %vm16398_vm3, %v16397_v33 }
0x196b   :  { %15822 = vmatmul.mubr.msk.f32.vlgmr.msra.gmra.mxu0 %vm1286_vm8, %v18077_v40  ;;  %15835 = vmatprep.subr.mxu0 %v16397_v33 }
0x196c   :  { %15855 = vmatmul.mubr.msk.f32.vlgmr.msra.gmra.mxu1 %vm1286_vm8, %v18103_v63  ;;  %15868 = vmatprep.subr.mxu1 %v16397_v33 }
0x196d   :  { %15836 = vmatpush3.msra.mxu0 %v9954_v3  ;;  %15869 = vmatpush3.msra.mxu1 %v18034_v49  ;;  %v9984_v49 = vld [vmem:[%s18633_s14 + $0x168] sm:$0xff] }
0x196e   :  { %15837 = vmatprep.subr.mxu0 %v16397_v33  ;;  %15870 = vmatprep.subr.mxu1 %v16397_v33 }
0x196f   :  { %15838 = vmatpush3.msra.mxu0 %v9953_v4  ;;  %15871 = vmatpush3.msra.mxu1 %v18045_v55 }
0x1970   :  { %15839 = vmatprep.subr.mxu0 %v16397_v33  ;;  %15872 = vmatprep.subr.mxu1 %v16397_v33 }
0x1971   :  { %15840 = vmatpush3.msra.mxu0 %v9952_v5  ;;  %15873 = vmatpush3.msra.mxu1 %v18054_v54 }
0x1972   :  { %15841 = vmatprep.subr.mxu0 %v16397_v33  ;;  %15874 = vmatprep.subr.mxu1 %v16397_v33 }
0x1973   :  { %15842 = vmatpush3.msra.mxu0 %v9951_v7  ;;  %15843 = vmatprep.mubr.msk.f32.mxu0 %vm16398_vm3, %v16397_v33 }
0x1974   :  { %15875 = vmatpush3.msra.mxu1 %v18064_v36  ;;  %15876 = vmatprep.mubr.msk.f32.mxu1 %vm16398_vm3, %v16397_v33 }
0x1975   :  { %15844 = vmatmul.mubr.msk.f32.vlgmr.msra.gmra.mxu0 %vm1286_vm8, %v18077_v40  ;;  %15857 = vmatprep.subr.mxu0 %v16397_v33 }
0x1976   :  { %15877 = vmatmul.mubr.msk.f32.vlgmr.msra.gmra.mxu1 %vm1286_vm8, %v18103_v63  ;;  %15890 = vmatprep.subr.mxu1 %v16397_v33 }
0x1977   :  { %15858 = vmatpush3.msra.mxu0 %v9946_v57  ;;  %15891 = vmatpush3.msra.mxu1 %v9958_v9 }
0x1978   :  { %15859 = vmatprep.subr.mxu0 %v16397_v33  ;;  %15892 = vmatprep.subr.mxu1 %v16397_v33 }
0x1979   :  { %15860 = vmatpush3.msra.mxu0 %v9945_v41  ;;  %15893 = vmatpush3.msra.mxu1 %v9957_v10  ;;  %v14108_v41 = vld [vmem:[%s18634_s15 + $0x2] ss:$0 sm:$0xff] }
0x197a   :  { %15861 = vmatprep.subr.mxu0 %v16397_v33  ;;  %15894 = vmatprep.subr.mxu1 %v16397_v33 }
0x197b   :  { %15862 = vmatpush3.msra.mxu0 %v9944_v61  ;;  %15895 = vmatpush3.msra.mxu1 %v9956_v11  ;;  %v14120_v61 = vld [vmem:[%s18634_s15 + $0x6] ss:$0 sm:$0xff] }
0x197c   :  { %15863 = vmatprep.subr.mxu0 %v16397_v33  ;;  %15896 = vmatprep.subr.mxu1 %v16397_v33 }
0x197d   :  { %15864 = vmatpush3.msra.mxu0 %v9943_v62  ;;  %15865 = vmatprep.mubr.msk.f32.mxu0 %vm16398_vm3, %v16397_v33 }
0x197e   :  { %15897 = vmatpush3.msra.mxu1 %v9955_v12  ;;  %15898 = vmatprep.mubr.msk.f32.mxu1 %vm16398_vm3, %v16397_v33 }
0x197f   :  { %15866 = vmatmul.mubr.msk.f32.vlgmr.msra.gmra.mxu0 %vm1286_vm8, %v18103_v63  ;;  %15879 = vmatprep.subr.mxu0 %v16397_v33 }
0x1980   :  { %15899 = vmatmul.mubr.msk.f32.vlgmr.msra.gmra.mxu1 %vm1286_vm8, %v18077_v40  ;;  %15912 = vmatprep.subr.mxu1 %v16397_v33 }
0x1981   :  { %15880 = vmatpush3.msra.mxu0 %v9954_v3  ;;  %15913 = vmatpush3.msra.mxu1 %v9966_v18 }
0x1982   :  { %15881 = vmatprep.subr.mxu0 %v16397_v33  ;;  %15914 = vmatprep.subr.mxu1 %v16397_v33 }
0x1983   :  { %15882 = vmatpush3.msra.mxu0 %v9953_v4  ;;  %15915 = vmatpush3.msra.mxu1 %v9965_v19 }
0x1984   :  { %15883 = vmatprep.subr.mxu0 %v16397_v33  ;;  %15916 = vmatprep.subr.mxu1 %v16397_v33 }
0x1985   :  { %15884 = vmatpush3.msra.mxu0 %v9952_v5  ;;  %15917 = vmatpush3.msra.mxu1 %v9964_v24 }
0x1986   :  { %15885 = vmatprep.subr.mxu0 %v16397_v33  ;;  %15918 = vmatprep.subr.mxu1 %v16397_v33 }
0x1987   :  { %15886 = vmatpush3.msra.mxu0 %v9951_v7  ;;  %15887 = vmatprep.mubr.msk.f32.mxu0 %vm16398_vm3, %v16397_v33 }
0x1988   :  { %15919 = vmatpush3.msra.mxu1 %v9963_v17  ;;  %15920 = vmatprep.mubr.msk.f32.mxu1 %vm16398_vm3, %v16397_v33 }
0x1989   :  { %15888 = vmatmul.mubr.msk.f32.vlgmr.msra.gmra.mxu0 %vm1286_vm8, %v18103_v63  ;;  %15901 = vmatprep.subr.mxu0 %v16397_v33 }
0x198a   :  { %15921 = vmatmul.mubr.msk.f32.vlgmr.msra.gmra.mxu1 %vm1286_vm8, %v18077_v40  ;;  %15934 = vmatprep.subr.mxu1 %v16397_v33 }
0x198b   :  { %15902 = vmatpush3.msra.mxu0 %v9962_v42  ;;  %15935 = vmatpush3.msra.mxu1 %v9958_v9  ;;  %v14107_v9 = vld [vmem:[%s18634_s15 + $0x1] ss:$0 sm:$0xff] }
0x198c   :  { %15903 = vmatprep.subr.mxu0 %v16397_v33  ;;  %15936 = vmatprep.subr.mxu1 %v16397_v33 }
0x198d   :  { %15904 = vmatpush3.msra.mxu0 %v9961_v21  ;;  %15937 = vmatpush3.msra.mxu1 %v9957_v10  ;;  %v14119_v10 = vld [vmem:[%s18634_s15 + $0x5] ss:$0 sm:$0xff] }
0x198e   :  { %15905 = vmatprep.subr.mxu0 %v16397_v33  ;;  %15938 = vmatprep.subr.mxu1 %v16397_v33 }
0x198f   :  { %15906 = vmatpush3.msra.mxu0 %v9960_v26  ;;  %15939 = vmatpush3.msra.mxu1 %v9956_v11 }
0x1990   :  { %15907 = vmatprep.subr.mxu0 %v16397_v33  ;;  %15940 = vmatprep.subr.mxu1 %v16397_v33 }
0x1991   :  { %15908 = vmatpush3.msra.mxu0 %v9959_v8  ;;  %15909 = vmatprep.mubr.msk.f32.mxu0 %vm16398_vm3, %v16397_v33 }
0x1992   :  { %15941 = vmatpush3.msra.mxu1 %v9955_v12  ;;  %15942 = vmatprep.mubr.msk.f32.mxu1 %vm16398_vm3, %v16397_v33 }
0x1993   :  { %15910 = vmatmul.mubr.msk.f32.vlgmr.msra.gmra.mxu0 %vm1286_vm8, %v18077_v40  ;;  %15923 = vmatprep.subr.mxu0 %v16397_v33 }
0x1994   :  { %15943 = vmatmul.mubr.msk.f32.vlgmr.msra.gmra.mxu1 %vm1286_vm8, %v18103_v63  ;;  %15956 = vmatprep.subr.mxu1 %v16397_v33 }
0x1995   :  { %15924 = vmatpush3.msra.mxu0 %v9970_v28  ;;  %15957 = vmatpush3.msra.mxu1 %v9966_v18 }
0x1996   :  { %15925 = vmatprep.subr.mxu0 %v16397_v33  ;;  %15958 = vmatprep.subr.mxu1 %v16397_v33 }
0x1997   :  { %15926 = vmatpush3.msra.mxu0 %v9969_v23  ;;  %15959 = vmatpush3.msra.mxu1 %v9965_v19 }
0x1998   :  { %15927 = vmatprep.subr.mxu0 %v16397_v33  ;;  %15960 = vmatprep.subr.mxu1 %v16397_v33 }
0x1999   :  { %15928 = vmatpush3.msra.mxu0 %v9968_v29  ;;  %15961 = vmatpush3.msra.mxu1 %v9964_v24 }
0x199a   :  { %15929 = vmatprep.subr.mxu0 %v16397_v33  ;;  %15962 = vmatprep.subr.mxu1 %v16397_v33 }
0x199b   :  { %15930 = vmatpush3.msra.mxu0 %v9967_v22  ;;  %15931 = vmatprep.mubr.msk.f32.mxu0 %vm16398_vm3, %v16397_v33 }
0x199c   :  { %15963 = vmatpush3.msra.mxu1 %v9963_v17  ;;  %15964 = vmatprep.mubr.msk.f32.mxu1 %vm16398_vm3, %v16397_v33 }
0x199d   :  { %15932 = vmatmul.mubr.msk.f32.vlgmr.msra.gmra.mxu0 %vm1286_vm8, %v18077_v40  ;;  %15945 = vmatprep.subr.mxu0 %v16397_v33 }
0x199e   :  { %15965 = vmatmul.mubr.msk.f32.vlgmr.msra.gmra.mxu1 %vm1286_vm8, %v18103_v63  ;;  %15978 = vmatprep.subr.mxu1 %v16397_v33 }
0x199f   :  { %15946 = vmatpush3.msra.mxu0 %v9962_v42  ;;  %15979 = vmatpush3.msra.mxu1 %v9974_v1 }
0x19a0   :  { %15947 = vmatprep.subr.mxu0 %v16397_v33  ;;  %15980 = vmatprep.subr.mxu1 %v16397_v33 }
0x19a1   :  { %15948 = vmatpush3.msra.mxu0 %v9961_v21  ;;  %15981 = vmatpush3.msra.mxu1 %v9973_v15 }
0x19a2   :  { %15949 = vmatprep.subr.mxu0 %v16397_v33  ;;  %15982 = vmatprep.subr.mxu1 %v16397_v33 }
0x19a3   :  { %15950 = vmatpush3.msra.mxu0 %v9960_v26  ;;  %15983 = vmatpush3.msra.mxu1 %v9972_v27 }
0x19a4   :  { %15951 = vmatprep.subr.mxu0 %v16397_v33  ;;  %15984 = vmatprep.subr.mxu1 %v16397_v33 }
0x19a5   :  { %15952 = vmatpush3.msra.mxu0 %v9959_v8  ;;  %15953 = vmatprep.mubr.msk.f32.mxu0 %vm16398_vm3, %v16397_v33 }
0x19a6   :  { %15985 = vmatpush3.msra.mxu1 %v9971_v6  ;;  %15986 = vmatprep.mubr.msk.f32.mxu1 %vm16398_vm3, %v16397_v33 }
0x19a7   :  { %15954 = vmatmul.mubr.msk.f32.vlgmr.msra.gmra.mxu0 %vm1286_vm8, %v18103_v63  ;;  %15967 = vmatprep.subr.mxu0 %v16397_v33 }
0x19a8   :  { %15987 = vmatmul.mubr.msk.f32.vlgmr.msra.gmra.mxu1 %vm1286_vm8, %v18077_v40  ;;  %16000 = vmatprep.subr.mxu1 %v16397_v33 }
0x19a9   :  { %15968 = vmatpush3.msra.mxu0 %v9970_v28  ;;  %16001 = vmatpush3.msra.mxu1 %v9982_v44  ;;  %v14109_v28 = vld [vmem:[%s18634_s15 + $0x3] ss:$0 sm:$0xff] }
0x19aa   :  { %15969 = vmatprep.subr.mxu0 %v16397_v33  ;;  %16002 = vmatprep.subr.mxu1 %v16397_v33 }
0x19ab   :  { %15970 = vmatpush3.msra.mxu0 %v9969_v23  ;;  %16003 = vmatpush3.msra.mxu1 %v9981_v30  ;;  %v14121_v23 = vld [vmem:[%s18634_s15 + $0x7] ss:$0 sm:$0xff] }
0x19ac   :  { %15971 = vmatprep.subr.mxu0 %v16397_v33  ;;  %16004 = vmatprep.subr.mxu1 %v16397_v33 }
0x19ad   :  { %15972 = vmatpush3.msra.mxu0 %v9968_v29  ;;  %16005 = vmatpush3.msra.mxu1 %v9980_v37 }
0x19ae   :  { %15973 = vmatprep.subr.mxu0 %v16397_v33  ;;  %16006 = vmatprep.subr.mxu1 %v16397_v33 }
0x19af   :  { %15974 = vmatpush3.msra.mxu0 %v9967_v22  ;;  %15975 = vmatprep.mubr.msk.f32.mxu0 %vm16398_vm3, %v16397_v33 }
0x19b0   :  { %16007 = vmatpush3.msra.mxu1 %v9979_v43  ;;  %16008 = vmatprep.mubr.msk.f32.mxu1 %vm16398_vm3, %v16397_v33 }
0x19b1   :  { %15976 = vmatmul.mubr.msk.f32.vlgmr.msra.gmra.mxu0 %vm1286_vm8, %v18103_v63  ;;  %15989 = vmatprep.subr.mxu0 %v16397_v33 }
0x19b2   :  { %16009 = vmatmul.mubr.msk.f32.vlgmr.msra.gmra.mxu1 %vm1286_vm8, %v18077_v40  ;;  %16022 = vmatprep.subr.mxu1 %v16397_v33 }
0x19b3   :  { %15990 = vmatpush3.msra.mxu0 %v9978_v14  ;;  %16023 = vmatpush3.msra.mxu1 %v9974_v1 }
0x19b4   :  { %15991 = vmatprep.subr.mxu0 %v16397_v33  ;;  %16024 = vmatprep.subr.mxu1 %v16397_v33 }
0x19b5   :  { %15992 = vmatpush3.msra.mxu0 %v9977_v25  ;;  %16025 = vmatpush3.msra.mxu1 %v9973_v15 }
0x19b6   :  { %15993 = vmatprep.subr.mxu0 %v16397_v33  ;;  %16026 = vmatprep.subr.mxu1 %v16397_v33 }
0x19b7   :  { %15994 = vmatpush3.msra.mxu0 %v9976_v47  ;;  %16027 = vmatpush3.msra.mxu1 %v9972_v27 }
0x19b8   :  { %15995 = vmatprep.subr.mxu0 %v16397_v33  ;;  %16028 = vmatprep.subr.mxu1 %v16397_v33 }
0x19b9   :  { %15996 = vmatpush3.msra.mxu0 %v9975_v46  ;;  %15997 = vmatprep.mubr.msk.f32.mxu0 %vm16398_vm3, %v16397_v33 }
0x19ba   :  { %16029 = vmatpush3.msra.mxu1 %v9971_v6  ;;  %16030 = vmatprep.mubr.msk.f32.mxu1 %vm16398_vm3, %v16397_v33 }
0x19bb   :  { %15998 = vmatmul.mubr.msk.f32.vlgmr.msra.gmra.mxu0 %vm1286_vm8, %v18077_v40  ;;  %16011 = vmatprep.subr.mxu0 %v16397_v33 }
0x19bc   :  { %16031 = vmatmul.mubr.msk.f32.vlgmr.msra.gmra.mxu1 %vm1286_vm8, %v18103_v63  ;;  %16044 = vmatprep.subr.mxu1 %v16397_v33 }
0x19bd   :  { %16012 = vmatpush3.msra.mxu0 %v9986_v31  ;;  %16045 = vmatpush3.msra.mxu1 %v9982_v44 }
0x19be   :  { %16013 = vmatprep.subr.mxu0 %v16397_v33  ;;  %16046 = vmatprep.subr.mxu1 %v16397_v33 }
0x19bf   :  { %16014 = vmatpush3.msra.mxu0 %v9985_v20  ;;  %16047 = vmatpush3.msra.mxu1 %v9981_v30 }
0x19c0   :  { %16015 = vmatprep.subr.mxu0 %v16397_v33  ;;  %16048 = vmatprep.subr.mxu1 %v16397_v33 }
0x19c1   :  { %16016 = vmatpush3.msra.mxu0 %v9984_v49  ;;  %16049 = vmatpush3.msra.mxu1 %v9980_v37 }
0x19c2   :  { %16017 = vmatprep.subr.mxu0 %v16397_v33  ;;  %16050 = vmatprep.subr.mxu1 %v16397_v33 }
0x19c3   :  { %16018 = vmatpush3.msra.mxu0 %v9983_v48  ;;  %16019 = vmatprep.mubr.msk.f32.mxu0 %vm16398_vm3, %v16397_v33 }
0x19c4   :  { %16051 = vmatpush3.msra.mxu1 %v9979_v43  ;;  %16052 = vmatprep.mubr.msk.f32.mxu1 %vm16398_vm3, %v16397_v33 }
0x19c5   :  { %16020 = vmatmul.mubr.msk.f32.vlgmr.msra.gmra.mxu0 %vm1286_vm8, %v18077_v40  ;;  %16033 = vmatprep.subr.mxu0 %v16397_v33 }
0x19c6   :  { %16053 = vmatmul.mubr.msk.f32.vlgmr.msra.gmra.mxu1 %vm1286_vm8, %v18103_v63  ;;  %16034 = vmatpush3.msra.mxu0 %v9978_v14  ;;  %v14130_v14 = vld [vmem:[%s18634_s15 + $0x8] ss:$0 sm:$0xff] }
0x19c7   :  { %16035 = vmatprep.subr.mxu0 %v16397_v33  ;;  %16041 = vmatprep.mubr.msk.f32.mxu0 %vm16398_vm3, %v16397_v33 }
0x19c8   :  { %16036 = vmatpush3.msra.mxu0 %v9977_v25  ;;  %16066 = vmatprep.subr.mxu1 %v16397_v33 }
0x19c9   :  { %16037 = vmatprep.subr.mxu0 %v16397_v33  ;;  %16068 = vmatprep.mubr.msk.f32.mxu1 %vm16398_vm3, %v16397_v33 }
0x19ca   :  { %16038 = vmatpush3.msra.mxu0 %v9976_v47 }
0x19cb   :  { %16039 = vmatprep.subr.mxu0 %v16397_v33 }
0x19cc   :  { %16040 = vmatpush3.msra.mxu0 %v9975_v46 }
0x19cd   :  { %16042 = vmatmul.mubr.msk.f32.vlgmr.msra.gmra.mxu0 %vm1286_vm8, %v18103_v63  ;;  %16055 = vmatprep.subr.mxu0 %v16397_v33 }
0x19ce   :  { %16056 = vmatpush3.msra.mxu0 %v9986_v31  ;;  %16063 = vmatprep.mubr.msk.f32.mxu0 %vm16398_vm3, %v16397_v33 }
0x19cf   :  { %16057 = vmatprep.subr.mxu0 %v16397_v33 }
0x19d0   :  { %16058 = vmatpush3.msra.mxu0 %v9985_v20 }
0x19d1   :  { %16059 = vmatprep.subr.mxu0 %v16397_v33 }
0x19d2   :  { %16060 = vmatpush3.msra.mxu0 %v9984_v49 }
0x19d3   :  { %16061 = vmatprep.subr.mxu0 %v16397_v33 }
0x19d4   :  { %16062 = vmatpush3.msra.mxu0 %v9983_v48 }
0x19d5   :  { %16064 = vmatmul.mubr.msk.f32.vlgmr.msra.gmra.mxu0 %vm1286_vm8, %v18103_v63  ;;  %16076 = vmatprep.subr.mxu0 %v16397_v33 }
0x19d6   :  { %16078 = vmatprep.mubr.msk.f32.mxu0 %vm16398_vm3, %v16397_v33 }
0x1a22   :  { %v10096_v55 = vpop.f32.mrf.mxu0  ;;  %v10236_v32 = vpop.f32.mrf.mxu1 }
0x1a23   :  { %v10097_v50 = vadd.f32 %v14106_v39, %v10096_v55  ;;  %v10237_v62 = vadd.f32 %v14108_v41, %v10236_v32 }
0x1a24   :  { %v15812_v54 = vpop.f32.mrf.mxu0  ;;  %v15834_v34 = vpop.f32.mrf.mxu1 }
0x1a25   :  { %v10593_v58 = vmul.f32 0.35355338, %v10097_v50  ;;  %v10595_v7 = vmul.f32 0.35355338, %v10237_v62 }
0x1a2b   :  { %v10166_v36 = vpop.f32.mrf.mxu0 }
0x1a2c   :  { %v10379_v56 = vpop.f32.mrf.mxu1  ;;  %v10167_v11 = vadd.f32 %v14107_v9, %v10166_v36 }
0x1a2d   :  { %v15823_v35 = vpop.f32.mrf.mxu0  ;;  %v10380_v18 = vadd.f32 %v14106_v39, %v10379_v56 }
0x1a2e   :  { %v15856_v13 = vpop.f32.mrf.mxu1  ;;  %v10594_v26 = vmul.f32 0.35355338, %v10167_v11 }
0x1a2f   :  { %v10597_v8 = vmul.f32 0.35355338, %v10380_v18 }
0x1a35   :  { %v10306_v51 = vpop.f32.mrf.mxu0 }
0x1a36   :  { %v10519_v16 = vpop.f32.mrf.mxu1  ;;  %v10307_v29 = vadd.f32 %v14109_v28, %v10306_v51  ;;  %v14131_v51 = vld [vmem:[%s18634_s15 + $0x9] ss:$0 sm:$0xff] }
0x1a37   :  { %v15845_v38 = vpop.f32.mrf.mxu0  ;;  %v10520_v1 = vadd.f32 %v14108_v41, %v10519_v16 }
0x1a38   :  { %v15878_v60 = vpop.f32.mrf.mxu1  ;;  %v10596_v37 = vmul.f32 0.35355338, %v10307_v29 }
0x1a39   :  { %v10599_v43 = vmul.f32 0.35355338, %v10520_v1 }
0x1a3f   :  { %v18395_v45 = vpop.f32.mrf.mxu0 }
0x1a40   :  { %v10691_v52 = vpop.f32.mrf.mxu1  ;;  %v10450_v25 = vadd.f32 %v14107_v9, %v18395_v45 }
0x1a41   :  { %v10692_v53 = vadd.f32 %v14118_v2, %v10691_v52  ;;  %v15867_v40 = vpop.f32.mrf.mxu0 }
0x1a42   :  { %v15900_v57 = vpop.f32.mrf.mxu1  ;;  %v10598_v55 = vmul.f32 0.35355338, %v10450_v25 }
0x1a43   :  { %16067 = vmatpush3.xpose.msk.msra.mxu1 %vm195_vm1, %v10692_v53 }
0x1a44   :  { %16071 = vmatprep.subr.mxu1 %v16397_v33 }
0x1a46   :  { %16069 = vmatmul.mubr.msk.f32.vlgmr.msra.gmra.mxu1 %vm195_vm1, %v10593_v58 }
0x1a47   :  { %16073 = vmatprep.mubr.msk.f32.mxu1 %vm16398_vm3, %v16397_v33 }
0x1a49   :  { %v18408_v59 = vpop.f32.mrf.mxu0 }
0x1a4a   :  { %v10831_v63 = vpop.f32.mrf.mxu1  ;;  %v10590_v32 = vadd.f32 %v14109_v28, %v18408_v59 }
0x1a4b   :  { %v10832_v3 = vadd.f32 %v14120_v61, %v10831_v63  ;;  %v15889_v4 = vpop.f32.mrf.mxu0 }
0x1a4c   :  { %v15922_v5 = vpop.f32.mrf.mxu1  ;;  %v10600_v13 = vmul.f32 0.35355338, %v10590_v32 }
0x1a4d   :  { %16077 = vmatpush3.xpose.msk.msra.mxu0 %vm195_vm1, %v10832_v3 }
0x1a4e   :  { %16086 = vmatprep.subr.mxu0 %v16397_v33 }
0x1a50   :  { %16079 = vmatmul.mubr.msk.f32.vlgmr.msra.gmra.mxu0 %vm195_vm1, %v10595_v7 }
0x1a51   :  { %16088 = vmatprep.mubr.msk.f32.mxu0 %vm16398_vm3, %v16397_v33 }
0x1a53   :  { %v10761_v12 = vpop.f32.mrf.mxu0 }
0x1a54   :  { %v10762_v19 = vadd.f32 %v14119_v10, %v10761_v12  ;;  %v10971_v24 = vpop.f32.mrf.mxu1 }
0x1a55   :  { %v10972_v17 = vadd.f32 %v14118_v2, %v10971_v24  ;;  %v15911_v42 = vpop.f32.mrf.mxu0 }
0x1a56   :  { %v15944_v21 = vpop.f32.mrf.mxu1  ;;  %16072 = vmatpush3.xpose.msk.msra.mxu1 %vm195_vm1, %v10762_v19 }
0x1a57   :  { %16087 = vmatpush3.xpose.msk.msra.mxu0 %vm195_vm1, %v10972_v17  ;;  %16081 = vmatprep.subr.mxu1 %v16397_v33 }
0x1a58   :  { %16096 = vmatprep.subr.mxu0 %v16397_v33 }
0x1a59   :  { %16074 = vmatmul.mubr.msk.f32.vlgmr.msra.gmra.mxu1 %vm195_vm1, %v10594_v26 }
0x1a5a   :  { %16089 = vmatmul.mubr.msk.f32.vlgmr.msra.gmra.mxu0 %vm195_vm1, %v10597_v8  ;;  %16083 = vmatprep.mubr.msk.f32.mxu1 %vm16398_vm3, %v16397_v33 }
0x1a5b   :  { %16098 = vmatprep.mubr.msk.f32.mxu0 %vm16398_vm3, %v16397_v33 }
0x1a5d   :  { %v10901_v22 = vpop.f32.mrf.mxu0 }
0x1a5e   :  { %v10902_v15 = vadd.f32 %v14121_v23, %v10901_v22  ;;  %v11111_v27 = vpop.f32.mrf.mxu1 }
0x1a5f   :  { %v11112_v6 = vadd.f32 %v14120_v61, %v11111_v27  ;;  %v15933_v44 = vpop.f32.mrf.mxu0 }
0x1a60   :  { %v15966_v30 = vpop.f32.mrf.mxu1  ;;  %16082 = vmatpush3.xpose.msk.msra.mxu1 %vm195_vm1, %v10902_v15 }
0x1a61   :  { %16097 = vmatpush3.xpose.msk.msra.mxu0 %vm195_vm1, %v11112_v6  ;;  %16091 = vmatprep.subr.mxu1 %v16397_v33 }
0x1a62   :  { %16106 = vmatprep.subr.mxu0 %v16397_v33 }
0x1a63   :  { %16084 = vmatmul.mubr.msk.f32.vlgmr.msra.gmra.mxu1 %vm195_vm1, %v10596_v37 }
0x1a64   :  { %16099 = vmatmul.mubr.msk.f32.vlgmr.msra.gmra.mxu0 %vm195_vm1, %v10599_v43  ;;  %16093 = vmatprep.mubr.msk.f32.mxu1 %vm16398_vm3, %v16397_v33 }
0x1a65   :  { %16108 = vmatprep.mubr.msk.f32.mxu0 %vm16398_vm3, %v16397_v33 }
0x1a67   :  { %v11041_v47 = vpop.f32.mrf.mxu0 }
0x1a68   :  { %v11042_v46 = vadd.f32 %v14119_v10, %v11041_v47  ;;  %v11275_v31 = vpop.f32.mrf.mxu1 }
0x1a69   :  { %v11276_v20 = vadd.f32 %v14130_v14, %v11275_v31  ;;  %v15955_v49 = vpop.f32.mrf.mxu0 }
0x1a6a   :  { %v15988_v48 = vpop.f32.mrf.mxu1  ;;  %16092 = vmatpush3.xpose.msk.msra.mxu1 %vm195_vm1, %v11042_v46 }
0x1a6b   :  { %16107 = vmatpush3.msra.mxu0 %v11276_v20  ;;  %16101 = vmatprep.subr.mxu1 %v16397_v33 }
0x1a6c   :  { %16116 = vmatprep.subr.mxu0 %v16397_v33 }
0x1a6d   :  { %16094 = vmatmul.mubr.msk.f32.vlgmr.msra.gmra.mxu1 %vm195_vm1, %v10598_v55 }
0x1a6e   :  { %16103 = vmatprep.mubr.msk.f32.mxu1 %vm16398_vm3, %v16397_v33 }
0x1a71   :  { %v11181_v54 = vpop.f32.mrf.mxu0 }
0x1a72   :  { %v11182_v34 = vadd.f32 %v14121_v23, %v11181_v54  ;;  %v18458_v36 = vpop.f32.mrf.mxu1 }
0x1a73   :  { %v15977_v56 = vpop.f32.mrf.mxu0 }
0x1a74   :  { %v16010_v35 = vpop.f32.mrf.mxu1  ;;  %16102 = vmatpush3.xpose.msk.msra.mxu1 %vm195_vm1, %v11182_v34 }
0x1a75   :  { %16111 = vmatprep.subr.mxu1 %v16397_v33 }
0x1a77   :  { %16104 = vmatmul.mubr.msk.f32.vlgmr.msra.gmra.mxu1 %vm195_vm1, %v10600_v13 }
0x1a78   :  { %16113 = vmatprep.mubr.msk.f32.mxu1 %vm16398_vm3, %v16397_v33 }
0x1a7b   :  { %v11345_v16 = vpop.f32.mrf.mxu0 }
0x1a7c   :  { %v11346_v38 = vadd.f32 %v14131_v51, %v11345_v16  ;;  %v11555_v60 = vpop.f32.mrf.mxu1 }
0x1a7d   :  { %v18468_v39 = vadd.f32 %v14130_v14, %v11555_v60  ;;  %v15999_v2 = vpop.f32.mrf.mxu0 }
0x1a7e   :  { %v16032_v45 = vpop.f32.mrf.mxu1  ;;  %16112 = vmatpush3.msra.mxu1 %v11346_v38 }
0x1a7f   :  { %16121 = vmatprep.subr.mxu1 %v16397_v33 }
0x1a85   :  { %v18471_v50 = vpop.f32.mrf.mxu0 }
0x1a86   :  { %v18473_v52 = vpop.f32.mrf.mxu1 }
0x1a87   :  { %v16021_v53 = vpop.f32.mrf.mxu0 }
0x1a88   :  { %v16054_v40 = vpop.f32.mrf.mxu1 }
0x1a8d   :  { %v11625_v57 = vpop.f32.mrf.mxu0 }
0x1a8e   :  { %v18475_v58 = vadd.f32 %v14131_v51, %v11625_v57 }
0x1a8f   :  { %v16043_v41 = vpop.f32.mrf.mxu0 }
0x1a95   :  { %v18477_v61 = vpop.f32.mrf.mxu0 }
0x1a97   :  { %v16065_v59 = vpop.f32.mrf.mxu0 }
0x1b06   :  { %v11841_v62 = vpop.f32.mrf.mxu1 }
0x1b07   :  { %v12377_v63 = vsel %vm195_vm1, %v11841_v62, -inf }
0x1b08   :  { %12378 = vmax.xlane.f32.xlu0 %v12377_v63  ;;  %v16070_v3 = vpop.f32.mrf.mxu1 }
0x1b10   :  { %v11993_v4 = vpop.f32.mrf.mxu0 }
0x1b11   :  { %v12383_v5 = vsel %vm195_vm1, %v11993_v4, -inf }
0x1b12   :  { %12384 = vmax.xlane.f32.xlu0 %v12383_v5  ;;  %v16080_v7 = vpop.f32.mrf.mxu0 }
0x1b19   :  { %v11917_v9 = vpop.f32.mrf.mxu1 }
0x1b1a   :  { %v12145_v10 = vpop.f32.mrf.mxu0  ;;  %v12380_v11 = vsel %vm195_vm1, %v11917_v9, -inf }
0x1b1b   :  { %12381 = vmax.xlane.f32.xlu1 %v12380_v11  ;;  %v16075_v12 = vpop.f32.mrf.mxu1  ;;  %v12389_v18 = vsel %vm195_vm1, %v12145_v10, -inf }
0x1b1c   :  { %12390 = vmax.xlane.f32.xlu0 %v12389_v18  ;;  %v16090_v19 = vpop.f32.mrf.mxu0  ;;  %v14132_v18 = vld [vmem:[%s18634_s15 + $0xa] ss:$0 sm:$0xff] }
0x1b23   :  { %v12069_v24 = vpop.f32.mrf.mxu1 }
0x1b24   :  { %v12297_v17 = vpop.f32.mrf.mxu0  ;;  %v12386_v42 = vsel %vm195_vm1, %v12069_v24, -inf }
0x1b25   :  { %12387 = vmax.xlane.f32.xlu1 %v12386_v42  ;;  %v16085_v21 = vpop.f32.mrf.mxu1  ;;  %v12395_v26 = vsel %vm195_vm1, %v12297_v17, -inf }
0x1b26   :  { %12396 = vmax.xlane.f32.xlu0 %v12395_v26  ;;  %v16100_v8 = vpop.f32.mrf.mxu0 }
0x1b2d   :  { %v12221_v28 = vpop.f32.mrf.mxu1 }
0x1b2e   :  { %v12392_v23 = vsel %vm195_vm1, %v12221_v28, -inf }
0x1b2f   :  { %12393 = vmax.xlane.f32.xlu1 %v12392_v23  ;;  %v16095_v29 = vpop.f32.mrf.mxu1  ;;  %v14133_v23 = vld [vmem:[%s18634_s15 + $0xb] ss:$0 sm:$0xff] }
0x1b37   :  { %v12373_v22 = vpop.f32.mrf.mxu1 }
0x1b38   :  { %v12398_v1 = vsel %vm195_vm1, %v12373_v22, -inf }
0x1b39   :  { %12399 = vmax.xlane.f32.xlu1 %v12398_v1  ;;  %v16105_v15 = vpop.f32.mrf.mxu1 }
0x1b3a   :  { %v11486_v15 = vadd.f32 %v14133_v23, %v18471_v50 }
0x1b91   :  { %v12379_v27 = vpop.xlane.xlu0 %12378 }
0x1b92   :  { %v12401_v6 = vsub.f32 %v11841_v62, %v12379_v27 }
0x1b94   :  { %v12409_v44 = vmul.f32 1.442695, %v12401_v6 }
0x1b96   :  { %16339 = vpow2.f32 %v12409_v44 }
0x1b9b   :  { %v12385_v30 = vpop.xlane.xlu0 %12384 }
0x1b9c   :  { %v12403_v37 = vsub.f32 %v11993_v4, %v12385_v30 }
0x1b9e   :  { %v12413_v43 = vmul.f32 1.442695, %v12403_v37 }
0x1ba0   :  { %16341 = vpow2.f32 %v12413_v43 }
0x1ba3   :  { %v16340_v14 = vpop.eup %16339 }
0x1ba4   :  { %v12382_v25 = vpop.xlane.xlu1 %12381  ;;  %v12425_v47 = vsel %vm195_vm1, %v16340_v14, 0.0 }
0x1ba5   :  { %v12402_v46 = vsub.f32 %v11917_v9, %v12382_v25  ;;  %v12391_v31 = vpop.xlane.xlu0 %12390  ;;  %12426 = vadd.xlane.f32.xlu0 %v12425_v47  ;;  %v11766_v25 = vadd.f32 %v14133_v23, %v18477_v61  ;;  %v9999_v61 = vld [vmem:[%s18635_s16] sm:$0xff] }
0x1ba6   :  { %v12405_v20 = vsub.f32 %v12145_v10, %v12391_v31  ;;  %v10001_v31 = vld [vmem:[%s18635_s16 + $0x10] sm:$0xff] }
0x1ba7   :  { %v12411_v49 = vmul.f32 1.442695, %v12402_v46  ;;  %v10000_v46 = vld [vmem:[%s18635_s16 + $0x8] sm:$0xff] }
0x1ba8   :  { %v12417_v48 = vmul.f32 1.442695, %v12405_v20 }
0x1ba9   :  { %16343 = vpow2.f32 %v12411_v49 }
0x1baa   :  { %16345 = vpow2.f32 %v12417_v48 }
0x1bad   :  { %v16342_v55 = vpop.eup %16341 }
0x1bae   :  { %v12388_v32 = vpop.xlane.xlu1 %12387  ;;  %v12431_v54 = vsel %vm195_vm1, %v16342_v55, 0.0 }
0x1baf   :  { %v12404_v34 = vsub.f32 %v12069_v24, %v12388_v32  ;;  %v12397_v56 = vpop.xlane.xlu0 %12396  ;;  %12432 = vadd.xlane.f32.xlu0 %v12431_v54  ;;  %v10002_v32 = vld [vmem:[%s18635_s16 + $0x18] sm:$0xff] }
0x1bb0   :  { %v12407_v35 = vsub.f32 %v12297_v17, %v12397_v56  ;;  %v11416_v17 = vadd.f32 %v14132_v18, %v18458_v36 }
0x1bb1   :  { %v12415_v13 = vmul.f32 1.442695, %v12404_v34 }
0x1bb2   :  { %v12421_v51 = vmul.f32 1.442695, %v12407_v35 }
0x1bb3   :  { %16347 = vpow2.f32 %v12415_v13 }
0x1bb4   :  { %16349 = vpow2.f32 %v12421_v51 }
0x1bb6   :  { %v16344_v16 = vpop.eup %16343 }
0x1bb7   :  { %v16346_v38 = vpop.eup %16345  ;;  %v12428_v60 = vsel %vm195_vm1, %v16344_v16, 0.0 }
0x1bb8   :  { %v12394_v2 = vpop.xlane.xlu1 %12393  ;;  %12429 = vadd.xlane.f32.xlu1 %v12428_v60  ;;  %v12437_v45 = vsel %vm195_vm1, %v16346_v38, 0.0 }
0x1bb9   :  { %v12406_v53 = vsub.f32 %v12221_v28, %v12394_v2  ;;  %12438 = vadd.xlane.f32.xlu0 %v12437_v45 }
0x1bbb   :  { %v12419_v40 = vmul.f32 1.442695, %v12406_v53 }
0x1bbd   :  { %16351 = vpow2.f32 %v12419_v40  ;;  %v13648_v40 = vld [vmem:[%s18636_s17 + $0x18] sm:$0xff] }
0x1bc0   :  { %v16348_v57 = vpop.eup %16347 }
0x1bc1   :  { %v16350_v41 = vpop.eup %16349  ;;  %v12434_v59 = vsel %vm195_vm1, %v16348_v57, 0.0 }
0x1bc2   :  { %v12400_v62 = vpop.xlane.xlu1 %12399  ;;  %12435 = vadd.xlane.f32.xlu1 %v12434_v59  ;;  %v12443_v63 = vsel %vm195_vm1, %v16350_v41, 0.0  ;;  %v13645_v59 = vld [vmem:[%s18636_s17] sm:$0xff] }
0x1bc3   :  { %v12408_v3 = vsub.f32 %v12373_v22, %v12400_v62  ;;  %12444 = vadd.xlane.f32.xlu0 %v12443_v63 }
0x1bc5   :  { %v12423_v4 = vmul.f32 1.442695, %v12408_v3 }
0x1bc7   :  { %16353 = vpow2.f32 %v12423_v4 }
0x1bca   :  { %v16352_v5 = vpop.eup %16351 }
0x1bcb   :  { %v12440_v7 = vsel %vm195_vm1, %v16352_v5, 0.0 }
0x1bcc   :  { %12441 = vadd.xlane.f32.xlu1 %v12440_v7 }
0x1bd4   :  { %v18494_v9 = vpop.eup %16353 }
0x1bd5   :  { %v12446_v10 = vsel %vm195_vm1, %v18494_v9, 0.0 }
0x1bd6   :  { %12447 = vadd.xlane.f32.xlu1 %v12446_v10 }
0x1c2e   :  { %v12427_v11 = vpop.xlane.xlu0 %12426 }
0x1c2f   :  { %16355 = vrcp.f32 %v12427_v11 }
0x1c38   :  { %v12433_v12 = vpop.xlane.xlu0 %12432 }
0x1c39   :  { %16357 = vrcp.f32 %v12433_v12 }
0x1c3c   :  { %v16356_v19 = vpop.eup %16355 }
0x1c3d   :  { %v12450_v24 = vmul.f32 %v16356_v19, %v16340_v14 }
0x1c3f   :  { %16109 = vmatmul.mubr.msk.f32.vlgmr.msra.gmra.mxu0 %vm195_vm1, %v12450_v24 }
0x1c40   :  { %16117 = vmatpush3.msra.mxu0 %v11416_v17  ;;  %16118 = vmatprep.mubr.msk.f32.mxu0 %vm16398_vm3, %v16397_v33 }
0x1c41   :  { %v12430_v42 = vpop.xlane.xlu1 %12429  ;;  %16126 = vmatprep.subr.mxu0 %v16397_v33 }
0x1c42   :  { %16359 = vrcp.f32 %v12430_v42  ;;  %v12439_v21 = vpop.xlane.xlu0 %12438 }
0x1c43   :  { %16361 = vrcp.f32 %v12439_v21 }
0x1c46   :  { %v16358_v26 = vpop.eup %16357 }
0x1c47   :  { %v12454_v8 = vmul.f32 %v16358_v26, %v16342_v55 }
0x1c49   :  { %16119 = vmatmul.mubr.msk.f32.vlgmr.msra.gmra.mxu0 %vm195_vm1, %v12454_v8 }
0x1c4a   :  { %16127 = vmatpush3.msra.mxu0 %v18468_v39  ;;  %16128 = vmatprep.mubr.msk.f32.mxu0 %vm16398_vm3, %v16397_v33  ;;  %v11696_v39 = vadd.f32 %v14132_v18, %v18473_v52  ;;  %v16374_v18 = vld [vmem:[%s18625_s6] sm:$0xff] }
0x1c4b   :  { %v12436_v36 = vpop.xlane.xlu1 %12435  ;;  %16136 = vmatprep.subr.mxu0 %v16397_v33  ;;  %v13642_v19 = vrot.slane %v16374_v18, %v17312_v0  ;;  %v13755_v0 = vld [vmem:[%s18637_s18 + $0x8] sm:$0xff] }
0x1c4c   :  { %16363 = vrcp.f32 %v12436_v36  ;;  %v12445_v28 = vpop.xlane.xlu0 %12444 }
0x1c4d   :  { %16365 = vrcp.f32 %v12445_v28 }
0x1c4f   :  { %v16360_v29 = vpop.eup %16359 }
0x1c50   :  { %v16362_v22 = vpop.eup %16361  ;;  %v12452_v1 = vmul.f32 %v16360_v29, %v16344_v16 }
0x1c51   :  { %v12458_v27 = vmul.f32 %v16362_v22, %v16346_v38 }
0x1c52   :  { %16114 = vmatmul.mubr.msk.f32.vlgmr.msra.gmra.mxu1 %vm195_vm1, %v12452_v1 }
0x1c53   :  { %16122 = vmatpush3.msra.mxu1 %v11486_v15  ;;  %16129 = vmatmul.mubr.msk.f32.vlgmr.msra.gmra.mxu0 %vm195_vm1, %v12458_v27 }
0x1c54   :  { %16137 = vmatpush3.msra.mxu0 %v11696_v39  ;;  %16123 = vmatprep.mubr.msk.f32.mxu1 %vm16398_vm3, %v16397_v33  ;;  %v13754_v39 = vld [vmem:[%s18637_s18] sm:$0xff] }
0x1c55   :  { %v12442_v6 = vpop.xlane.xlu1 %12441  ;;  %16131 = vmatprep.subr.mxu1 %v16397_v33  ;;  %16138 = vmatprep.mubr.msk.f32.mxu0 %vm16398_vm3, %v16397_v33 }
0x1c56   :  { %16367 = vrcp.f32 %v12442_v6  ;;  %16146 = vmatprep.subr.mxu0 %v16397_v33  ;;  %v14176_v6 = vld [vmem:[%s18636_s17 + $0x20] ss:$0 sm:$0xff] }
0x1c59   :  { %v16364_v50 = vpop.eup %16363 }
0x1c5a   :  { %v16366_v52 = vpop.eup %16365  ;;  %v12456_v44 = vmul.f32 %v16364_v50, %v16348_v57  ;;  %v13647_v57 = vld [vmem:[%s18636_s17 + $0x10] sm:$0xff] }
0x1c5b   :  { %v12462_v30 = vmul.f32 %v16366_v52, %v16350_v41  ;;  %v13646_v41 = vld [vmem:[%s18636_s17 + $0x8] sm:$0xff] }
0x1c5c   :  { %16124 = vmatmul.mubr.msk.f32.vlgmr.msra.gmra.mxu1 %vm195_vm1, %v12456_v44 }
0x1c5d   :  { %16132 = vmatpush3.msra.mxu1 %v18475_v58  ;;  %16139 = vmatmul.mubr.msk.f32.vlgmr.msra.gmra.mxu0 %vm195_vm1, %v12462_v30 }
0x1c5e   :  { %16133 = vmatprep.mubr.msk.f32.mxu1 %vm16398_vm3, %v16397_v33  ;;  %16141 = vmatprep.subr.mxu1 %v16397_v33 }
0x1c5f   :  { %v12448_v37 = vpop.xlane.xlu1 %12447  ;;  %16148 = vmatprep.mubr.msk.f32.mxu0 %vm16398_vm3, %v16397_v33  ;;  %16147 = vmatpush3.msra.mxu0 %v9999_v61 }
0x1c60   :  { %16369 = vrcp.f32 %v12448_v37  ;;  %16156 = vmatprep.subr.mxu0 %v16397_v33 }
0x1c63   :  { %v16368_v43 = vpop.eup %16367 }
0x1c64   :  { %v12460_v14 = vmul.f32 %v16368_v43, %v16352_v5 }
0x1c66   :  { %16134 = vmatmul.mubr.msk.f32.vlgmr.msra.gmra.mxu1 %vm195_vm1, %v12460_v14 }
0x1c67   :  { %16142 = vmatpush3.msra.mxu1 %v11766_v25  ;;  %16143 = vmatprep.mubr.msk.f32.mxu1 %vm16398_vm3, %v16397_v33 }
0x1c68   :  { %16151 = vmatprep.subr.mxu1 %v16397_v33 }
0x1c6d   :  { %v16370_v58 = vpop.eup %16369 }
0x1c6e   :  { %v12464_v47 = vmul.f32 %v16370_v58, %v18494_v9 }
0x1c70   :  { %16144 = vmatmul.mubr.msk.f32.vlgmr.msra.gmra.mxu1 %vm195_vm1, %v12464_v47 }
0x1c71   :  { %16153 = vmatprep.mubr.msk.f32.mxu1 %vm16398_vm3, %v16397_v33  ;;  %16152 = vmatpush3.msra.mxu1 %v10000_v46 }
0x1c72   :  { %16161 = vmatprep.subr.mxu1 %v16397_v33 }
0x1cff   :  { %v12534_v20 = vpop.f32.mrf.mxu0 }
0x1d00   :  { %16149 = vmatmul.mubr.msk.f32.vlgmr.msra.gmra.mxu0 %vm195_vm1, %v12534_v20 }
0x1d01   :  { %v16110_v49 = vpop.f32.mrf.mxu0  ;;  %16157 = vmatpush3.msra.mxu0 %v10001_v31  ;;  %16158 = vmatprep.mubr.msk.f32.mxu0 %vm16398_vm3, %v16397_v33 }
0x1d02   :  { %16166 = vmatprep.subr.mxu0 %v16397_v33 }
0x1d09   :  { %v12680_v48 = vpop.f32.mrf.mxu0 }
0x1d0a   :  { %16159 = vmatmul.mubr.msk.f32.vlgmr.msra.gmra.mxu0 %vm195_vm1, %v12680_v48 }
0x1d0b   :  { %v16120_v55 = vpop.f32.mrf.mxu0  ;;  %16167 = vmatpush3.msra.mxu0 %v9999_v61  ;;  %16168 = vmatprep.mubr.msk.f32.mxu0 %vm16398_vm3, %v16397_v33 }
0x1d0c   :  { %16176 = vmatprep.subr.mxu0 %v16397_v33 }
0x1d12   :  { %v12607_v54 = vpop.f32.mrf.mxu1 }
0x1d13   :  { %v12826_v34 = vpop.f32.mrf.mxu0  ;;  %16154 = vmatmul.mubr.msk.f32.vlgmr.msra.gmra.mxu1 %vm195_vm1, %v12607_v54 }
0x1d14   :  { %16169 = vmatmul.mubr.msk.f32.vlgmr.msra.gmra.mxu0 %vm195_vm1, %v12826_v34  ;;  %v16115_v56 = vpop.f32.mrf.mxu1  ;;  %16162 = vmatpush3.msra.mxu1 %v10002_v32 }
0x1d15   :  { %v16130_v35 = vpop.f32.mrf.mxu0  ;;  %16163 = vmatprep.mubr.msk.f32.mxu1 %vm16398_vm3, %v16397_v33  ;;  %16177 = vmatpush3.msra.mxu0 %v10001_v31  ;;  %v14177_v56 = vld [vmem:[%s18637_s18 + $0x10] ss:$0 sm:$0xff] }
0x1d16   :  { %16178 = vmatprep.mubr.msk.f32.mxu0 %vm16398_vm3, %v16397_v33  ;;  %16171 = vmatprep.subr.mxu1 %v16397_v33 }
0x1d17   :  { %16186 = vmatprep.subr.mxu0 %v13648_v40 }
0x1d1c   :  { %v12753_v13 = vpop.f32.mrf.mxu1 }
0x1d1d   :  { %v12972_v51 = vpop.f32.mrf.mxu0  ;;  %16164 = vmatmul.mubr.msk.f32.vlgmr.msra.gmra.mxu1 %vm195_vm1, %v12753_v13 }
0x1d1e   :  { %16179 = vmatmul.mubr.msk.f32.vlgmr.msra.gmra.mxu0 %vm195_vm1, %v12972_v51  ;;  %v16125_v16 = vpop.f32.mrf.mxu1  ;;  %16172 = vmatpush3.msra.mxu1 %v10000_v46 }
0x1d1f   :  { %v16140_v38 = vpop.f32.mrf.mxu0  ;;  %16173 = vmatprep.mubr.msk.f32.mxu1 %vm16398_vm3, %v16397_v33  ;;  %16181 = vmatprep.subr.mxu1 %v16397_v33 }
0x1d20   :  { %16187 = vmatpush3.msra.mxu0 %v13648_v40 }
0x1d21   :  { %16188 = vmatprep.subr.mxu0 %v13647_v57 }
0x1d22   :  { %16189 = vmatpush3.msra.mxu0 %v13647_v57 }
0x1d23   :  { %16190 = vmatprep.subr.mxu0 %v13646_v41 }
0x1d24   :  { %16191 = vmatpush3.msra.mxu0 %v13646_v41 }
0x1d25   :  { %16192 = vmatprep.subr.mxu0 %v13645_v59 }
0x1d26   :  { %v12899_v60 = vpop.f32.mrf.mxu1  ;;  %16193 = vmatpush3.msra.mxu0 %v13645_v59 }
0x1d27   :  { %16174 = vmatmul.mubr.msk.f32.vlgmr.msra.gmra.mxu1 %vm195_vm1, %v12899_v60 }
0x1d28   :  { %v16135_v2 = vpop.f32.mrf.mxu1  ;;  %16182 = vmatpush3.msra.mxu1 %v10002_v32  ;;  %16183 = vmatprep.mubr.msk.f32.mxu1 %vm16398_vm3, %v16397_v33 }
0x1d29   :  { %16197 = vmatprep.subr.mxu1 %v16397_v33 }
0x1d30   :  { %v13045_v45 = vpop.f32.mrf.mxu1 }
0x1d31   :  { %16184 = vmatmul.mubr.msk.f32.vlgmr.msra.gmra.mxu1 %vm195_vm1, %v13045_v45 }
0x1d32   :  { %v16145_v53 = vpop.f32.mrf.mxu1  ;;  %16201 = vmatprep.mubr.msk.f32.mxu1 %vm16398_vm3, %v16397_v33  ;;  %16198 = vmatpush3.msra.mxu1 %v13755_v0 }
0x1d33   :  { %16199 = vmatprep.subr.mxu1 %v16397_v33 }
0x1d34   :  { %16200 = vmatpush3.msra.mxu1 %v13754_v39 }
0x1dc0   :  { %v13118_v62 = vpop.f32.mrf.mxu0 }
0x1dc2   :  { %v16150_v63 = vpop.f32.mrf.mxu0 }
0x1dca   :  { %v13264_v3 = vpop.f32.mrf.mxu0 }
0x1dcc   :  { %v16160_v4 = vpop.f32.mrf.mxu0 }
0x1dd3   :  { %v13191_v5 = vpop.f32.mrf.mxu1 }
0x1dd4   :  { %v13410_v7 = vpop.f32.mrf.mxu0  ;;  %v13633_v11 = vadd.f32 %v13191_v5, %v13118_v62 }
0x1dd5   :  { %v16155_v9 = vpop.f32.mrf.mxu1 }
0x1dd6   :  { %v16170_v10 = vpop.f32.mrf.mxu0  ;;  %v13635_v12 = vadd.f32 %v13633_v11, %v13264_v3 }
0x1ddd   :  { %v13337_v24 = vpop.f32.mrf.mxu1 }
0x1dde   :  { %v13637_v17 = vadd.f32 %v13635_v12, %v13337_v24  ;;  %v13556_v42 = vpop.f32.mrf.mxu0 }
0x1ddf   :  { %v16165_v21 = vpop.f32.mrf.mxu1 }
0x1de0   :  { %v13643_v26 = vadd.f32 %v13642_v19, %v13637_v17  ;;  %v16180_v8 = vpop.f32.mrf.mxu0 }
0x1de2   :  { %16194 = vmatprep.mubr.msk.f32.mxu0 %vm1286_vm8, %v13643_v26 }
0x1de7   :  { %v13483_v36 = vpop.f32.mrf.mxu1 }
0x1de8   :  { %v13634_v23 = vadd.f32 %v13483_v36, %v13410_v7 }
0x1de9   :  { %v16175_v28 = vpop.f32.mrf.mxu1 }
0x1dea   :  { %v13636_v29 = vadd.f32 %v13634_v23, %v13556_v42 }
0x1df1   :  { %v13629_v22 = vpop.f32.mrf.mxu1 }
0x1df2   :  { %v13638_v1 = vadd.f32 %v13636_v29, %v13629_v22 }
0x1df3   :  { %v16185_v15 = vpop.f32.mrf.mxu1 }
0x1df4   :  { %v13644_v27 = vadd.f32 %v13642_v19, %v13638_v1 }
0x1df6   :  { %16195 = vmatmul.mubr.msk.f32.vlgmr.msra.gmra.mxu0 %vm1286_vm8, %v13644_v27 }
0x1eb6   :  { %v16196_v50 = vpop.f32.mrf.mxu0 }
0x1eb7   :  { %v13736_v52 = vadd.f32 %v16196_v50, %v14176_v6 }
0x1eb8   :  { %v13722_v44 = vpop.f32.mrf.mxu0 }
0x1eb9   :  { %v13744_v30 = vsel %vm247_vm2, %v13736_v52, 0.0  ;;  %v13735_v37 = vadd.f32 %v14176_v6, %v13722_v44 }
0x1eba   :  { %v13745_v43 = vrot.slane %v13744_v30, 4 }
0x1ebb   :  { %v13737_v14 = vsel %vm247_vm2, %v13735_v37, 0.0 }
0x1ebc   :  { %v13746_v25 = vadd.f32 %v13745_v43, %v13744_v30  ;;  %v13738_v58 = vrot.slane %v13737_v14, 4 }
0x1ebe   :  { %v13747_v47 = vrot.slane %v13746_v25, 2  ;;  %v13739_v61 = vadd.f32 %v13738_v58, %v13737_v14 }
0x1ec0   :  { %v13748_v46 = vadd.f32 %v13747_v47, %v13746_v25  ;;  %v13740_v33 = vrot.slane %v13739_v61, 2 }
0x1ec2   :  { %v13749_v31 = vrot.slane %v13748_v46, 1  ;;  %v13741_v20 = vadd.f32 %v13740_v33, %v13739_v61 }
0x1ec4   :  { %v13750_v49 = vadd.f32 %v13749_v31, %v13748_v46  ;;  %v13742_v48 = vrot.slane %v13741_v20, 1 }
0x1ec6   :  { %v13743_v55 = vadd.f32 %v13742_v48, %v13741_v20  ;;  %v13753_v32 = vmul.f32 0.125, %v13750_v49 }
0x1ec8   :  { %v13752_v54 = vmul.f32 0.125, %v13743_v55 }
0x1eca   :  { %v13764_v34 = vsel %vm13763_vm0, %v13753_v32, %v13752_v54 }
0x1ecb   :  { %16202 = vmatmul.mubr.msk.f32.vlgmr.msra.gmra.mxu1 %vm247_vm2, %v13764_v34 }
0x1f8b   :  { %v13833_v35 = vpop.f32.mrf.mxu1 }
0x1f8c   :  { %v13834_v13 = vadd.f32 %v14177_v56, %v13833_v35 }
0x1f8d   :  { %v16203_v51 = vpop.f32.mrf.mxu1 }
0x1f8e   :  { %13837 = vst [vmem:[#allocation2] sm:$0x3] %v13834_v13 }
0x1f8f   :  { %16386 = shalt.err (!%p16383_p4)
}
0x1f90   :  { %13847 = dma.vmem_to_hbm [thread:$0]  %s13845_s30, 32, %s18638_s19, [#allocation3]  }
0x1f91   :  { %16395 = dma.done.wait [#allocation3], 32  }
0x1f92   :  { %16396 = vsyncadd [#allocation3], 4294967264 }
0x1f93   :  { %13851 = vsyncpa [#allocation3], 1 }

</bundles_post_ra>
